<compile_context>
chip_gen: v7x
topology: tpu7x:2x2x1
jax: 0.10.0
libtpu: 0.0.40
codegen_flags: <defaults>
</compile_context>

<pallas_src>
import functools

import numpy as np
import jax
import jax.numpy as jnp
from jax.experimental import pallas as pl
from jax.experimental.pallas import tpu as pltpu

F32 = jnp.float32
_EPS = 1e-5

_VMEM = pl.BlockSpec(memory_space=pltpu.MemorySpace.VMEM)
_SMEM = pl.BlockSpec(memory_space=pltpu.MemorySpace.SMEM)


def _swish(v):
    return v * jax.nn.sigmoid(v)


# ---------------------------------------------------------------------------
# Static geometry shared by wrapper and kernel
# ---------------------------------------------------------------------------
def _geom(N, H, W):
    Wp1 = W + 14                      # block_1: per-row width after ZeroPad(7,7)
    Wc = W + 14 - 16 + 1              # block_1 conv(1,16) valid width (= W-1)
    W2 = Wc // 8                      # block_1 AvgPool(1,8)
    Wp2 = W2 + 14                     # block_2: per-row width after ZeroPad(7,7)
    W3 = (Wp2 - 16) // 2 + 1          # block_2 dw(1,16) stride 2
    H2 = H - 2                        # block_3 dw(3,1)
    Wp4 = W3 + 7                      # block_4: per-row width after ZeroPad(4,3)
    W4 = Wp4 - 8 + 1                  # block_4 dw(1,8)   (== W3)
    W5 = W4 // 2                      # block_4 AvgPool(1,2)
    NH = N * H
    g = dict(
        N=N, H=H, W=W, NH=NH, H2=H2,
        Wp1=Wp1, Wc=Wc, W2=W2, Wp2=Wp2, W3=W3, Wp4=Wp4, W4=W4, W5=W5,
        L1=NH * Wp1, Lc1=NH * Wp1 - 15,
        L2=NH * Wp2, Lc2=NH * Wp2 - 15,
        L3=NH * W3, Lc3=NH * W3 - 2 * W3,
        L4=N * H2 * W3,
        L5=N * H2 * Wp4, Lc4=N * H2 * Wp4 - 7,
        L6=N * H2 * W4, L7=N * H2 * W5,
    )
    # spatial-attention gapped layout: 1 zero lane after each row, one zero
    # gap-row after each sample, two zero gap-rows at the front.
    rs = W3 + 1
    g["sa_rs"] = rs
    g["sa_len"] = (2 + N * (H + 1)) * rs
    g["sa_i0"] = 2 * rs
    g["sa_lo"] = N * (H + 1) * rs + W3 - 2 * rs
    return g


def _geometry_constants(g):
    """0/1 selection / pooling / placement matrices (numpy constants)."""
    N, H, NH, H2 = g["N"], g["H"], g["NH"], g["H2"]
    Wp1, Wc, W2, Wp2, W3 = g["Wp1"], g["Wc"], g["W2"], g["Wp2"], g["W3"]
    Wp4, W4, W5 = g["Wp4"], g["W4"], g["W5"]
    rs = g["sa_rs"]

    idx = np.arange(g["Lc1"])
    m1 = ((idx % Wp1) < Wc).astype(np.float32)[None, :]          # BN1 validity

    p1 = np.zeros((Wc, Wp2), np.float32)                         # pool(1,8)+pad(7,7)
    for q in range(W2):
        p1[8 * q:8 * q + 8, 7 + q] = 0.125

    c2 = np.zeros((g["Lc2"], g["L3"]), np.float32)               # dw2 stride-2 compact
    for r in range(NH):
        for j in range(W3):
            c2[r * Wp2 + 2 * j, r * W3 + j] = 1.0

    se = np.zeros((N, g["L3"]), np.float32)                      # per-sample broadcast
    for n in range(N):
        se[n, n * H * W3:(n + 1) * H * W3] = 1.0

    esa = np.zeros((g["L3"], g["sa_len"]), np.float32)           # dense -> gapped
    csa = np.zeros((g["sa_lo"], g["L3"]), np.float32)            # gapped -> dense
    for n in range(N):
        for h in range(H):
            base = (2 + n * (H + 1) + h) * rs
            for w in range(W3):
                dense = n * H * W3 + h * W3 + w
                esa[dense, base + w] = 1.0
                csa[base + w - g["sa_i0"], dense] = 1.0

    p3 = np.zeros((g["Lc3"], g["L4"]), np.float32)               # dw3 valid-row compact
    for n in range(N):
        for h in range(H2):
            for w in range(W3):
                p3[n * H * W3 + h * W3 + w, (n * H2 + h) * W3 + w] = 1.0

    p4 = np.zeros((g["L4"], g["L5"]), np.float32)                # block_4 ZeroPad(4,3)
    for r in range(N * H2):
        for w in range(W3):
            p4[r * W3 + w, r * Wp4 + 4 + w] = 1.0

    c4 = np.zeros((g["Lc4"], g["L6"]), np.float32)               # dw4 compact
    for r in range(N * H2):
        for j in range(W4):
            c4[r * Wp4 + j, r * W4 + j] = 1.0

    p5 = np.zeros((g["L6"], g["L7"]), np.float32)                # AvgPool(1,2)
    for r in range(N * H2):
        for q in range(W5):
            p5[r * W4 + 2 * q, r * W5 + q] = 0.5
            p5[r * W4 + 2 * q + 1, r * W5 + q] = 0.5

    return dict(m1=m1, p1=p1, c2=c2, se=se, esa=esa, csa=csa,
                p3=p3, p4=p4, c4=c4, p5=p5)


# ---------------------------------------------------------------------------
# The single fused kernel
# ---------------------------------------------------------------------------
def _cnn_kernel(x_ref, b1w_ref, m1_ref, p1_ref, pw1_ref, dw2_ref, c2_ref,
                pw2_ref, ca1_ref, ca2_ref, se_ref, saw_ref, esa_ref, csa_ref,
                pw3_ref, dw3_ref, p3_ref, pw4_ref, pw5_ref, p4_ref, dw4_ref,
                c4_ref, pw6_ref, p5_ref, bng_ref, bnb_ref, o_ref, *, g, F1, D):
    DF1 = D * F1
    DDF1 = D * D * F1
    mm = functools.partial(jnp.dot, preferred_element_type=jnp.float32)

    # packed BatchNorm affine parameter offsets
    bn_off = {}
    off = 0
    for name, c in (("bn1", F1), ("bn2", DF1), ("bn3", DF1), ("bn4", DDF1),
                    ("bn5", DF1), ("bn6", DDF1), ("bn7", DF1)):
        bn_off[name] = (off, c)
        off += c

    def bn_act(xc, name, act, mask=None, count=None):
        # channel-stacked slab (C, M); training-mode batch-statistics BN + act
        o, c = bn_off[name]
        if mask is None:
            mean = jnp.mean(xc, axis=1, keepdims=True)
            var = jnp.mean(jnp.square(xc - mean), axis=1, keepdims=True)
        else:
            inv = 1.0 / count
            mean = jnp.sum(xc * mask, axis=1, keepdims=True) * inv
            var = jnp.sum(jnp.square(xc - mean) * mask, axis=1, keepdims=True) * inv
        y = (xc - mean) * jax.lax.rsqrt(var + _EPS)
        y = y * bng_ref[o:o + c, :] + bnb_ref[o:o + c, :]
        if act == "relu":
            y = jnp.maximum(y, 0.0)
        elif act == "swish":
            y = _swish(y)
        return y

    # ---- block_1: pad(7,7) -> conv(1,16) 1->F1 -> BN -> ReLU -> AvgPool(1,8)
    xs = x_ref[...]                                   # (1, L1) padded rows, stride Wp1
    b1w = b1w_ref[...]                                # (F1, 16)
    Lc1 = g["Lc1"]
    conv = b1w[:, 0:1] * xs[:, 0:Lc1]
    for k in range(1, 16):
        conv = conv + b1w[:, k:k + 1] * xs[:, k:k + Lc1]          # (F1, Lc1)
    conv = bn_act(conv, "bn1", "relu",
                  mask=m1_ref[...], count=float(g["NH"] * g["Wc"]))
    p1 = p1_ref[...]                                  # (Wc, Wp2): pool + re-pad(7,7)
    rows = []
    for r in range(g["NH"]):
        s = r * g["Wp1"]
        rows.append(mm(conv[:, s:s + g["Wc"]], p1))   # (F1, Wp2)
    x1 = jnp.concatenate(rows, axis=1)                # (F1, L2) zero-padded rows

    # ---- block_2: (pad) -> 1x1 F1->DF1 -> swish -> dw(1,16) s2 -> BN -> swish
    #               -> 1x1 -> BN   (pad commutes with the zero-preserving 1x1+swish)
    x2 = _swish(mm(pw1_ref[...], x1))                 # (DF1, L2)
    dw2 = dw2_ref[...]                                # (DF1, 16)
    Lc2 = g["Lc2"]
    acc = dw2[:, 0:1] * x2[:, 0:Lc2]
    for k in range(1, 16):
        acc = acc + dw2[:, k:k + 1] * x2[:, k:k + Lc2]            # (DF1, Lc2)
    x2 = mm(acc, c2_ref[...])                         # (DF1, L3) dense (N,H,W3)
    x2 = bn_act(x2, "bn2", "swish")
    x2 = mm(pw2_ref[...], x2)
    x2 = bn_act(x2, "bn3", "none")

    # ---- CBAM: channel attention (batched MLP over all samples/poolings)
    N, H, W3 = g["N"], g["H"], g["W3"]
    HW3 = H * W3
    stats = []
    for n in range(N):
        stats.append(jnp.mean(x2[:, n * HW3:(n + 1) * HW3], axis=1, keepdims=True))
    for n in range(N):
        stats.append(jnp.max(x2[:, n * HW3:(n + 1) * HW3], axis=1, keepdims=True))
    S = jnp.concatenate(stats, axis=1)                # (DF1, 2N)
    A = mm(ca2_ref[...], jnp.maximum(mm(ca1_ref[...], S), 0.0))   # (DF1, 2N)
    ca = jax.nn.sigmoid(A[:, 0:N] + A[:, N:2 * N])    # (DF1, N)
    x2 = x2 * mm(ca, se_ref[...])                     # per-sample channel scaling

    # ---- CBAM: spatial attention (3x3 conv on [mean_c, max_c], padding 1)
    avg_map = jnp.mean(x2, axis=0, keepdims=True)     # (1, L3)
    max_map = jnp.max(x2, axis=0, keepdims=True)
    maps = jnp.concatenate([avg_map, max_map], axis=0)            # (2, L3)
    mg = mm(maps, esa_ref[...])                       # (2, Lsa) zero-gapped layout
    rs, i0, Lo = g["sa_rs"], g["sa_i0"], g["sa_lo"]
    att = None
    for m in range(2):
        for di in range(3):
            for dj in range(3):
                s = i0 + (di - 1) * rs + (dj - 1)
                term = saw_ref[m * 9 + di * 3 + dj] * mg[m:m + 1, s:s + Lo]
                att = term if att is None else att + term         # (1, Lo)
    att = mm(jax.nn.sigmoid(att), csa_ref[...])       # (1, L3) dense
    x2 = x2 * att

    # ---- block_3: grouped 1x1 ->DDF1 -> swish -> dw(3,1) -> BN -> swish
    #               -> grouped 1x1 ->DF1 -> BN
    x3 = _swish(mm(pw3_ref[...], x2))                 # (DDF1, L3)
    dw3 = dw3_ref[...]                                # (DDF1, 3)
    Lc3 = g["Lc3"]
    acc = dw3[:, 0:1] * x3[:, 0:Lc3]
    for k in range(1, 3):
        acc = acc + dw3[:, k:k + 1] * x3[:, k * W3:k * W3 + Lc3]  # (DDF1, Lc3)
    x3 = mm(acc, p3_ref[...])                         # (DDF1, L4) dense (N,H2,W3)
    x3 = bn_act(x3, "bn4", "swish")
    x3 = mm(pw4_ref[...], x3)                         # (DF1, L4)
    x3 = bn_act(x3, "bn5", "none")

    # ---- block_4: (pad 4,3) -> 1x1 ->DDF1 -> swish -> dw(1,8) -> BN -> swish
    #               -> grouped 1x1 ->DF1 -> BN -> AvgPool(1,2)
    x4 = _swish(mm(pw5_ref[...], x3))                 # (DDF1, L4)
    x4 = mm(x4, p4_ref[...])                          # (DDF1, L5) zero-padded rows
    dw4 = dw4_ref[...]                                # (DDF1, 8)
    Lc4 = g["Lc4"]
    acc = dw4[:, 0:1] * x4[:, 0:Lc4]
    for k in range(1, 8):
        acc = acc + dw4[:, k:k + 1] * x4[:, k:k + Lc4]            # (DDF1, Lc4)
    x4 = mm(acc, c4_ref[...])                         # (DDF1, L6)
    x4 = bn_act(x4, "bn6", "swish")
    x4 = mm(pw6_ref[...], x4)                         # (DF1, L6)
    x4 = bn_act(x4, "bn7", "none")
    o_ref[...] = mm(x4, p5_ref[...])                  # (DF1, L7) single store


# ---------------------------------------------------------------------------
# Parameter construction & forward wrapper
# ---------------------------------------------------------------------------
def grouped_dense(w, groups):
    # w: (Cout, Cin_per_group) grouped 1x1 weight -> dense (Cout, Cin) block-diag
    Cout, Cpg = w.shape
    Copg = Cout // groups
    Cin = Cpg * groups
    dense = jnp.zeros((Cout, Cin), F32)
    for grp in range(groups):
        dense = dense.at[grp * Copg:(grp + 1) * Copg,
                         grp * Cpg:(grp + 1) * Cpg].set(
                             w[grp * Copg:(grp + 1) * Copg, :])
    return dense


def init_params(key, F1=8, D=2):
    DF1, DDF1 = D * F1, D * D * F1
    ks = jax.random.split(key, 13)

    def nrm(k, shape, scale=0.1):
        return jax.random.normal(k, shape, dtype=F32) * scale

    p = {
        "b1_conv": nrm(ks[0], (F1, 16)),          # (Cout, KW)
        "b2_pw1":  nrm(ks[1], (DF1, F1)),         # (Cout, Cin)
        "b2_dw":   nrm(ks[2], (DF1, 16)),         # (C, KW)
        "b2_pw2":  nrm(ks[3], (DF1, DF1)),
        "ca_w1":   nrm(ks[4], (DF1 // 4, DF1)),
        "ca_w2":   nrm(ks[5], (DF1, DF1 // 4)),
        "sa_w":    nrm(ks[6], (2, 3, 3)),         # (in=avg/max, 3, 3)
        "b3_pw1":  nrm(ks[7], (DDF1, DF1 // 4)),  # grouped (Cout, Cin/groups)
        "b3_dw":   nrm(ks[8], (DDF1, 3)),         # (C, KH)
        "b3_pw2":  nrm(ks[9], (DF1, DDF1 // 4)),
        "b4_pw1":  nrm(ks[10], (DDF1, DF1)),
        "b4_dw":   nrm(ks[11], (DDF1, 8)),
        "b4_pw2":  nrm(ks[12], (DF1, DDF1 // 4)),
    }
    # fresh nn.BatchNorm2d affine params: gamma=1, beta=0
    for name, c in (("bn1", F1), ("bn2", DF1), ("bn3", DF1), ("bn4", DDF1),
                    ("bn5", DF1), ("bn6", DDF1), ("bn7", DF1)):
        p[name + "_g"] = jnp.ones((c,), F32)
        p[name + "_b"] = jnp.zeros((c,), F32)
    return p


def cnn_forward(params, x, F1=8, D=2):
    p = params
    N, Cin, H, W = x.shape
    assert Cin == 1, "block_1 expects a single input channel"
    DF1 = D * F1

    g = _geom(N, H, W)
    assert H >= 3 and g["W2"] >= 1 and g["W3"] >= 1 and g["W5"] >= 1
    c = _geometry_constants(g)

    pw3 = grouped_dense(p["b3_pw1"], 4)     # (DDF1, DF1)
    pw4 = grouped_dense(p["b3_pw2"], 4)     # (DF1, DDF1)
    pw6 = grouped_dense(p["b4_pw2"], 4)     # (DF1, DDF1)
    bng = jnp.concatenate([p["bn1_g"], p["bn2_g"], p["bn3_g"], p["bn4_g"],
                           p["bn5_g"], p["bn6_g"], p["bn7_g"]]).reshape(-1, 1)
    bnb = jnp.concatenate([p["bn1_b"], p["bn2_b"], p["bn3_b"], p["bn4_b"],
                           p["bn5_b"], p["bn6_b"], p["bn7_b"]]).reshape(-1, 1)
    saw = p["sa_w"].reshape(-1).astype(F32)

    # input (N,1,H,W) -> per-row zero-padded flat slab (1, N*H*(W+14))
    x2d = x.astype(F32).reshape(N * H, W)
    x_slab = jnp.pad(x2d, ((0, 0), (7, 7))).reshape(1, g["L1"])

    kern = functools.partial(_cnn_kernel, g=g, F1=F1, D=D)
    out = pl.pallas_call(
        kern,
        out_shape=jax.ShapeDtypeStruct((DF1, g["L7"]), F32),
        in_specs=[_VMEM] * 11 + [_SMEM] + [_VMEM] * 14,
        out_specs=_VMEM,
    )(x_slab, p["b1_conv"], jnp.asarray(c["m1"]), jnp.asarray(c["p1"]),
      p["b2_pw1"], p["b2_dw"], jnp.asarray(c["c2"]), p["b2_pw2"],
      p["ca_w1"], p["ca_w2"], jnp.asarray(c["se"]), saw,
      jnp.asarray(c["esa"]), jnp.asarray(c["csa"]),
      pw3, p["b3_dw"], jnp.asarray(c["p3"]), pw4,
      p["b4_pw1"], jnp.asarray(c["p4"]), p["b4_dw"], jnp.asarray(c["c4"]),
      pw6, jnp.asarray(c["p5"]), bng, bnb)

    # (DF1, N*H2*W5) -> NCHW (tiny)
    return out.reshape(DF1, N, g["H2"], g["W5"]).transpose(1, 0, 2, 3)


if __name__ == "__main__":
    F1, D = 8, 2
    key = jax.random.PRNGKey(0)
    kp, kx = jax.random.split(key)
    params = init_params(kp, F1=F1, D=D)
    # input: NCHW with the single input channel required by block_1
    x = jax.random.normal(kx, (2, 1, 4, 128), dtype=F32)

    fwd = jax.jit(functools.partial(cnn_forward, F1=F1, D=D))
    out = fwd(params, x)
    jax.block_until_ready(out)

    assert out.shape == (2, D * F1, 2, 3), out.shape
    assert bool(jnp.all(jnp.isfinite(out)))
    print("KERNEL_OK")
</pallas_src>

<mosaic_0001>
module attributes {stable_mosaic.version = 11 : i64} {
  func.func @_cnn_kernel(%arg0: memref<1x1136xf32, #tpu.memory_space<vmem>>, %arg1: memref<8x16xf32, #tpu.memory_space<vmem>>, %arg2: memref<1x1121xf32, #tpu.memory_space<vmem>>, %arg3: memref<127x29xf32, #tpu.memory_space<vmem>>, %arg4: memref<16x8xf32, #tpu.memory_space<vmem>>, %arg5: memref<16x16xf32, #tpu.memory_space<vmem>>, %arg6: memref<217x56xf32, #tpu.memory_space<vmem>>, %arg7: memref<16x16xf32, #tpu.memory_space<vmem>>, %arg8: memref<4x16xf32, #tpu.memory_space<vmem>>, %arg9: memref<16x4xf32, #tpu.memory_space<vmem>>, %arg10: memref<2x56xf32, #tpu.memory_space<vmem>>, %arg11: memref<18xf32, #tpu.memory_space<smem>>, %arg12: memref<56x96xf32, #tpu.memory_space<vmem>>, %arg13: memref<71x56xf32, #tpu.memory_space<vmem>>, %arg14: memref<32x16xf32, #tpu.memory_space<vmem>>, %arg15: memref<32x3xf32, #tpu.memory_space<vmem>>, %arg16: memref<42x28xf32, #tpu.memory_space<vmem>>, %arg17: memref<16x32xf32, #tpu.memory_space<vmem>>, %arg18: memref<32x16xf32, #tpu.memory_space<vmem>>, %arg19: memref<28x56xf32, #tpu.memory_space<vmem>>, %arg20: memref<32x8xf32, #tpu.memory_space<vmem>>, %arg21: memref<49x28xf32, #tpu.memory_space<vmem>>, %arg22: memref<16x32xf32, #tpu.memory_space<vmem>>, %arg23: memref<28x12xf32, #tpu.memory_space<vmem>>, %arg24: memref<136x1xf32, #tpu.memory_space<vmem>>, %arg25: memref<136x1xf32, #tpu.memory_space<vmem>>, %arg26: memref<16x12xf32, #tpu.memory_space<vmem>>) attributes {dimension_semantics = [], scalar_prefetch = 0 : i64, scratch_operands = 0 : i64, tpu.core_type = #tpu.core_type<tc>} {
    %c0 = arith.constant 0 : index
    %c0_0 = arith.constant 0 : index
    %0 = vector.load %arg0[%c0, %c0_0] : memref<1x1136xf32, #tpu.memory_space<vmem>>, vector<1x1136xf32>
    %c0_1 = arith.constant 0 : index
    %c0_2 = arith.constant 0 : index
    %1 = vector.load %arg1[%c0_1, %c0_2] : memref<8x16xf32, #tpu.memory_space<vmem>>, vector<8x16xf32>
    %2 = vector.extract_strided_slice %1 {offsets = [0, 0], sizes = [8, 1], strides = [1, 1]} : vector<8x16xf32> to vector<8x1xf32>
    %3 = vector.extract_strided_slice %0 {offsets = [0, 0], sizes = [1, 1121], strides = [1, 1]} : vector<1x1136xf32> to vector<1x1121xf32>
    %4 = vector.broadcast %2 : vector<8x1xf32> to vector<8x1121xf32>
    %5 = vector.broadcast %3 : vector<1x1121xf32> to vector<8x1121xf32>
    %6 = arith.mulf %4, %5 : vector<8x1121xf32>
    %7 = vector.extract_strided_slice %1 {offsets = [0, 1], sizes = [8, 1], strides = [1, 1]} : vector<8x16xf32> to vector<8x1xf32>
    %8 = vector.extract_strided_slice %0 {offsets = [0, 1], sizes = [1, 1121], strides = [1, 1]} : vector<1x1136xf32> to vector<1x1121xf32>
    %9 = vector.broadcast %7 : vector<8x1xf32> to vector<8x1121xf32>
    %10 = vector.broadcast %8 : vector<1x1121xf32> to vector<8x1121xf32>
    %11 = arith.mulf %9, %10 : vector<8x1121xf32>
    %12 = arith.addf %6, %11 : vector<8x1121xf32>
    %13 = vector.extract_strided_slice %1 {offsets = [0, 2], sizes = [8, 1], strides = [1, 1]} : vector<8x16xf32> to vector<8x1xf32>
    %14 = vector.extract_strided_slice %0 {offsets = [0, 2], sizes = [1, 1121], strides = [1, 1]} : vector<1x1136xf32> to vector<1x1121xf32>
    %15 = vector.broadcast %13 : vector<8x1xf32> to vector<8x1121xf32>
    %16 = vector.broadcast %14 : vector<1x1121xf32> to vector<8x1121xf32>
    %17 = arith.mulf %15, %16 : vector<8x1121xf32>
    %18 = arith.addf %12, %17 : vector<8x1121xf32>
    %19 = vector.extract_strided_slice %1 {offsets = [0, 3], sizes = [8, 1], strides = [1, 1]} : vector<8x16xf32> to vector<8x1xf32>
    %20 = vector.extract_strided_slice %0 {offsets = [0, 3], sizes = [1, 1121], strides = [1, 1]} : vector<1x1136xf32> to vector<1x1121xf32>
    %21 = vector.broadcast %19 : vector<8x1xf32> to vector<8x1121xf32>
    %22 = vector.broadcast %20 : vector<1x1121xf32> to vector<8x1121xf32>
    %23 = arith.mulf %21, %22 : vector<8x1121xf32>
    %24 = arith.addf %18, %23 : vector<8x1121xf32>
    %25 = vector.extract_strided_slice %1 {offsets = [0, 4], sizes = [8, 1], strides = [1, 1]} : vector<8x16xf32> to vector<8x1xf32>
    %26 = vector.extract_strided_slice %0 {offsets = [0, 4], sizes = [1, 1121], strides = [1, 1]} : vector<1x1136xf32> to vector<1x1121xf32>
    %27 = vector.broadcast %25 : vector<8x1xf32> to vector<8x1121xf32>
    %28 = vector.broadcast %26 : vector<1x1121xf32> to vector<8x1121xf32>
    %29 = arith.mulf %27, %28 : vector<8x1121xf32>
    %30 = arith.addf %24, %29 : vector<8x1121xf32>
    %31 = vector.extract_strided_slice %1 {offsets = [0, 5], sizes = [8, 1], strides = [1, 1]} : vector<8x16xf32> to vector<8x1xf32>
    %32 = vector.extract_strided_slice %0 {offsets = [0, 5], sizes = [1, 1121], strides = [1, 1]} : vector<1x1136xf32> to vector<1x1121xf32>
    %33 = vector.broadcast %31 : vector<8x1xf32> to vector<8x1121xf32>
    %34 = vector.broadcast %32 : vector<1x1121xf32> to vector<8x1121xf32>
    %35 = arith.mulf %33, %34 : vector<8x1121xf32>
    %36 = arith.addf %30, %35 : vector<8x1121xf32>
    %37 = vector.extract_strided_slice %1 {offsets = [0, 6], sizes = [8, 1], strides = [1, 1]} : vector<8x16xf32> to vector<8x1xf32>
    %38 = vector.extract_strided_slice %0 {offsets = [0, 6], sizes = [1, 1121], strides = [1, 1]} : vector<1x1136xf32> to vector<1x1121xf32>
    %39 = vector.broadcast %37 : vector<8x1xf32> to vector<8x1121xf32>
    %40 = vector.broadcast %38 : vector<1x1121xf32> to vector<8x1121xf32>
    %41 = arith.mulf %39, %40 : vector<8x1121xf32>
    %42 = arith.addf %36, %41 : vector<8x1121xf32>
    %43 = vector.extract_strided_slice %1 {offsets = [0, 7], sizes = [8, 1], strides = [1, 1]} : vector<8x16xf32> to vector<8x1xf32>
    %44 = vector.extract_strided_slice %0 {offsets = [0, 7], sizes = [1, 1121], strides = [1, 1]} : vector<1x1136xf32> to vector<1x1121xf32>
    %45 = vector.broadcast %43 : vector<8x1xf32> to vector<8x1121xf32>
    %46 = vector.broadcast %44 : vector<1x1121xf32> to vector<8x1121xf32>
    %47 = arith.mulf %45, %46 : vector<8x1121xf32>
    %48 = arith.addf %42, %47 : vector<8x1121xf32>
    %49 = vector.extract_strided_slice %1 {offsets = [0, 8], sizes = [8, 1], strides = [1, 1]} : vector<8x16xf32> to vector<8x1xf32>
    %50 = vector.extract_strided_slice %0 {offsets = [0, 8], sizes = [1, 1121], strides = [1, 1]} : vector<1x1136xf32> to vector<1x1121xf32>
    %51 = vector.broadcast %49 : vector<8x1xf32> to vector<8x1121xf32>
    %52 = vector.broadcast %50 : vector<1x1121xf32> to vector<8x1121xf32>
    %53 = arith.mulf %51, %52 : vector<8x1121xf32>
    %54 = arith.addf %48, %53 : vector<8x1121xf32>
    %55 = vector.extract_strided_slice %1 {offsets = [0, 9], sizes = [8, 1], strides = [1, 1]} : vector<8x16xf32> to vector<8x1xf32>
    %56 = vector.extract_strided_slice %0 {offsets = [0, 9], sizes = [1, 1121], strides = [1, 1]} : vector<1x1136xf32> to vector<1x1121xf32>
    %57 = vector.broadcast %55 : vector<8x1xf32> to vector<8x1121xf32>
    %58 = vector.broadcast %56 : vector<1x1121xf32> to vector<8x1121xf32>
    %59 = arith.mulf %57, %58 : vector<8x1121xf32>
    %60 = arith.addf %54, %59 : vector<8x1121xf32>
    %61 = vector.extract_strided_slice %1 {offsets = [0, 10], sizes = [8, 1], strides = [1, 1]} : vector<8x16xf32> to vector<8x1xf32>
    %62 = vector.extract_strided_slice %0 {offsets = [0, 10], sizes = [1, 1121], strides = [1, 1]} : vector<1x1136xf32> to vector<1x1121xf32>
    %63 = vector.broadcast %61 : vector<8x1xf32> to vector<8x1121xf32>
    %64 = vector.broadcast %62 : vector<1x1121xf32> to vector<8x1121xf32>
    %65 = arith.mulf %63, %64 : vector<8x1121xf32>
    %66 = arith.addf %60, %65 : vector<8x1121xf32>
    %67 = vector.extract_strided_slice %1 {offsets = [0, 11], sizes = [8, 1], strides = [1, 1]} : vector<8x16xf32> to vector<8x1xf32>
    %68 = vector.extract_strided_slice %0 {offsets = [0, 11], sizes = [1, 1121], strides = [1, 1]} : vector<1x1136xf32> to vector<1x1121xf32>
    %69 = vector.broadcast %67 : vector<8x1xf32> to vector<8x1121xf32>
    %70 = vector.broadcast %68 : vector<1x1121xf32> to vector<8x1121xf32>
    %71 = arith.mulf %69, %70 : vector<8x1121xf32>
    %72 = arith.addf %66, %71 : vector<8x1121xf32>
    %73 = vector.extract_strided_slice %1 {offsets = [0, 12], sizes = [8, 1], strides = [1, 1]} : vector<8x16xf32> to vector<8x1xf32>
    %74 = vector.extract_strided_slice %0 {offsets = [0, 12], sizes = [1, 1121], strides = [1, 1]} : vector<1x1136xf32> to vector<1x1121xf32>
    %75 = vector.broadcast %73 : vector<8x1xf32> to vector<8x1121xf32>
    %76 = vector.broadcast %74 : vector<1x1121xf32> to vector<8x1121xf32>
    %77 = arith.mulf %75, %76 : vector<8x1121xf32>
    %78 = arith.addf %72, %77 : vector<8x1121xf32>
    %79 = vector.extract_strided_slice %1 {offsets = [0, 13], sizes = [8, 1], strides = [1, 1]} : vector<8x16xf32> to vector<8x1xf32>
    %80 = vector.extract_strided_slice %0 {offsets = [0, 13], sizes = [1, 1121], strides = [1, 1]} : vector<1x1136xf32> to vector<1x1121xf32>
    %81 = vector.broadcast %79 : vector<8x1xf32> to vector<8x1121xf32>
    %82 = vector.broadcast %80 : vector<1x1121xf32> to vector<8x1121xf32>
    %83 = arith.mulf %81, %82 : vector<8x1121xf32>
    %84 = arith.addf %78, %83 : vector<8x1121xf32>
    %85 = vector.extract_strided_slice %1 {offsets = [0, 14], sizes = [8, 1], strides = [1, 1]} : vector<8x16xf32> to vector<8x1xf32>
    %86 = vector.extract_strided_slice %0 {offsets = [0, 14], sizes = [1, 1121], strides = [1, 1]} : vector<1x1136xf32> to vector<1x1121xf32>
    %87 = vector.broadcast %85 : vector<8x1xf32> to vector<8x1121xf32>
    %88 = vector.broadcast %86 : vector<1x1121xf32> to vector<8x1121xf32>
    %89 = arith.mulf %87, %88 : vector<8x1121xf32>
    %90 = arith.addf %84, %89 : vector<8x1121xf32>
    %91 = vector.extract_strided_slice %1 {offsets = [0, 15], sizes = [8, 1], strides = [1, 1]} : vector<8x16xf32> to vector<8x1xf32>
    %92 = vector.extract_strided_slice %0 {offsets = [0, 15], sizes = [1, 1121], strides = [1, 1]} : vector<1x1136xf32> to vector<1x1121xf32>
    %93 = vector.broadcast %91 : vector<8x1xf32> to vector<8x1121xf32>
    %94 = vector.broadcast %92 : vector<1x1121xf32> to vector<8x1121xf32>
    %95 = arith.mulf %93, %94 : vector<8x1121xf32>
    %96 = arith.addf %90, %95 : vector<8x1121xf32>
    %c0_3 = arith.constant 0 : index
    %c0_4 = arith.constant 0 : index
    %97 = vector.load %arg2[%c0_3, %c0_4] : memref<1x1121xf32, #tpu.memory_space<vmem>>, vector<1x1121xf32>
    %98 = vector.broadcast %97 : vector<1x1121xf32> to vector<8x1121xf32>
    %99 = arith.mulf %96, %98 : vector<8x1121xf32>
    %cst = arith.constant dense<0.000000e+00> : vector<8xf32>
    %100 = vector.multi_reduction <add>, %99, %cst [1] : vector<8x1121xf32> to vector<8xf32>
    %101 = vector.shape_cast %100 : vector<8xf32> to vector<8x1xf32>
    %cst_5 = arith.constant 9.842520e-04 : f32
    %102 = vector.broadcast %cst_5 : f32 to vector<8x1xf32>
    %103 = arith.mulf %101, %102 : vector<8x1xf32>
    %104 = vector.broadcast %103 : vector<8x1xf32> to vector<8x1121xf32>
    %105 = arith.subf %96, %104 : vector<8x1121xf32>
    %106 = arith.mulf %105, %105 : vector<8x1121xf32>
    %107 = vector.broadcast %97 : vector<1x1121xf32> to vector<8x1121xf32>
    %108 = arith.mulf %106, %107 : vector<8x1121xf32>
    %cst_6 = arith.constant dense<0.000000e+00> : vector<8xf32>
    %109 = vector.multi_reduction <add>, %108, %cst_6 [1] : vector<8x1121xf32> to vector<8xf32>
    %110 = vector.shape_cast %109 : vector<8xf32> to vector<8x1xf32>
    %cst_7 = arith.constant 9.842520e-04 : f32
    %111 = vector.broadcast %cst_7 : f32 to vector<8x1xf32>
    %112 = arith.mulf %110, %111 : vector<8x1xf32>
    %113 = vector.broadcast %103 : vector<8x1xf32> to vector<8x1121xf32>
    %114 = arith.subf %96, %113 : vector<8x1121xf32>
    %cst_8 = arith.constant 9.99999974E-6 : f32
    %115 = vector.broadcast %cst_8 : f32 to vector<8x1xf32>
    %116 = arith.addf %112, %115 : vector<8x1xf32>
    %117 = math.rsqrt %116 : vector<8x1xf32>
    %118 = vector.broadcast %117 : vector<8x1xf32> to vector<8x1121xf32>
    %119 = arith.mulf %114, %118 : vector<8x1121xf32>
    %c0_9 = arith.constant 0 : index
    %c0_10 = arith.constant 0 : index
    %120 = vector.load %arg24[%c0_9, %c0_10] : memref<136x1xf32, #tpu.memory_space<vmem>>, vector<8x1xf32>
    %121 = vector.broadcast %120 : vector<8x1xf32> to vector<8x1121xf32>
    %122 = arith.mulf %119, %121 : vector<8x1121xf32>
    %c0_11 = arith.constant 0 : index
    %c0_12 = arith.constant 0 : index
    %123 = vector.load %arg25[%c0_11, %c0_12] : memref<136x1xf32, #tpu.memory_space<vmem>>, vector<8x1xf32>
    %124 = vector.broadcast %123 : vector<8x1xf32> to vector<8x1121xf32>
    %125 = arith.addf %122, %124 : vector<8x1121xf32>
    %cst_13 = arith.constant 0.000000e+00 : f32
    %126 = vector.broadcast %cst_13 : f32 to vector<8x1121xf32>
    %127 = arith.maximumf %125, %126 : vector<8x1121xf32>
    %c0_14 = arith.constant 0 : index
    %c0_15 = arith.constant 0 : index
    %128 = vector.load %arg3[%c0_14, %c0_15] : memref<127x29xf32, #tpu.memory_space<vmem>>, vector<127x29xf32>
    %129 = vector.extract_strided_slice %127 {offsets = [0, 0], sizes = [8, 127], strides = [1, 1]} : vector<8x1121xf32> to vector<8x127xf32>
    %cst_16 = arith.constant dense<0.000000e+00> : vector<8x29xf32>
    %130 = tpu.matmul %129, %128, %cst_16 {dimension_numbers = #tpu.dot_dimension_numbers<[1], [0], [0], [1], [0, 0, 1, 1], [], []>} : vector<8x127xf32>, vector<127x29xf32>, vector<8x29xf32> -> vector<8x29xf32>
    %131 = vector.extract_strided_slice %127 {offsets = [0, 142], sizes = [8, 127], strides = [1, 1]} : vector<8x1121xf32> to vector<8x127xf32>
    %cst_17 = arith.constant dense<0.000000e+00> : vector<8x29xf32>
    %132 = tpu.matmul %131, %128, %cst_17 {dimension_numbers = #tpu.dot_dimension_numbers<[1], [0], [0], [1], [0, 0, 1, 1], [], []>} : vector<8x127xf32>, vector<127x29xf32>, vector<8x29xf32> -> vector<8x29xf32>
    %133 = vector.extract_strided_slice %127 {offsets = [0, 284], sizes = [8, 127], strides = [1, 1]} : vector<8x1121xf32> to vector<8x127xf32>
    %cst_18 = arith.constant dense<0.000000e+00> : vector<8x29xf32>
    %134 = tpu.matmul %133, %128, %cst_18 {dimension_numbers = #tpu.dot_dimension_numbers<[1], [0], [0], [1], [0, 0, 1, 1], [], []>} : vector<8x127xf32>, vector<127x29xf32>, vector<8x29xf32> -> vector<8x29xf32>
    %135 = vector.extract_strided_slice %127 {offsets = [0, 426], sizes = [8, 127], strides = [1, 1]} : vector<8x1121xf32> to vector<8x127xf32>
    %cst_19 = arith.constant dense<0.000000e+00> : vector<8x29xf32>
    %136 = tpu.matmul %135, %128, %cst_19 {dimension_numbers = #tpu.dot_dimension_numbers<[1], [0], [0], [1], [0, 0, 1, 1], [], []>} : vector<8x127xf32>, vector<127x29xf32>, vector<8x29xf32> -> vector<8x29xf32>
    %137 = vector.extract_strided_slice %127 {offsets = [0, 568], sizes = [8, 127], strides = [1, 1]} : vector<8x1121xf32> to vector<8x127xf32>
    %cst_20 = arith.constant dense<0.000000e+00> : vector<8x29xf32>
    %138 = tpu.matmul %137, %128, %cst_20 {dimension_numbers = #tpu.dot_dimension_numbers<[1], [0], [0], [1], [0, 0, 1, 1], [], []>} : vector<8x127xf32>, vector<127x29xf32>, vector<8x29xf32> -> vector<8x29xf32>
    %139 = vector.extract_strided_slice %127 {offsets = [0, 710], sizes = [8, 127], strides = [1, 1]} : vector<8x1121xf32> to vector<8x127xf32>
    %cst_21 = arith.constant dense<0.000000e+00> : vector<8x29xf32>
    %140 = tpu.matmul %139, %128, %cst_21 {dimension_numbers = #tpu.dot_dimension_numbers<[1], [0], [0], [1], [0, 0, 1, 1], [], []>} : vector<8x127xf32>, vector<127x29xf32>, vector<8x29xf32> -> vector<8x29xf32>
    %141 = vector.extract_strided_slice %127 {offsets = [0, 852], sizes = [8, 127], strides = [1, 1]} : vector<8x1121xf32> to vector<8x127xf32>
    %cst_22 = arith.constant dense<0.000000e+00> : vector<8x29xf32>
    %142 = tpu.matmul %141, %128, %cst_22 {dimension_numbers = #tpu.dot_dimension_numbers<[1], [0], [0], [1], [0, 0, 1, 1], [], []>} : vector<8x127xf32>, vector<127x29xf32>, vector<8x29xf32> -> vector<8x29xf32>
    %143 = vector.extract_strided_slice %127 {offsets = [0, 994], sizes = [8, 127], strides = [1, 1]} : vector<8x1121xf32> to vector<8x127xf32>
    %cst_23 = arith.constant dense<0.000000e+00> : vector<8x29xf32>
    %144 = tpu.matmul %143, %128, %cst_23 {dimension_numbers = #tpu.dot_dimension_numbers<[1], [0], [0], [1], [0, 0, 1, 1], [], []>} : vector<8x127xf32>, vector<127x29xf32>, vector<8x29xf32> -> vector<8x29xf32>
    %145 = tpu.concatenate %130, %132, %134, %136, %138, %140, %142, %144 in 1 : vector<8x29xf32>, vector<8x29xf32>, vector<8x29xf32>, vector<8x29xf32>, vector<8x29xf32>, vector<8x29xf32>, vector<8x29xf32>, vector<8x29xf32> -> vector<8x232xf32>
    %c0_24 = arith.constant 0 : index
    %c0_25 = arith.constant 0 : index
    %146 = vector.load %arg4[%c0_24, %c0_25] : memref<16x8xf32, #tpu.memory_space<vmem>>, vector<16x8xf32>
    %cst_26 = arith.constant dense<0.000000e+00> : vector<16x232xf32>
    %147 = tpu.matmul %146, %145, %cst_26 {dimension_numbers = #tpu.dot_dimension_numbers<[1], [0], [0], [1], [0, 0, 1, 1], [], []>} : vector<16x8xf32>, vector<8x232xf32>, vector<16x232xf32> -> vector<16x232xf32>
    %148 = arith.negf %147 : vector<16x232xf32>
    %149 = math.exp %148 : vector<16x232xf32>
    %cst_27 = arith.constant 1.000000e+00 : f32
    %150 = vector.broadcast %cst_27 : f32 to vector<16x232xf32>
    %151 = arith.addf %150, %149 : vector<16x232xf32>
    %152 = arith.divf %150, %151 : vector<16x232xf32>
    %153 = arith.mulf %147, %152 : vector<16x232xf32>
    %c0_28 = arith.constant 0 : index
    %c0_29 = arith.constant 0 : index
    %154 = vector.load %arg5[%c0_28, %c0_29] : memref<16x16xf32, #tpu.memory_space<vmem>>, vector<16x16xf32>
    %155 = vector.extract_strided_slice %154 {offsets = [0, 0], sizes = [16, 1], strides = [1, 1]} : vector<16x16xf32> to vector<16x1xf32>
    %156 = vector.extract_strided_slice %153 {offsets = [0, 0], sizes = [16, 217], strides = [1, 1]} : vector<16x232xf32> to vector<16x217xf32>
    %157 = vector.broadcast %155 : vector<16x1xf32> to vector<16x217xf32>
    %158 = arith.mulf %157, %156 : vector<16x217xf32>
    %159 = vector.extract_strided_slice %154 {offsets = [0, 1], sizes = [16, 1], strides = [1, 1]} : vector<16x16xf32> to vector<16x1xf32>
    %160 = vector.extract_strided_slice %153 {offsets = [0, 1], sizes = [16, 217], strides = [1, 1]} : vector<16x232xf32> to vector<16x217xf32>
    %161 = vector.broadcast %159 : vector<16x1xf32> to vector<16x217xf32>
    %162 = arith.mulf %161, %160 : vector<16x217xf32>
    %163 = arith.addf %158, %162 : vector<16x217xf32>
    %164 = vector.extract_strided_slice %154 {offsets = [0, 2], sizes = [16, 1], strides = [1, 1]} : vector<16x16xf32> to vector<16x1xf32>
    %165 = vector.extract_strided_slice %153 {offsets = [0, 2], sizes = [16, 217], strides = [1, 1]} : vector<16x232xf32> to vector<16x217xf32>
    %166 = vector.broadcast %164 : vector<16x1xf32> to vector<16x217xf32>
    %167 = arith.mulf %166, %165 : vector<16x217xf32>
    %168 = arith.addf %163, %167 : vector<16x217xf32>
    %169 = vector.extract_strided_slice %154 {offsets = [0, 3], sizes = [16, 1], strides = [1, 1]} : vector<16x16xf32> to vector<16x1xf32>
    %170 = vector.extract_strided_slice %153 {offsets = [0, 3], sizes = [16, 217], strides = [1, 1]} : vector<16x232xf32> to vector<16x217xf32>
    %171 = vector.broadcast %169 : vector<16x1xf32> to vector<16x217xf32>
    %172 = arith.mulf %171, %170 : vector<16x217xf32>
    %173 = arith.addf %168, %172 : vector<16x217xf32>
    %174 = vector.extract_strided_slice %154 {offsets = [0, 4], sizes = [16, 1], strides = [1, 1]} : vector<16x16xf32> to vector<16x1xf32>
    %175 = vector.extract_strided_slice %153 {offsets = [0, 4], sizes = [16, 217], strides = [1, 1]} : vector<16x232xf32> to vector<16x217xf32>
    %176 = vector.broadcast %174 : vector<16x1xf32> to vector<16x217xf32>
    %177 = arith.mulf %176, %175 : vector<16x217xf32>
    %178 = arith.addf %173, %177 : vector<16x217xf32>
    %179 = vector.extract_strided_slice %154 {offsets = [0, 5], sizes = [16, 1], strides = [1, 1]} : vector<16x16xf32> to vector<16x1xf32>
    %180 = vector.extract_strided_slice %153 {offsets = [0, 5], sizes = [16, 217], strides = [1, 1]} : vector<16x232xf32> to vector<16x217xf32>
    %181 = vector.broadcast %179 : vector<16x1xf32> to vector<16x217xf32>
    %182 = arith.mulf %181, %180 : vector<16x217xf32>
    %183 = arith.addf %178, %182 : vector<16x217xf32>
    %184 = vector.extract_strided_slice %154 {offsets = [0, 6], sizes = [16, 1], strides = [1, 1]} : vector<16x16xf32> to vector<16x1xf32>
    %185 = vector.extract_strided_slice %153 {offsets = [0, 6], sizes = [16, 217], strides = [1, 1]} : vector<16x232xf32> to vector<16x217xf32>
    %186 = vector.broadcast %184 : vector<16x1xf32> to vector<16x217xf32>
    %187 = arith.mulf %186, %185 : vector<16x217xf32>
    %188 = arith.addf %183, %187 : vector<16x217xf32>
    %189 = vector.extract_strided_slice %154 {offsets = [0, 7], sizes = [16, 1], strides = [1, 1]} : vector<16x16xf32> to vector<16x1xf32>
    %190 = vector.extract_strided_slice %153 {offsets = [0, 7], sizes = [16, 217], strides = [1, 1]} : vector<16x232xf32> to vector<16x217xf32>
    %191 = vector.broadcast %189 : vector<16x1xf32> to vector<16x217xf32>
    %192 = arith.mulf %191, %190 : vector<16x217xf32>
    %193 = arith.addf %188, %192 : vector<16x217xf32>
    %194 = vector.extract_strided_slice %154 {offsets = [0, 8], sizes = [16, 1], strides = [1, 1]} : vector<16x16xf32> to vector<16x1xf32>
    %195 = vector.extract_strided_slice %153 {offsets = [0, 8], sizes = [16, 217], strides = [1, 1]} : vector<16x232xf32> to vector<16x217xf32>
    %196 = vector.broadcast %194 : vector<16x1xf32> to vector<16x217xf32>
    %197 = arith.mulf %196, %195 : vector<16x217xf32>
    %198 = arith.addf %193, %197 : vector<16x217xf32>
    %199 = vector.extract_strided_slice %154 {offsets = [0, 9], sizes = [16, 1], strides = [1, 1]} : vector<16x16xf32> to vector<16x1xf32>
    %200 = vector.extract_strided_slice %153 {offsets = [0, 9], sizes = [16, 217], strides = [1, 1]} : vector<16x232xf32> to vector<16x217xf32>
    %201 = vector.broadcast %199 : vector<16x1xf32> to vector<16x217xf32>
    %202 = arith.mulf %201, %200 : vector<16x217xf32>
    %203 = arith.addf %198, %202 : vector<16x217xf32>
    %204 = vector.extract_strided_slice %154 {offsets = [0, 10], sizes = [16, 1], strides = [1, 1]} : vector<16x16xf32> to vector<16x1xf32>
    %205 = vector.extract_strided_slice %153 {offsets = [0, 10], sizes = [16, 217], strides = [1, 1]} : vector<16x232xf32> to vector<16x217xf32>
    %206 = vector.broadcast %204 : vector<16x1xf32> to vector<16x217xf32>
    %207 = arith.mulf %206, %205 : vector<16x217xf32>
    %208 = arith.addf %203, %207 : vector<16x217xf32>
    %209 = vector.extract_strided_slice %154 {offsets = [0, 11], sizes = [16, 1], strides = [1, 1]} : vector<16x16xf32> to vector<16x1xf32>
    %210 = vector.extract_strided_slice %153 {offsets = [0, 11], sizes = [16, 217], strides = [1, 1]} : vector<16x232xf32> to vector<16x217xf32>
    %211 = vector.broadcast %209 : vector<16x1xf32> to vector<16x217xf32>
    %212 = arith.mulf %211, %210 : vector<16x217xf32>
    %213 = arith.addf %208, %212 : vector<16x217xf32>
    %214 = vector.extract_strided_slice %154 {offsets = [0, 12], sizes = [16, 1], strides = [1, 1]} : vector<16x16xf32> to vector<16x1xf32>
    %215 = vector.extract_strided_slice %153 {offsets = [0, 12], sizes = [16, 217], strides = [1, 1]} : vector<16x232xf32> to vector<16x217xf32>
    %216 = vector.broadcast %214 : vector<16x1xf32> to vector<16x217xf32>
    %217 = arith.mulf %216, %215 : vector<16x217xf32>
    %218 = arith.addf %213, %217 : vector<16x217xf32>
    %219 = vector.extract_strided_slice %154 {offsets = [0, 13], sizes = [16, 1], strides = [1, 1]} : vector<16x16xf32> to vector<16x1xf32>
    %220 = vector.extract_strided_slice %153 {offsets = [0, 13], sizes = [16, 217], strides = [1, 1]} : vector<16x232xf32> to vector<16x217xf32>
    %221 = vector.broadcast %219 : vector<16x1xf32> to vector<16x217xf32>
    %222 = arith.mulf %221, %220 : vector<16x217xf32>
    %223 = arith.addf %218, %222 : vector<16x217xf32>
    %224 = vector.extract_strided_slice %154 {offsets = [0, 14], sizes = [16, 1], strides = [1, 1]} : vector<16x16xf32> to vector<16x1xf32>
    %225 = vector.extract_strided_slice %153 {offsets = [0, 14], sizes = [16, 217], strides = [1, 1]} : vector<16x232xf32> to vector<16x217xf32>
    %226 = vector.broadcast %224 : vector<16x1xf32> to vector<16x217xf32>
    %227 = arith.mulf %226, %225 : vector<16x217xf32>
    %228 = arith.addf %223, %227 : vector<16x217xf32>
    %229 = vector.extract_strided_slice %154 {offsets = [0, 15], sizes = [16, 1], strides = [1, 1]} : vector<16x16xf32> to vector<16x1xf32>
    %230 = vector.extract_strided_slice %153 {offsets = [0, 15], sizes = [16, 217], strides = [1, 1]} : vector<16x232xf32> to vector<16x217xf32>
    %231 = vector.broadcast %229 : vector<16x1xf32> to vector<16x217xf32>
    %232 = arith.mulf %231, %230 : vector<16x217xf32>
    %233 = arith.addf %228, %232 : vector<16x217xf32>
    %c0_30 = arith.constant 0 : index
    %c0_31 = arith.constant 0 : index
    %234 = vector.load %arg6[%c0_30, %c0_31] : memref<217x56xf32, #tpu.memory_space<vmem>>, vector<217x56xf32>
    %cst_32 = arith.constant dense<0.000000e+00> : vector<16x56xf32>
    %235 = tpu.matmul %233, %234, %cst_32 {dimension_numbers = #tpu.dot_dimension_numbers<[1], [0], [0], [1], [0, 0, 1, 1], [], []>} : vector<16x217xf32>, vector<217x56xf32>, vector<16x56xf32> -> vector<16x56xf32>
    %cst_33 = arith.constant dense<0.000000e+00> : vector<16xf32>
    %236 = vector.multi_reduction <add>, %235, %cst_33 [1] : vector<16x56xf32> to vector<16xf32>
    %237 = vector.shape_cast %236 : vector<16xf32> to vector<16x1xf32>
    %cst_34 = arith.constant 5.600000e+01 : f32
    %238 = vector.broadcast %cst_34 : f32 to vector<16x1xf32>
    %239 = arith.divf %237, %238 : vector<16x1xf32>
    %240 = vector.broadcast %239 : vector<16x1xf32> to vector<16x56xf32>
    %241 = arith.subf %235, %240 : vector<16x56xf32>
    %242 = arith.mulf %241, %241 : vector<16x56xf32>
    %cst_35 = arith.constant dense<0.000000e+00> : vector<16xf32>
    %243 = vector.multi_reduction <add>, %242, %cst_35 [1] : vector<16x56xf32> to vector<16xf32>
    %244 = vector.shape_cast %243 : vector<16xf32> to vector<16x1xf32>
    %cst_36 = arith.constant 5.600000e+01 : f32
    %245 = vector.broadcast %cst_36 : f32 to vector<16x1xf32>
    %246 = arith.divf %244, %245 : vector<16x1xf32>
    %247 = vector.broadcast %239 : vector<16x1xf32> to vector<16x56xf32>
    %248 = arith.subf %235, %247 : vector<16x56xf32>
    %cst_37 = arith.constant 9.99999974E-6 : f32
    %249 = vector.broadcast %cst_37 : f32 to vector<16x1xf32>
    %250 = arith.addf %246, %249 : vector<16x1xf32>
    %251 = math.rsqrt %250 : vector<16x1xf32>
    %252 = vector.broadcast %251 : vector<16x1xf32> to vector<16x56xf32>
    %253 = arith.mulf %248, %252 : vector<16x56xf32>
    %c8 = arith.constant 8 : index
    %c0_38 = arith.constant 0 : index
    %254 = vector.load %arg24[%c8, %c0_38] : memref<136x1xf32, #tpu.memory_space<vmem>>, vector<16x1xf32>
    %255 = vector.broadcast %254 : vector<16x1xf32> to vector<16x56xf32>
    %256 = arith.mulf %253, %255 : vector<16x56xf32>
    %c8_39 = arith.constant 8 : index
    %c0_40 = arith.constant 0 : index
    %257 = vector.load %arg25[%c8_39, %c0_40] : memref<136x1xf32, #tpu.memory_space<vmem>>, vector<16x1xf32>
    %258 = vector.broadcast %257 : vector<16x1xf32> to vector<16x56xf32>
    %259 = arith.addf %256, %258 : vector<16x56xf32>
    %260 = arith.negf %259 : vector<16x56xf32>
    %261 = math.exp %260 : vector<16x56xf32>
    %cst_41 = arith.constant 1.000000e+00 : f32
    %262 = vector.broadcast %cst_41 : f32 to vector<16x56xf32>
    %263 = arith.addf %262, %261 : vector<16x56xf32>
    %264 = arith.divf %262, %263 : vector<16x56xf32>
    %265 = arith.mulf %259, %264 : vector<16x56xf32>
    %c0_42 = arith.constant 0 : index
    %c0_43 = arith.constant 0 : index
    %266 = vector.load %arg7[%c0_42, %c0_43] : memref<16x16xf32, #tpu.memory_space<vmem>>, vector<16x16xf32>
    %cst_44 = arith.constant dense<0.000000e+00> : vector<16x56xf32>
    %267 = tpu.matmul %266, %265, %cst_44 {dimension_numbers = #tpu.dot_dimension_numbers<[1], [0], [0], [1], [0, 0, 1, 1], [], []>} : vector<16x16xf32>, vector<16x56xf32>, vector<16x56xf32> -> vector<16x56xf32>
    %cst_45 = arith.constant dense<0.000000e+00> : vector<16xf32>
    %268 = vector.multi_reduction <add>, %267, %cst_45 [1] : vector<16x56xf32> to vector<16xf32>
    %269 = vector.shape_cast %268 : vector<16xf32> to vector<16x1xf32>
    %cst_46 = arith.constant 5.600000e+01 : f32
    %270 = vector.broadcast %cst_46 : f32 to vector<16x1xf32>
    %271 = arith.divf %269, %270 : vector<16x1xf32>
    %272 = vector.broadcast %271 : vector<16x1xf32> to vector<16x56xf32>
    %273 = arith.subf %267, %272 : vector<16x56xf32>
    %274 = arith.mulf %273, %273 : vector<16x56xf32>
    %cst_47 = arith.constant dense<0.000000e+00> : vector<16xf32>
    %275 = vector.multi_reduction <add>, %274, %cst_47 [1] : vector<16x56xf32> to vector<16xf32>
    %276 = vector.shape_cast %275 : vector<16xf32> to vector<16x1xf32>
    %cst_48 = arith.constant 5.600000e+01 : f32
    %277 = vector.broadcast %cst_48 : f32 to vector<16x1xf32>
    %278 = arith.divf %276, %277 : vector<16x1xf32>
    %279 = vector.broadcast %271 : vector<16x1xf32> to vector<16x56xf32>
    %280 = arith.subf %267, %279 : vector<16x56xf32>
    %cst_49 = arith.constant 9.99999974E-6 : f32
    %281 = vector.broadcast %cst_49 : f32 to vector<16x1xf32>
    %282 = arith.addf %278, %281 : vector<16x1xf32>
    %283 = math.rsqrt %282 : vector<16x1xf32>
    %284 = vector.broadcast %283 : vector<16x1xf32> to vector<16x56xf32>
    %285 = arith.mulf %280, %284 : vector<16x56xf32>
    %c24 = arith.constant 24 : index
    %c0_50 = arith.constant 0 : index
    %286 = vector.load %arg24[%c24, %c0_50] : memref<136x1xf32, #tpu.memory_space<vmem>>, vector<16x1xf32>
    %287 = vector.broadcast %286 : vector<16x1xf32> to vector<16x56xf32>
    %288 = arith.mulf %285, %287 : vector<16x56xf32>
    %c24_51 = arith.constant 24 : index
    %c0_52 = arith.constant 0 : index
    %289 = vector.load %arg25[%c24_51, %c0_52] : memref<136x1xf32, #tpu.memory_space<vmem>>, vector<16x1xf32>
    %290 = vector.broadcast %289 : vector<16x1xf32> to vector<16x56xf32>
    %291 = arith.addf %288, %290 : vector<16x56xf32>
    %292 = vector.extract_strided_slice %291 {offsets = [0, 0], sizes = [16, 28], strides = [1, 1]} : vector<16x56xf32> to vector<16x28xf32>
    %cst_53 = arith.constant dense<0.000000e+00> : vector<16xf32>
    %293 = vector.multi_reduction <add>, %292, %cst_53 [1] : vector<16x28xf32> to vector<16xf32>
    %294 = vector.shape_cast %293 : vector<16xf32> to vector<16x1xf32>
    %cst_54 = arith.constant 2.800000e+01 : f32
    %295 = vector.broadcast %cst_54 : f32 to vector<16x1xf32>
    %296 = arith.divf %294, %295 : vector<16x1xf32>
    %297 = vector.extract_strided_slice %291 {offsets = [0, 28], sizes = [16, 28], strides = [1, 1]} : vector<16x56xf32> to vector<16x28xf32>
    %cst_55 = arith.constant dense<0.000000e+00> : vector<16xf32>
    %298 = vector.multi_reduction <add>, %297, %cst_55 [1] : vector<16x28xf32> to vector<16xf32>
    %299 = vector.shape_cast %298 : vector<16xf32> to vector<16x1xf32>
    %cst_56 = arith.constant 2.800000e+01 : f32
    %300 = vector.broadcast %cst_56 : f32 to vector<16x1xf32>
    %301 = arith.divf %299, %300 : vector<16x1xf32>
    %302 = vector.extract_strided_slice %291 {offsets = [0, 0], sizes = [16, 28], strides = [1, 1]} : vector<16x56xf32> to vector<16x28xf32>
    %cst_57 = arith.constant dense<0xFF800000> : vector<16xf32>
    %303 = vector.multi_reduction <maximumf>, %302, %cst_57 [1] : vector<16x28xf32> to vector<16xf32>
    %304 = vector.shape_cast %303 : vector<16xf32> to vector<16x1xf32>
    %305 = vector.extract_strided_slice %291 {offsets = [0, 28], sizes = [16, 28], strides = [1, 1]} : vector<16x56xf32> to vector<16x28xf32>
    %cst_58 = arith.constant dense<0xFF800000> : vector<16xf32>
    %306 = vector.multi_reduction <maximumf>, %305, %cst_58 [1] : vector<16x28xf32> to vector<16xf32>
    %307 = vector.shape_cast %306 : vector<16xf32> to vector<16x1xf32>
    %308 = tpu.concatenate %296, %301, %304, %307 in 1 : vector<16x1xf32>, vector<16x1xf32>, vector<16x1xf32>, vector<16x1xf32> -> vector<16x4xf32>
    %c0_59 = arith.constant 0 : index
    %c0_60 = arith.constant 0 : index
    %309 = vector.load %arg9[%c0_59, %c0_60] : memref<16x4xf32, #tpu.memory_space<vmem>>, vector<16x4xf32>
    %c0_61 = arith.constant 0 : index
    %c0_62 = arith.constant 0 : index
    %310 = vector.load %arg8[%c0_61, %c0_62] : memref<4x16xf32, #tpu.memory_space<vmem>>, vector<4x16xf32>
    %cst_63 = arith.constant dense<0.000000e+00> : vector<4x4xf32>
    %311 = tpu.matmul %310, %308, %cst_63 {dimension_numbers = #tpu.dot_dimension_numbers<[1], [0], [0], [1], [0, 0, 1, 1], [], []>} : vector<4x16xf32>, vector<16x4xf32>, vector<4x4xf32> -> vector<4x4xf32>
    %cst_64 = arith.constant 0.000000e+00 : f32
    %312 = vector.broadcast %cst_64 : f32 to vector<4x4xf32>
    %313 = arith.maximumf %311, %312 : vector<4x4xf32>
    %cst_65 = arith.constant dense<0.000000e+00> : vector<16x4xf32>
    %314 = tpu.matmul %309, %313, %cst_65 {dimension_numbers = #tpu.dot_dimension_numbers<[1], [0], [0], [1], [0, 0, 1, 1], [], []>} : vector<16x4xf32>, vector<4x4xf32>, vector<16x4xf32> -> vector<16x4xf32>
    %315 = vector.extract_strided_slice %314 {offsets = [0, 0], sizes = [16, 2], strides = [1, 1]} : vector<16x4xf32> to vector<16x2xf32>
    %316 = vector.extract_strided_slice %314 {offsets = [0, 2], sizes = [16, 2], strides = [1, 1]} : vector<16x4xf32> to vector<16x2xf32>
    %317 = arith.addf %315, %316 : vector<16x2xf32>
    %318 = arith.negf %317 : vector<16x2xf32>
    %319 = math.exp %318 : vector<16x2xf32>
    %cst_66 = arith.constant 1.000000e+00 : f32
    %320 = vector.broadcast %cst_66 : f32 to vector<16x2xf32>
    %321 = arith.addf %320, %319 : vector<16x2xf32>
    %322 = arith.divf %320, %321 : vector<16x2xf32>
    %c0_67 = arith.constant 0 : index
    %c0_68 = arith.constant 0 : index
    %323 = vector.load %arg10[%c0_67, %c0_68] : memref<2x56xf32, #tpu.memory_space<vmem>>, vector<2x56xf32>
    %cst_69 = arith.constant dense<0.000000e+00> : vector<16x56xf32>
    %324 = tpu.matmul %322, %323, %cst_69 {dimension_numbers = #tpu.dot_dimension_numbers<[1], [0], [0], [1], [0, 0, 1, 1], [], []>} : vector<16x2xf32>, vector<2x56xf32>, vector<16x56xf32> -> vector<16x56xf32>
    %325 = arith.mulf %291, %324 : vector<16x56xf32>
    %cst_70 = arith.constant dense<0.000000e+00> : vector<56xf32>
    %326 = vector.multi_reduction <add>, %325, %cst_70 [0] : vector<16x56xf32> to vector<56xf32>
    %327 = vector.shape_cast %326 : vector<56xf32> to vector<1x56xf32>
    %cst_71 = arith.constant 1.600000e+01 : f32
    %328 = vector.broadcast %cst_71 : f32 to vector<1x56xf32>
    %329 = arith.divf %327, %328 : vector<1x56xf32>
    %cst_72 = arith.constant dense<0xFF800000> : vector<56xf32>
    %330 = vector.multi_reduction <maximumf>, %325, %cst_72 [0] : vector<16x56xf32> to vector<56xf32>
    %331 = vector.shape_cast %330 : vector<56xf32> to vector<1x56xf32>
    %332 = tpu.concatenate %329, %331 in 0 : vector<1x56xf32>, vector<1x56xf32> -> vector<2x56xf32>
    %c0_73 = arith.constant 0 : index
    %c0_74 = arith.constant 0 : index
    %333 = vector.load %arg12[%c0_73, %c0_74] : memref<56x96xf32, #tpu.memory_space<vmem>>, vector<56x96xf32>
    %cst_75 = arith.constant dense<0.000000e+00> : vector<2x96xf32>
    %334 = tpu.matmul %332, %333, %cst_75 {dimension_numbers = #tpu.dot_dimension_numbers<[1], [0], [0], [1], [0, 0, 1, 1], [], []>} : vector<2x56xf32>, vector<56x96xf32>, vector<2x96xf32> -> vector<2x96xf32>
    %c0_76 = arith.constant 0 : index
    %335 = memref.load %arg11[%c0_76] : memref<18xf32, #tpu.memory_space<smem>>
    %336 = vector.extract_strided_slice %334 {offsets = [0, 7], sizes = [1, 71], strides = [1, 1]} : vector<2x96xf32> to vector<1x71xf32>
    %337 = vector.broadcast %335 : f32 to vector<1x71xf32>
    %338 = arith.mulf %337, %336 : vector<1x71xf32>
    %c1 = arith.constant 1 : index
    %339 = memref.load %arg11[%c1] : memref<18xf32, #tpu.memory_space<smem>>
    %340 = vector.extract_strided_slice %334 {offsets = [0, 8], sizes = [1, 71], strides = [1, 1]} : vector<2x96xf32> to vector<1x71xf32>
    %341 = vector.broadcast %339 : f32 to vector<1x71xf32>
    %342 = arith.mulf %341, %340 : vector<1x71xf32>
    %343 = arith.addf %338, %342 : vector<1x71xf32>
    %c2 = arith.constant 2 : index
    %344 = memref.load %arg11[%c2] : memref<18xf32, #tpu.memory_space<smem>>
    %345 = vector.extract_strided_slice %334 {offsets = [0, 9], sizes = [1, 71], strides = [1, 1]} : vector<2x96xf32> to vector<1x71xf32>
    %346 = vector.broadcast %344 : f32 to vector<1x71xf32>
    %347 = arith.mulf %346, %345 : vector<1x71xf32>
    %348 = arith.addf %343, %347 : vector<1x71xf32>
    %c3 = arith.constant 3 : index
    %349 = memref.load %arg11[%c3] : memref<18xf32, #tpu.memory_space<smem>>
    %350 = vector.extract_strided_slice %334 {offsets = [0, 15], sizes = [1, 71], strides = [1, 1]} : vector<2x96xf32> to vector<1x71xf32>
    %351 = vector.broadcast %349 : f32 to vector<1x71xf32>
    %352 = arith.mulf %351, %350 : vector<1x71xf32>
    %353 = arith.addf %348, %352 : vector<1x71xf32>
    %c4 = arith.constant 4 : index
    %354 = memref.load %arg11[%c4] : memref<18xf32, #tpu.memory_space<smem>>
    %355 = vector.extract_strided_slice %334 {offsets = [0, 16], sizes = [1, 71], strides = [1, 1]} : vector<2x96xf32> to vector<1x71xf32>
    %356 = vector.broadcast %354 : f32 to vector<1x71xf32>
    %357 = arith.mulf %356, %355 : vector<1x71xf32>
    %358 = arith.addf %353, %357 : vector<1x71xf32>
    %c5 = arith.constant 5 : index
    %359 = memref.load %arg11[%c5] : memref<18xf32, #tpu.memory_space<smem>>
    %360 = vector.extract_strided_slice %334 {offsets = [0, 17], sizes = [1, 71], strides = [1, 1]} : vector<2x96xf32> to vector<1x71xf32>
    %361 = vector.broadcast %359 : f32 to vector<1x71xf32>
    %362 = arith.mulf %361, %360 : vector<1x71xf32>
    %363 = arith.addf %358, %362 : vector<1x71xf32>
    %c6 = arith.constant 6 : index
    %364 = memref.load %arg11[%c6] : memref<18xf32, #tpu.memory_space<smem>>
    %365 = vector.extract_strided_slice %334 {offsets = [0, 23], sizes = [1, 71], strides = [1, 1]} : vector<2x96xf32> to vector<1x71xf32>
    %366 = vector.broadcast %364 : f32 to vector<1x71xf32>
    %367 = arith.mulf %366, %365 : vector<1x71xf32>
    %368 = arith.addf %363, %367 : vector<1x71xf32>
    %c7 = arith.constant 7 : index
    %369 = memref.load %arg11[%c7] : memref<18xf32, #tpu.memory_space<smem>>
    %370 = vector.extract_strided_slice %334 {offsets = [0, 24], sizes = [1, 71], strides = [1, 1]} : vector<2x96xf32> to vector<1x71xf32>
    %371 = vector.broadcast %369 : f32 to vector<1x71xf32>
    %372 = arith.mulf %371, %370 : vector<1x71xf32>
    %373 = arith.addf %368, %372 : vector<1x71xf32>
    %c8_77 = arith.constant 8 : index
    %374 = memref.load %arg11[%c8_77] : memref<18xf32, #tpu.memory_space<smem>>
    %375 = vector.extract_strided_slice %334 {offsets = [0, 25], sizes = [1, 71], strides = [1, 1]} : vector<2x96xf32> to vector<1x71xf32>
    %376 = vector.broadcast %374 : f32 to vector<1x71xf32>
    %377 = arith.mulf %376, %375 : vector<1x71xf32>
    %378 = arith.addf %373, %377 : vector<1x71xf32>
    %c9 = arith.constant 9 : index
    %379 = memref.load %arg11[%c9] : memref<18xf32, #tpu.memory_space<smem>>
    %380 = vector.extract_strided_slice %334 {offsets = [1, 7], sizes = [1, 71], strides = [1, 1]} : vector<2x96xf32> to vector<1x71xf32>
    %381 = vector.broadcast %379 : f32 to vector<1x71xf32>
    %382 = arith.mulf %381, %380 : vector<1x71xf32>
    %383 = arith.addf %378, %382 : vector<1x71xf32>
    %c10 = arith.constant 10 : index
    %384 = memref.load %arg11[%c10] : memref<18xf32, #tpu.memory_space<smem>>
    %385 = vector.extract_strided_slice %334 {offsets = [1, 8], sizes = [1, 71], strides = [1, 1]} : vector<2x96xf32> to vector<1x71xf32>
    %386 = vector.broadcast %384 : f32 to vector<1x71xf32>
    %387 = arith.mulf %386, %385 : vector<1x71xf32>
    %388 = arith.addf %383, %387 : vector<1x71xf32>
    %c11 = arith.constant 11 : index
    %389 = memref.load %arg11[%c11] : memref<18xf32, #tpu.memory_space<smem>>
    %390 = vector.extract_strided_slice %334 {offsets = [1, 9], sizes = [1, 71], strides = [1, 1]} : vector<2x96xf32> to vector<1x71xf32>
    %391 = vector.broadcast %389 : f32 to vector<1x71xf32>
    %392 = arith.mulf %391, %390 : vector<1x71xf32>
    %393 = arith.addf %388, %392 : vector<1x71xf32>
    %c12 = arith.constant 12 : index
    %394 = memref.load %arg11[%c12] : memref<18xf32, #tpu.memory_space<smem>>
    %395 = vector.extract_strided_slice %334 {offsets = [1, 15], sizes = [1, 71], strides = [1, 1]} : vector<2x96xf32> to vector<1x71xf32>
    %396 = vector.broadcast %394 : f32 to vector<1x71xf32>
    %397 = arith.mulf %396, %395 : vector<1x71xf32>
    %398 = arith.addf %393, %397 : vector<1x71xf32>
    %c13 = arith.constant 13 : index
    %399 = memref.load %arg11[%c13] : memref<18xf32, #tpu.memory_space<smem>>
    %400 = vector.extract_strided_slice %334 {offsets = [1, 16], sizes = [1, 71], strides = [1, 1]} : vector<2x96xf32> to vector<1x71xf32>
    %401 = vector.broadcast %399 : f32 to vector<1x71xf32>
    %402 = arith.mulf %401, %400 : vector<1x71xf32>
    %403 = arith.addf %398, %402 : vector<1x71xf32>
    %c14 = arith.constant 14 : index
    %404 = memref.load %arg11[%c14] : memref<18xf32, #tpu.memory_space<smem>>
    %405 = vector.extract_strided_slice %334 {offsets = [1, 17], sizes = [1, 71], strides = [1, 1]} : vector<2x96xf32> to vector<1x71xf32>
    %406 = vector.broadcast %404 : f32 to vector<1x71xf32>
    %407 = arith.mulf %406, %405 : vector<1x71xf32>
    %408 = arith.addf %403, %407 : vector<1x71xf32>
    %c15 = arith.constant 15 : index
    %409 = memref.load %arg11[%c15] : memref<18xf32, #tpu.memory_space<smem>>
    %410 = vector.extract_strided_slice %334 {offsets = [1, 23], sizes = [1, 71], strides = [1, 1]} : vector<2x96xf32> to vector<1x71xf32>
    %411 = vector.broadcast %409 : f32 to vector<1x71xf32>
    %412 = arith.mulf %411, %410 : vector<1x71xf32>
    %413 = arith.addf %408, %412 : vector<1x71xf32>
    %c16 = arith.constant 16 : index
    %414 = memref.load %arg11[%c16] : memref<18xf32, #tpu.memory_space<smem>>
    %415 = vector.extract_strided_slice %334 {offsets = [1, 24], sizes = [1, 71], strides = [1, 1]} : vector<2x96xf32> to vector<1x71xf32>
    %416 = vector.broadcast %414 : f32 to vector<1x71xf32>
    %417 = arith.mulf %416, %415 : vector<1x71xf32>
    %418 = arith.addf %413, %417 : vector<1x71xf32>
    %c17 = arith.constant 17 : index
    %419 = memref.load %arg11[%c17] : memref<18xf32, #tpu.memory_space<smem>>
    %420 = vector.extract_strided_slice %334 {offsets = [1, 25], sizes = [1, 71], strides = [1, 1]} : vector<2x96xf32> to vector<1x71xf32>
    %421 = vector.broadcast %419 : f32 to vector<1x71xf32>
    %422 = arith.mulf %421, %420 : vector<1x71xf32>
    %423 = arith.addf %418, %422 : vector<1x71xf32>
    %424 = arith.negf %423 : vector<1x71xf32>
    %425 = math.exp %424 : vector<1x71xf32>
    %cst_78 = arith.constant 1.000000e+00 : f32
    %426 = vector.broadcast %cst_78 : f32 to vector<1x71xf32>
    %427 = arith.addf %426, %425 : vector<1x71xf32>
    %428 = arith.divf %426, %427 : vector<1x71xf32>
    %c0_79 = arith.constant 0 : index
    %c0_80 = arith.constant 0 : index
    %429 = vector.load %arg13[%c0_79, %c0_80] : memref<71x56xf32, #tpu.memory_space<vmem>>, vector<71x56xf32>
    %cst_81 = arith.constant dense<0.000000e+00> : vector<1x56xf32>
    %430 = tpu.matmul %428, %429, %cst_81 {dimension_numbers = #tpu.dot_dimension_numbers<[1], [0], [0], [1], [0, 0, 1, 1], [], []>} : vector<1x71xf32>, vector<71x56xf32>, vector<1x56xf32> -> vector<1x56xf32>
    %431 = vector.broadcast %430 : vector<1x56xf32> to vector<16x56xf32>
    %432 = arith.mulf %325, %431 : vector<16x56xf32>
    %c0_82 = arith.constant 0 : index
    %c0_83 = arith.constant 0 : index
    %433 = vector.load %arg14[%c0_82, %c0_83] : memref<32x16xf32, #tpu.memory_space<vmem>>, vector<32x16xf32>
    %cst_84 = arith.constant dense<0.000000e+00> : vector<32x56xf32>
    %434 = tpu.matmul %433, %432, %cst_84 {dimension_numbers = #tpu.dot_dimension_numbers<[1], [0], [0], [1], [0, 0, 1, 1], [], []>} : vector<32x16xf32>, vector<16x56xf32>, vector<32x56xf32> -> vector<32x56xf32>
    %435 = arith.negf %434 : vector<32x56xf32>
    %436 = math.exp %435 : vector<32x56xf32>
    %cst_85 = arith.constant 1.000000e+00 : f32
    %437 = vector.broadcast %cst_85 : f32 to vector<32x56xf32>
    %438 = arith.addf %437, %436 : vector<32x56xf32>
    %439 = arith.divf %437, %438 : vector<32x56xf32>
    %440 = arith.mulf %434, %439 : vector<32x56xf32>
    %c0_86 = arith.constant 0 : index
    %c0_87 = arith.constant 0 : index
    %441 = vector.load %arg15[%c0_86, %c0_87] : memref<32x3xf32, #tpu.memory_space<vmem>>, vector<32x3xf32>
    %442 = vector.extract_strided_slice %441 {offsets = [0, 0], sizes = [32, 1], strides = [1, 1]} : vector<32x3xf32> to vector<32x1xf32>
    %443 = vector.extract_strided_slice %440 {offsets = [0, 0], sizes = [32, 42], strides = [1, 1]} : vector<32x56xf32> to vector<32x42xf32>
    %444 = vector.broadcast %442 : vector<32x1xf32> to vector<32x42xf32>
    %445 = arith.mulf %444, %443 : vector<32x42xf32>
    %446 = vector.extract_strided_slice %441 {offsets = [0, 1], sizes = [32, 1], strides = [1, 1]} : vector<32x3xf32> to vector<32x1xf32>
    %447 = vector.extract_strided_slice %440 {offsets = [0, 7], sizes = [32, 42], strides = [1, 1]} : vector<32x56xf32> to vector<32x42xf32>
    %448 = vector.broadcast %446 : vector<32x1xf32> to vector<32x42xf32>
    %449 = arith.mulf %448, %447 : vector<32x42xf32>
    %450 = arith.addf %445, %449 : vector<32x42xf32>
    %451 = vector.extract_strided_slice %441 {offsets = [0, 2], sizes = [32, 1], strides = [1, 1]} : vector<32x3xf32> to vector<32x1xf32>
    %452 = vector.extract_strided_slice %440 {offsets = [0, 14], sizes = [32, 42], strides = [1, 1]} : vector<32x56xf32> to vector<32x42xf32>
    %453 = vector.broadcast %451 : vector<32x1xf32> to vector<32x42xf32>
    %454 = arith.mulf %453, %452 : vector<32x42xf32>
    %455 = arith.addf %450, %454 : vector<32x42xf32>
    %c0_88 = arith.constant 0 : index
    %c0_89 = arith.constant 0 : index
    %456 = vector.load %arg16[%c0_88, %c0_89] : memref<42x28xf32, #tpu.memory_space<vmem>>, vector<42x28xf32>
    %cst_90 = arith.constant dense<0.000000e+00> : vector<32x28xf32>
    %457 = tpu.matmul %455, %456, %cst_90 {dimension_numbers = #tpu.dot_dimension_numbers<[1], [0], [0], [1], [0, 0, 1, 1], [], []>} : vector<32x42xf32>, vector<42x28xf32>, vector<32x28xf32> -> vector<32x28xf32>
    %cst_91 = arith.constant dense<0.000000e+00> : vector<32xf32>
    %458 = vector.multi_reduction <add>, %457, %cst_91 [1] : vector<32x28xf32> to vector<32xf32>
    %459 = vector.shape_cast %458 : vector<32xf32> to vector<32x1xf32>
    %cst_92 = arith.constant 2.800000e+01 : f32
    %460 = vector.broadcast %cst_92 : f32 to vector<32x1xf32>
    %461 = arith.divf %459, %460 : vector<32x1xf32>
    %462 = vector.broadcast %461 : vector<32x1xf32> to vector<32x28xf32>
    %463 = arith.subf %457, %462 : vector<32x28xf32>
    %464 = arith.mulf %463, %463 : vector<32x28xf32>
    %cst_93 = arith.constant dense<0.000000e+00> : vector<32xf32>
    %465 = vector.multi_reduction <add>, %464, %cst_93 [1] : vector<32x28xf32> to vector<32xf32>
    %466 = vector.shape_cast %465 : vector<32xf32> to vector<32x1xf32>
    %cst_94 = arith.constant 2.800000e+01 : f32
    %467 = vector.broadcast %cst_94 : f32 to vector<32x1xf32>
    %468 = arith.divf %466, %467 : vector<32x1xf32>
    %469 = vector.broadcast %461 : vector<32x1xf32> to vector<32x28xf32>
    %470 = arith.subf %457, %469 : vector<32x28xf32>
    %cst_95 = arith.constant 9.99999974E-6 : f32
    %471 = vector.broadcast %cst_95 : f32 to vector<32x1xf32>
    %472 = arith.addf %468, %471 : vector<32x1xf32>
    %473 = math.rsqrt %472 : vector<32x1xf32>
    %474 = vector.broadcast %473 : vector<32x1xf32> to vector<32x28xf32>
    %475 = arith.mulf %470, %474 : vector<32x28xf32>
    %c40 = arith.constant 40 : index
    %c0_96 = arith.constant 0 : index
    %476 = vector.load %arg24[%c40, %c0_96] : memref<136x1xf32, #tpu.memory_space<vmem>>, vector<32x1xf32>
    %477 = vector.broadcast %476 : vector<32x1xf32> to vector<32x28xf32>
    %478 = arith.mulf %475, %477 : vector<32x28xf32>
    %c40_97 = arith.constant 40 : index
    %c0_98 = arith.constant 0 : index
    %479 = vector.load %arg25[%c40_97, %c0_98] : memref<136x1xf32, #tpu.memory_space<vmem>>, vector<32x1xf32>
    %480 = vector.broadcast %479 : vector<32x1xf32> to vector<32x28xf32>
    %481 = arith.addf %478, %480 : vector<32x28xf32>
    %482 = arith.negf %481 : vector<32x28xf32>
    %483 = math.exp %482 : vector<32x28xf32>
    %cst_99 = arith.constant 1.000000e+00 : f32
    %484 = vector.broadcast %cst_99 : f32 to vector<32x28xf32>
    %485 = arith.addf %484, %483 : vector<32x28xf32>
    %486 = arith.divf %484, %485 : vector<32x28xf32>
    %487 = arith.mulf %481, %486 : vector<32x28xf32>
    %c0_100 = arith.constant 0 : index
    %c0_101 = arith.constant 0 : index
    %488 = vector.load %arg17[%c0_100, %c0_101] : memref<16x32xf32, #tpu.memory_space<vmem>>, vector<16x32xf32>
    %cst_102 = arith.constant dense<0.000000e+00> : vector<16x28xf32>
    %489 = tpu.matmul %488, %487, %cst_102 {dimension_numbers = #tpu.dot_dimension_numbers<[1], [0], [0], [1], [0, 0, 1, 1], [], []>} : vector<16x32xf32>, vector<32x28xf32>, vector<16x28xf32> -> vector<16x28xf32>
    %cst_103 = arith.constant dense<0.000000e+00> : vector<16xf32>
    %490 = vector.multi_reduction <add>, %489, %cst_103 [1] : vector<16x28xf32> to vector<16xf32>
    %491 = vector.shape_cast %490 : vector<16xf32> to vector<16x1xf32>
    %cst_104 = arith.constant 2.800000e+01 : f32
    %492 = vector.broadcast %cst_104 : f32 to vector<16x1xf32>
    %493 = arith.divf %491, %492 : vector<16x1xf32>
    %494 = vector.broadcast %493 : vector<16x1xf32> to vector<16x28xf32>
    %495 = arith.subf %489, %494 : vector<16x28xf32>
    %496 = arith.mulf %495, %495 : vector<16x28xf32>
    %cst_105 = arith.constant dense<0.000000e+00> : vector<16xf32>
    %497 = vector.multi_reduction <add>, %496, %cst_105 [1] : vector<16x28xf32> to vector<16xf32>
    %498 = vector.shape_cast %497 : vector<16xf32> to vector<16x1xf32>
    %cst_106 = arith.constant 2.800000e+01 : f32
    %499 = vector.broadcast %cst_106 : f32 to vector<16x1xf32>
    %500 = arith.divf %498, %499 : vector<16x1xf32>
    %501 = vector.broadcast %493 : vector<16x1xf32> to vector<16x28xf32>
    %502 = arith.subf %489, %501 : vector<16x28xf32>
    %cst_107 = arith.constant 9.99999974E-6 : f32
    %503 = vector.broadcast %cst_107 : f32 to vector<16x1xf32>
    %504 = arith.addf %500, %503 : vector<16x1xf32>
    %505 = math.rsqrt %504 : vector<16x1xf32>
    %506 = vector.broadcast %505 : vector<16x1xf32> to vector<16x28xf32>
    %507 = arith.mulf %502, %506 : vector<16x28xf32>
    %c72 = arith.constant 72 : index
    %c0_108 = arith.constant 0 : index
    %508 = vector.load %arg24[%c72, %c0_108] : memref<136x1xf32, #tpu.memory_space<vmem>>, vector<16x1xf32>
    %509 = vector.broadcast %508 : vector<16x1xf32> to vector<16x28xf32>
    %510 = arith.mulf %507, %509 : vector<16x28xf32>
    %c72_109 = arith.constant 72 : index
    %c0_110 = arith.constant 0 : index
    %511 = vector.load %arg25[%c72_109, %c0_110] : memref<136x1xf32, #tpu.memory_space<vmem>>, vector<16x1xf32>
    %512 = vector.broadcast %511 : vector<16x1xf32> to vector<16x28xf32>
    %513 = arith.addf %510, %512 : vector<16x28xf32>
    %c0_111 = arith.constant 0 : index
    %c0_112 = arith.constant 0 : index
    %514 = vector.load %arg18[%c0_111, %c0_112] : memref<32x16xf32, #tpu.memory_space<vmem>>, vector<32x16xf32>
    %cst_113 = arith.constant dense<0.000000e+00> : vector<32x28xf32>
    %515 = tpu.matmul %514, %513, %cst_113 {dimension_numbers = #tpu.dot_dimension_numbers<[1], [0], [0], [1], [0, 0, 1, 1], [], []>} : vector<32x16xf32>, vector<16x28xf32>, vector<32x28xf32> -> vector<32x28xf32>
    %516 = arith.negf %515 : vector<32x28xf32>
    %517 = math.exp %516 : vector<32x28xf32>
    %cst_114 = arith.constant 1.000000e+00 : f32
    %518 = vector.broadcast %cst_114 : f32 to vector<32x28xf32>
    %519 = arith.addf %518, %517 : vector<32x28xf32>
    %520 = arith.divf %518, %519 : vector<32x28xf32>
    %521 = arith.mulf %515, %520 : vector<32x28xf32>
    %c0_115 = arith.constant 0 : index
    %c0_116 = arith.constant 0 : index
    %522 = vector.load %arg19[%c0_115, %c0_116] : memref<28x56xf32, #tpu.memory_space<vmem>>, vector<28x56xf32>
    %cst_117 = arith.constant dense<0.000000e+00> : vector<32x56xf32>
    %523 = tpu.matmul %521, %522, %cst_117 {dimension_numbers = #tpu.dot_dimension_numbers<[1], [0], [0], [1], [0, 0, 1, 1], [], []>} : vector<32x28xf32>, vector<28x56xf32>, vector<32x56xf32> -> vector<32x56xf32>
    %c0_118 = arith.constant 0 : index
    %c0_119 = arith.constant 0 : index
    %524 = vector.load %arg20[%c0_118, %c0_119] : memref<32x8xf32, #tpu.memory_space<vmem>>, vector<32x8xf32>
    %525 = vector.extract_strided_slice %524 {offsets = [0, 0], sizes = [32, 1], strides = [1, 1]} : vector<32x8xf32> to vector<32x1xf32>
    %526 = vector.extract_strided_slice %523 {offsets = [0, 0], sizes = [32, 49], strides = [1, 1]} : vector<32x56xf32> to vector<32x49xf32>
    %527 = vector.broadcast %525 : vector<32x1xf32> to vector<32x49xf32>
    %528 = arith.mulf %527, %526 : vector<32x49xf32>
    %529 = vector.extract_strided_slice %524 {offsets = [0, 1], sizes = [32, 1], strides = [1, 1]} : vector<32x8xf32> to vector<32x1xf32>
    %530 = vector.extract_strided_slice %523 {offsets = [0, 1], sizes = [32, 49], strides = [1, 1]} : vector<32x56xf32> to vector<32x49xf32>
    %531 = vector.broadcast %529 : vector<32x1xf32> to vector<32x49xf32>
    %532 = arith.mulf %531, %530 : vector<32x49xf32>
    %533 = arith.addf %528, %532 : vector<32x49xf32>
    %534 = vector.extract_strided_slice %524 {offsets = [0, 2], sizes = [32, 1], strides = [1, 1]} : vector<32x8xf32> to vector<32x1xf32>
    %535 = vector.extract_strided_slice %523 {offsets = [0, 2], sizes = [32, 49], strides = [1, 1]} : vector<32x56xf32> to vector<32x49xf32>
    %536 = vector.broadcast %534 : vector<32x1xf32> to vector<32x49xf32>
    %537 = arith.mulf %536, %535 : vector<32x49xf32>
    %538 = arith.addf %533, %537 : vector<32x49xf32>
    %539 = vector.extract_strided_slice %524 {offsets = [0, 3], sizes = [32, 1], strides = [1, 1]} : vector<32x8xf32> to vector<32x1xf32>
    %540 = vector.extract_strided_slice %523 {offsets = [0, 3], sizes = [32, 49], strides = [1, 1]} : vector<32x56xf32> to vector<32x49xf32>
    %541 = vector.broadcast %539 : vector<32x1xf32> to vector<32x49xf32>
    %542 = arith.mulf %541, %540 : vector<32x49xf32>
    %543 = arith.addf %538, %542 : vector<32x49xf32>
    %544 = vector.extract_strided_slice %524 {offsets = [0, 4], sizes = [32, 1], strides = [1, 1]} : vector<32x8xf32> to vector<32x1xf32>
    %545 = vector.extract_strided_slice %523 {offsets = [0, 4], sizes = [32, 49], strides = [1, 1]} : vector<32x56xf32> to vector<32x49xf32>
    %546 = vector.broadcast %544 : vector<32x1xf32> to vector<32x49xf32>
    %547 = arith.mulf %546, %545 : vector<32x49xf32>
    %548 = arith.addf %543, %547 : vector<32x49xf32>
    %549 = vector.extract_strided_slice %524 {offsets = [0, 5], sizes = [32, 1], strides = [1, 1]} : vector<32x8xf32> to vector<32x1xf32>
    %550 = vector.extract_strided_slice %523 {offsets = [0, 5], sizes = [32, 49], strides = [1, 1]} : vector<32x56xf32> to vector<32x49xf32>
    %551 = vector.broadcast %549 : vector<32x1xf32> to vector<32x49xf32>
    %552 = arith.mulf %551, %550 : vector<32x49xf32>
    %553 = arith.addf %548, %552 : vector<32x49xf32>
    %554 = vector.extract_strided_slice %524 {offsets = [0, 6], sizes = [32, 1], strides = [1, 1]} : vector<32x8xf32> to vector<32x1xf32>
    %555 = vector.extract_strided_slice %523 {offsets = [0, 6], sizes = [32, 49], strides = [1, 1]} : vector<32x56xf32> to vector<32x49xf32>
    %556 = vector.broadcast %554 : vector<32x1xf32> to vector<32x49xf32>
    %557 = arith.mulf %556, %555 : vector<32x49xf32>
    %558 = arith.addf %553, %557 : vector<32x49xf32>
    %559 = vector.extract_strided_slice %524 {offsets = [0, 7], sizes = [32, 1], strides = [1, 1]} : vector<32x8xf32> to vector<32x1xf32>
    %560 = vector.extract_strided_slice %523 {offsets = [0, 7], sizes = [32, 49], strides = [1, 1]} : vector<32x56xf32> to vector<32x49xf32>
    %561 = vector.broadcast %559 : vector<32x1xf32> to vector<32x49xf32>
    %562 = arith.mulf %561, %560 : vector<32x49xf32>
    %563 = arith.addf %558, %562 : vector<32x49xf32>
    %c0_120 = arith.constant 0 : index
    %c0_121 = arith.constant 0 : index
    %564 = vector.load %arg21[%c0_120, %c0_121] : memref<49x28xf32, #tpu.memory_space<vmem>>, vector<49x28xf32>
    %cst_122 = arith.constant dense<0.000000e+00> : vector<32x28xf32>
    %565 = tpu.matmul %563, %564, %cst_122 {dimension_numbers = #tpu.dot_dimension_numbers<[1], [0], [0], [1], [0, 0, 1, 1], [], []>} : vector<32x49xf32>, vector<49x28xf32>, vector<32x28xf32> -> vector<32x28xf32>
    %cst_123 = arith.constant dense<0.000000e+00> : vector<32xf32>
    %566 = vector.multi_reduction <add>, %565, %cst_123 [1] : vector<32x28xf32> to vector<32xf32>
    %567 = vector.shape_cast %566 : vector<32xf32> to vector<32x1xf32>
    %cst_124 = arith.constant 2.800000e+01 : f32
    %568 = vector.broadcast %cst_124 : f32 to vector<32x1xf32>
    %569 = arith.divf %567, %568 : vector<32x1xf32>
    %570 = vector.broadcast %569 : vector<32x1xf32> to vector<32x28xf32>
    %571 = arith.subf %565, %570 : vector<32x28xf32>
    %572 = arith.mulf %571, %571 : vector<32x28xf32>
    %cst_125 = arith.constant dense<0.000000e+00> : vector<32xf32>
    %573 = vector.multi_reduction <add>, %572, %cst_125 [1] : vector<32x28xf32> to vector<32xf32>
    %574 = vector.shape_cast %573 : vector<32xf32> to vector<32x1xf32>
    %cst_126 = arith.constant 2.800000e+01 : f32
    %575 = vector.broadcast %cst_126 : f32 to vector<32x1xf32>
    %576 = arith.divf %574, %575 : vector<32x1xf32>
    %577 = vector.broadcast %569 : vector<32x1xf32> to vector<32x28xf32>
    %578 = arith.subf %565, %577 : vector<32x28xf32>
    %cst_127 = arith.constant 9.99999974E-6 : f32
    %579 = vector.broadcast %cst_127 : f32 to vector<32x1xf32>
    %580 = arith.addf %576, %579 : vector<32x1xf32>
    %581 = math.rsqrt %580 : vector<32x1xf32>
    %582 = vector.broadcast %581 : vector<32x1xf32> to vector<32x28xf32>
    %583 = arith.mulf %578, %582 : vector<32x28xf32>
    %c88 = arith.constant 88 : index
    %c0_128 = arith.constant 0 : index
    %584 = vector.load %arg24[%c88, %c0_128] : memref<136x1xf32, #tpu.memory_space<vmem>>, vector<32x1xf32>
    %585 = vector.broadcast %584 : vector<32x1xf32> to vector<32x28xf32>
    %586 = arith.mulf %583, %585 : vector<32x28xf32>
    %c88_129 = arith.constant 88 : index
    %c0_130 = arith.constant 0 : index
    %587 = vector.load %arg25[%c88_129, %c0_130] : memref<136x1xf32, #tpu.memory_space<vmem>>, vector<32x1xf32>
    %588 = vector.broadcast %587 : vector<32x1xf32> to vector<32x28xf32>
    %589 = arith.addf %586, %588 : vector<32x28xf32>
    %590 = arith.negf %589 : vector<32x28xf32>
    %591 = math.exp %590 : vector<32x28xf32>
    %cst_131 = arith.constant 1.000000e+00 : f32
    %592 = vector.broadcast %cst_131 : f32 to vector<32x28xf32>
    %593 = arith.addf %592, %591 : vector<32x28xf32>
    %594 = arith.divf %592, %593 : vector<32x28xf32>
    %595 = arith.mulf %589, %594 : vector<32x28xf32>
    %c0_132 = arith.constant 0 : index
    %c0_133 = arith.constant 0 : index
    %596 = vector.load %arg22[%c0_132, %c0_133] : memref<16x32xf32, #tpu.memory_space<vmem>>, vector<16x32xf32>
    %cst_134 = arith.constant dense<0.000000e+00> : vector<16x28xf32>
    %597 = tpu.matmul %596, %595, %cst_134 {dimension_numbers = #tpu.dot_dimension_numbers<[1], [0], [0], [1], [0, 0, 1, 1], [], []>} : vector<16x32xf32>, vector<32x28xf32>, vector<16x28xf32> -> vector<16x28xf32>
    %cst_135 = arith.constant dense<0.000000e+00> : vector<16xf32>
    %598 = vector.multi_reduction <add>, %597, %cst_135 [1] : vector<16x28xf32> to vector<16xf32>
    %599 = vector.shape_cast %598 : vector<16xf32> to vector<16x1xf32>
    %cst_136 = arith.constant 2.800000e+01 : f32
    %600 = vector.broadcast %cst_136 : f32 to vector<16x1xf32>
    %601 = arith.divf %599, %600 : vector<16x1xf32>
    %602 = vector.broadcast %601 : vector<16x1xf32> to vector<16x28xf32>
    %603 = arith.subf %597, %602 : vector<16x28xf32>
    %604 = arith.mulf %603, %603 : vector<16x28xf32>
    %cst_137 = arith.constant dense<0.000000e+00> : vector<16xf32>
    %605 = vector.multi_reduction <add>, %604, %cst_137 [1] : vector<16x28xf32> to vector<16xf32>
    %606 = vector.shape_cast %605 : vector<16xf32> to vector<16x1xf32>
    %cst_138 = arith.constant 2.800000e+01 : f32
    %607 = vector.broadcast %cst_138 : f32 to vector<16x1xf32>
    %608 = arith.divf %606, %607 : vector<16x1xf32>
    %609 = vector.broadcast %601 : vector<16x1xf32> to vector<16x28xf32>
    %610 = arith.subf %597, %609 : vector<16x28xf32>
    %cst_139 = arith.constant 9.99999974E-6 : f32
    %611 = vector.broadcast %cst_139 : f32 to vector<16x1xf32>
    %612 = arith.addf %608, %611 : vector<16x1xf32>
    %613 = math.rsqrt %612 : vector<16x1xf32>
    %614 = vector.broadcast %613 : vector<16x1xf32> to vector<16x28xf32>
    %615 = arith.mulf %610, %614 : vector<16x28xf32>
    %c120 = arith.constant 120 : index
    %c0_140 = arith.constant 0 : index
    %616 = vector.load %arg24[%c120, %c0_140] : memref<136x1xf32, #tpu.memory_space<vmem>>, vector<16x1xf32>
    %617 = vector.broadcast %616 : vector<16x1xf32> to vector<16x28xf32>
    %618 = arith.mulf %615, %617 : vector<16x28xf32>
    %c120_141 = arith.constant 120 : index
    %c0_142 = arith.constant 0 : index
    %619 = vector.load %arg25[%c120_141, %c0_142] : memref<136x1xf32, #tpu.memory_space<vmem>>, vector<16x1xf32>
    %620 = vector.broadcast %619 : vector<16x1xf32> to vector<16x28xf32>
    %621 = arith.addf %618, %620 : vector<16x28xf32>
    %c0_143 = arith.constant 0 : index
    %c0_144 = arith.constant 0 : index
    %622 = vector.load %arg23[%c0_143, %c0_144] : memref<28x12xf32, #tpu.memory_space<vmem>>, vector<28x12xf32>
    %cst_145 = arith.constant dense<0.000000e+00> : vector<16x12xf32>
    %623 = tpu.matmul %621, %622, %cst_145 {dimension_numbers = #tpu.dot_dimension_numbers<[1], [0], [0], [1], [0, 0, 1, 1], [], []>} : vector<16x28xf32>, vector<28x12xf32>, vector<16x12xf32> -> vector<16x12xf32>
    %c0_146 = arith.constant 0 : index
    %c0_147 = arith.constant 0 : index
    %624 = vector.load %arg26[%c0_146, %c0_147] : memref<16x12xf32, #tpu.memory_space<vmem>>, vector<16x12xf32>
    tpu.vector_store %arg26[%c0_146, %c0_147], %623 {strides = array<i32>} : memref<16x12xf32, #tpu.memory_space<vmem>>, vector<16x12xf32>,
    return
  }
}

</mosaic_0001>

<bundles_post_ra>
// kernel: cnn_forward.1
= control target key start
LH: loop header
LB: loop body
LE: loop exit
PB: predicated region body
PF: predicated region fallthrough
CT: control target
= control target key end

     0   :  { %s9384_s0 = inlined_call_operand.vmem [shape: f32[1,1136], index: 0, kind: input, shape index: {}]   ;;  %s9385_s1 = inlined_call_operand.vmem [shape: f32[8,16], index: 1, kind: input, shape index: {}]   ;;  %s9386_s2 = inlined_call_operand.vmem [shape: f32[1,1121], index: 2, kind: input, shape index: {}]   ;;  %s9387_s3 = inlined_call_operand.vmem [shape: f32[127,29], index: 3, kind: input, shape index: {}]   ;;  %s9388_s4 = inlined_call_operand.vmem [shape: f32[16,8], index: 4, kind: input, shape index: {}]   ;;  %s9389_s5 = inlined_call_operand.vmem [shape: f32[16,16], index: 5, kind: input, shape index: {}]   ;;  %s9390_s6 = inlined_call_operand.vmem [shape: f32[217,56], index: 6, kind: input, shape index: {}]   ;;  %s9391_s7 = inlined_call_operand.vmem [shape: f32[16,16], index: 7, kind: input, shape index: {}]   ;;  %s9392_s8 = inlined_call_operand.vmem [shape: f32[4,16], index: 8, kind: input, shape index: {}]   ;;  %s9393_s9 = inlined_call_operand.vmem [shape: f32[16,4], index: 9, kind: input, shape index: {}]   ;;  %s9394_s10 = inlined_call_operand.vmem [shape: f32[2,56], index: 10, kind: input, shape index: {}]   ;;  %s9395_s11 = inlined_call_operand.vmem [shape: f32[18], index: 11, kind: input, shape index: {}]   ;;  %s9396_s12 = inlined_call_operand.vmem [shape: f32[56,96], index: 12, kind: input, shape index: {}]   ;;  %s9397_s13 = inlined_call_operand.vmem [shape: f32[71,56], index: 13, kind: input, shape index: {}]   ;;  %s9398_s14 = inlined_call_operand.vmem [shape: f32[32,16], index: 14, kind: input, shape index: {}]   ;;  %s9399_s15 = inlined_call_operand.vmem [shape: f32[32,3], index: 15, kind: input, shape index: {}]   ;;  %s9400_s16 = inlined_call_operand.vmem [shape: f32[42,28], index: 16, kind: input, shape index: {}]   ;;  %s9401_s17 = inlined_call_operand.vmem [shape: f32[16,32], index: 17, kind: input, shape index: {}]   ;;  %s9402_s18 = inlined_call_operand.vmem [shape: f32[32,16], index: 18, kind: input, shape index: {}]   ;;  %s9403_s19 = inlined_call_operand.vmem [shape: f32[28,56], index: 19, kind: input, shape index: {}]   ;;  %s9404_s20 = inlined_call_operand.vmem [shape: f32[32,8], index: 20, kind: input, shape index: {}]   ;;  %s9405_s21 = inlined_call_operand.vmem [shape: f32[49,28], index: 21, kind: input, shape index: {}]   ;;  %s9406_s22 = inlined_call_operand.vmem [shape: f32[16,32], index: 22, kind: input, shape index: {}]   ;;  %s9407_s23 = inlined_call_operand.vmem [shape: f32[28,12], index: 23, kind: input, shape index: {}]   ;;  %s9408_s24 = inlined_call_operand.vmem [shape: f32[136,1], index: 24, kind: input, shape index: {}]   ;;  %s9409_s25 = inlined_call_operand.vmem [shape: f32[136,1], index: 25, kind: input, shape index: {}]   ;;  %s9410_s26 = inlined_call_operand.vmem [shape: f32[16,12], index: 26, kind: output, shape index: {}]  }
   0x1   :  { %9555 = sst [smem:[#allocation61_spill]] %s9384_s0 }
   0x2   :  { %9556 = sst [smem:[#allocation62_spill]] %s9385_s1 }
   0x3   :  { %9557 = sst [smem:[#allocation63_spill]] %s9386_s2 }
   0x4   :  { %9558 = sst [smem:[#allocation64_spill]] %s9387_s3 }
   0x5   :  { %9559 = sst [smem:[#allocation65_spill]] %s9388_s4 }
   0x6   :  { %9560 = sst [smem:[#allocation66_spill]] %s9389_s5 }
   0x7   :  { %9561 = sst [smem:[#allocation67_spill]] %s9390_s6 }
   0x8   :  { %9562 = sst [smem:[#allocation68_spill]] %s9391_s7 }
   0x9   :  { %9563 = sst [smem:[#allocation69_spill]] %s9392_s8 }
   0xa   :  { %9564 = sst [smem:[#allocation70_spill]] %s9393_s9 }
   0xb   :  { %9565 = sst [smem:[#allocation71_spill]] %s9394_s10 }
   0xc   :  { %9566 = sst [smem:[#allocation72_spill]] %s9405_s21 }
   0xd   :  { %9567 = sst [smem:[#allocation73_spill]] %s9406_s22 }
   0xe   :  { %9568 = sst [smem:[#allocation74_spill]] %s9407_s23 }
   0xf   :  { %9569 = sst [smem:[#allocation75_spill]] %s9410_s26 }
  0x10   :  { %31 = vsyncpa [#allocation3], 0  ;;  %s60_s7 = sshll.u32 %s9395_s11, 4  ;;  %s61_s7 = int_to_ptr.vmem [resolvable:$true] %s60_s7 }
  0x11   :  { %s6655_s28 = scalar_lea.vmem %s61_s7, 16  ;;  %p6660_p1 = scmp.lt.s32.totalorder %s61_s7, %s61_s7 }
  0x12   :  { %p6656_p0 = scmp.ne.s32.totalorder %s61_s7, %s6655_s28  ;;  %p6661_p2 = scmp.lt.s32.totalorder %s6655_s28, %s6655_s28 }
  0x14   :  { %p6662_p3 = por %p6661_p2, %p6660_p1 }
  0x16   :  { %p6663_p4 = pnand %p6662_p3, %p6656_p0 }
  0x18   :  { %6666 = shalt.err (!%p6663_p4)
}
  0x19   :  { %s6669_s8 = smov [#allocation2]  }
  0x1a   :  { %63 = dma.vmem_to_smem %s61_s7, 16, %s6669_s8, [#allocation3]  }
  0x1b   :  { %6667 = dma.done.wait [#allocation3], 16  }
  0x1c   :  { %6668 = vsyncadd [#allocation3], 4294967280 }
  0x1d   :  { %95 = sfence }
  0x1e   :  { %s9570_s0 = sld [smem:[#allocation62_spill]]  ;;  %v9444_v1 = vmov 1   ;;  %v9442_v2 = vmov 3   ;;  %v9446_v3 = vmov 2   ;;  %v9440_v4 = vmov 4   ;;  %s9573_s30 = sld [smem:[#allocation61_spill]] }
  0x1f   :  { %6448 = vset.pattern.permute.xlu0 %v9444_v1  ;;  %6450 = vset.pattern.permute.xlu1 %v9442_v2  ;;  %v9438_v5 = vmov 5   ;;  %v9436_v6 = vmov 6   ;;  %v9434_v7 = vmov 7   ;;  %v9429_v8 = vmov 9   ;;  %s9546_s2 = smov 127   ;;  %s9548_s5 = smov 126  }
  0x20   :  { %v9431_v9 = vmov 8   ;;  %v9422_v10 = vmov 12   ;;  %v9433_v11 = vmov 10   ;;  %v9419_v12 = vmov 15   ;;  %s9542_s10 = smov 125   ;;  %s9540_s6 = smov 124  }
  0x21   :  { %v9427_v13 = vmov 11   ;;  %v9424_v14 = vmov 0   ;;  %v9420_v15 = vmov 13   ;;  %v9426_v16 = vmov 14   ;;  %s9538_s1 = smov 123   ;;  %s9524_s7 = smov 122  }
  0x22   :  { %v106_v17 = vlaneseq  ;;  %s9522_s28 = smov 121   ;;  %s9520_s8 = smov 120   ;;  %vm200_vm0 = vcmask 1039360   ;;  %vm267_vm1 = vcmask 1031168   ;;  %vm334_vm2 = vcmask 1022976  }
  0x23   :  { %s9518_s4 = smov 119   ;;  %s9516_s29 = smov 118   ;;  %vm401_vm3 = vcmask 1014784   ;;  %vm468_vm4 = vcmask 1006592   ;;  %vm535_vm5 = vcmask 998400   ;;  %vm602_vm6 = vcmask 990208  }
  0x24   :  { %v98_v0 = vld [vmem:[%s9570_s0] sm:$0xff]  ;;  %v6877_v18 = vshrl.u32 %v106_v17, 7  ;;  %s9514_s0 = smov 117   ;;  %s6697_s11 = smov 116   ;;  %vm9535_vm7 = vcmask 982016   ;;  %vm9534_vm8 = vcmask 973824  }
  0x25   :  { %161 = vperm.xlu0 %6448, %v98_v0   ;;  %295 = vperm.xlu1 %6450, %v98_v0   ;;  %v6886_v21 = vld [vmem:[%s9573_s30] sm:$0xff]  ;;  %s9508_s9 = smov 115   ;;  %s9506_s27 = smov 113   ;;  %vm9533_vm9 = vcmask 965632   ;;  %vm9528_vm10 = vcmask 957440   ;;  %vm937_vm11 = vcmask 949248  }
  0x26   :  { %9571 = vst [vmem:[#allocation5_spill] sm:$0xff] %v6877_v18  ;;  %v9454_v19 = vsub.s32 1, %v6877_v18  ;;  %v6881_v20 = vsub.s32 0, %v6877_v18  ;;  %v9452_v24 = vsub.s32 3, %v6877_v18  ;;  %v9453_v25 = vsub.s32 2, %v6877_v18  ;;  %s6709_s3 = smov 30  }
  0x27   :  { %v9451_v34 = vsub.s32 4, %v6877_v18  ;;  %v9450_v43 = vsub.s32 5, %v6877_v18  ;;  %v9449_v52 = vsub.s32 6, %v6877_v18  ;;  %v9448_v61 = vsub.s32 7, %v6877_v18  ;;  %s5318_s22 = sld [smem:[#allocation2 + $0x1]]  ;;  %s5322_s26 = sld [smem:[#allocation2 + $0x5]] }
  0x28   :  { %9572 = vst [vmem:[#allocation6_spill] sm:$0xff] %v6881_v20  ;;  %v6891_v22 = vrot.slane %v6886_v21, %v9454_v19  ;;  %v6895_v23 = vrot.slane %v6886_v21, %v6881_v20  ;;  %v6908_v29 = vrot.slane %v6886_v21, %v9452_v24  ;;  %v6913_v30 = vrot.slane %v6886_v21, %v9453_v25  ;;  %s5328_s23 = sld [smem:[#allocation2 + $0xb]]  ;;  %s9753_s21 = smov 127  }
  0x29   :  { %6449 = vset.pattern.permute.xlu0 %v9446_v3  ;;  %6451 = vset.pattern.permute.xlu1 %v9440_v4  ;;  %v6933_v37 = vrot.slane %v6886_v21, %v9451_v34  ;;  %v6959_v46 = vrot.slane %v6886_v21, %v9450_v43  ;;  %v6985_v55 = vrot.slane %v6886_v21, %v9449_v52  ;;  %vm9527_vm12 = vcmask 941056  }
  0x2a   :  { %228 = vperm.xlu0 %6449, %v98_v0   ;;  %362 = vperm.xlu1 %6451, %v98_v0   ;;  %vm9530_vm13 = vcmask 932864   ;;  %vm9526_vm14 = vcmask 924672   ;;  %vm1230_vm15 = vcmask 793600  }
  0x2e   :  { %6452 = vset.pattern.permute.xlu1 %v9438_v5  ;;  %6453 = vset.pattern.permute.xlu0 %v9436_v6 }
  0x2f   :  { %429 = vperm.xlu1 %6452, %v98_v0   ;;  %496 = vperm.xlu0 %6453, %v98_v0  }
  0x33   :  { %6454 = vset.pattern.permute.xlu1 %v9434_v7  ;;  %6456 = vset.pattern.permute.xlu0 %v9429_v8 }
  0x34   :  { %563 = vperm.xlu1 %6454, %v98_v0   ;;  %697 = vperm.xlu0 %6456, %v98_v0  }
  0x38   :  { %6455 = vset.pattern.permute.xlu1 %v9431_v9  ;;  %6459 = vset.pattern.permute.xlu0 %v9422_v10 }
  0x39   :  { %630 = vperm.xlu1 %6455, %v98_v0   ;;  %898 = vperm.xlu0 %6459, %v98_v0  }
  0x3d   :  { %6457 = vset.pattern.permute.xlu1 %v9433_v11  ;;  %6462 = vset.pattern.permute.xlu0 %v9419_v12 }
  0x3e   :  { %764 = vperm.xlu1 %6457, %v98_v0   ;;  %1099 = vperm.xlu0 %6462, %v98_v0  }
  0x42   :  { %6458 = vset.pattern.permute.xlu1 %v9427_v13  ;;  %6464 = vset.pattern.permute.xlu0 %v9424_v14 }
  0x43   :  { %831 = vperm.xlu1 %6458, %v98_v0  }
  0x47   :  { %6460 = vset.pattern.permute.xlu1 %v9420_v15 }
  0x48   :  { %965 = vperm.xlu1 %6460, %v98_v0  }
  0x4c   :  { %6461 = vset.pattern.permute.xlu1 %v9426_v16 }
  0x4d   :  { %1032 = vperm.xlu1 %6461, %v98_v0  }
  0x51   :  { %6463 = vset.pattern.permute.xlu1 %v9424_v14 }
  0x52   :  { %101 = vperm.xlu1 %6463, %v98_v0   ;;  %v7011_v0 = vrot.slane %v6886_v21, %v9448_v61 }
  0xa4   :  { %v6899_v26 = vpop.permute.xlu0 %161  ;;  %v6937_v38 = vpop.permute.xlu1 %295 }
  0xa5   :  { %v165_v27 = vmul.f32 %v6899_v26, %v6891_v22  ;;  %v164_v28 = vmul.f32 %v6899_v26, %v6895_v23  ;;  %v167_v31 = vmul.f32 %v6899_v26, %v6908_v29  ;;  %v166_v32 = vmul.f32 %v6899_v26, %v6913_v30 }
  0xa6   :  { %v168_v39 = vmul.f32 %v6899_v26, %v6933_v37  ;;  %v298_v41 = vmul.f32 %v6937_v38, %v6895_v23  ;;  %v300_v44 = vmul.f32 %v6937_v38, %v6913_v30  ;;  %v299_v45 = vmul.f32 %v6937_v38, %v6891_v22 }
  0xa7   :  { %184 = vrot.lane.b32.xlu0 %v165_v27, %s9546_s2  ;;  %182 = vrot.lane.b32.xlu1 %v164_v28, %s9546_s2  ;;  %v169_v49 = vmul.f32 %v6899_v26, %v6959_v46  ;;  %v301_v51 = vmul.f32 %v6937_v38, %v6908_v29  ;;  %v170_v57 = vmul.f32 %v6899_v26, %v6985_v55 }
  0xa8   :  { %v302_v60 = vmul.f32 %v6937_v38, %v6933_v37  ;;  %v171_v17 = vmul.f32 %v6899_v26, %v7011_v0  ;;  %v303_v28 = vmul.f32 %v6937_v38, %v6959_v46 }
  0xa9   :  { %v6921_v33 = vpop.permute.xlu0 %228  ;;  %v6963_v47 = vpop.permute.xlu1 %362 }
  0xaa   :  { %v232_v35 = vmul.f32 %v6921_v33, %v6891_v22  ;;  %v231_v36 = vmul.f32 %v6921_v33, %v6895_v23  ;;  %v233_v40 = vmul.f32 %v6921_v33, %v6913_v30  ;;  %v234_v42 = vmul.f32 %v6921_v33, %v6908_v29 }
  0xab   :  { %188 = vrot.lane.b32.xlu0 %v167_v31, %s9546_s2  ;;  %186 = vrot.lane.b32.xlu1 %v166_v32, %s9546_s2  ;;  %v235_v48 = vmul.f32 %v6921_v33, %v6933_v37  ;;  %v365_v50 = vmul.f32 %v6963_v47, %v6895_v23  ;;  %v367_v53 = vmul.f32 %v6963_v47, %v6913_v30 }
  0xac   :  { %v366_v54 = vmul.f32 %v6963_v47, %v6891_v22  ;;  %v236_v56 = vmul.f32 %v6921_v33, %v6959_v46  ;;  %v368_v59 = vmul.f32 %v6963_v47, %v6908_v29  ;;  %v237_v21 = vmul.f32 %v6921_v33, %v6985_v55 }
  0xae   :  { %v6995_v58 = vpop.permute.xlu1 %429  ;;  %v7027_v31 = vpop.permute.xlu0 %496 }
  0xaf   :  { %251 = vrot.lane.b32.xlu0 %v232_v35, %s9548_s5  ;;  %249 = vrot.lane.b32.xlu1 %v231_v36, %s9548_s5  ;;  %v433_v62 = vmul.f32 %v6995_v58, %v6891_v22  ;;  %v432_v63 = vmul.f32 %v6995_v58, %v6895_v23  ;;  %v434_v27 = vmul.f32 %v6995_v58, %v6913_v30 }
  0xb0   :  { %v435_v32 = vmul.f32 %v6995_v58, %v6908_v29  ;;  %v369_v35 = vmul.f32 %v6963_v47, %v6933_v37  ;;  %v500_v36 = vmul.f32 %v7027_v31, %v6891_v22 }
  0xb3   :  { %190 = vrot.lane.b32.xlu0 %v168_v39, %s9546_s2  ;;  %253 = vrot.lane.b32.xlu1 %v233_v40, %s9548_s5  ;;  %v499_v39 = vmul.f32 %v7027_v31, %v6895_v23  ;;  %v7042_v40 = vld [vmem:[%s9573_s30 + $0x8] ss:$0 sm:$0xff]  ;;  %s9544_s30 = smov 114  }
  0xb7   :  { %316 = vrot.lane.b32.xlu0 %v298_v41, %s9542_s10  ;;  %255 = vrot.lane.b32.xlu1 %v234_v42, %s9548_s5  ;;  %v172_v41 = vmul.f32 %v7042_v40, %v6899_v26  ;;  %v501_v42 = vmul.f32 %v7027_v31, %v6913_v30  ;;  %v436_v26 = vmul.f32 %v6995_v58, %v6933_v37 }
  0xbb   :  { %320 = vrot.lane.b32.xlu0 %v300_v44, %s9542_s10  ;;  %318 = vrot.lane.b32.xlu1 %v299_v45, %s9542_s10  ;;  %v304_v44 = vmul.f32 %v6937_v38, %v6985_v55  ;;  %v238_v45 = vmul.f32 %v6921_v33, %v7011_v0 }
  0xbf   :  { %257 = vrot.lane.b32.xlu0 %v235_v48, %s9548_s5  ;;  %192 = vrot.lane.b32.xlu1 %v169_v49, %s9546_s2  ;;  %v7058_v48 = vpop.permute.xlu1 %563  ;;  %v370_v49 = vmul.f32 %v6963_v47, %v6959_v46 }
  0xc3   :  { %383 = vrot.lane.b32.xlu0 %v365_v50, %s9540_s6  ;;  %322 = vrot.lane.b32.xlu1 %v301_v51, %s9542_s10  ;;  %v566_v50 = vmul.f32 %v7058_v48, %v6895_v23  ;;  %v502_v51 = vmul.f32 %v7027_v31, %v6908_v29 }
  0xc7   :  { %387 = vrot.lane.b32.xlu0 %v367_v53, %s9540_s6  ;;  %385 = vrot.lane.b32.xlu1 %v366_v54, %s9540_s6  ;;  %v568_v53 = vmul.f32 %v7058_v48, %v6913_v30  ;;  %v567_v54 = vmul.f32 %v7058_v48, %v6891_v22 }
  0xcb   :  { %259 = vrot.lane.b32.xlu0 %v236_v56, %s9548_s5  ;;  %194 = vrot.lane.b32.xlu1 %v170_v57, %s9546_s2  ;;  %v7076_v56 = vpop.permute.xlu1 %630  ;;  %v305_v57 = vmul.f32 %v6937_v38, %v7011_v0 }
  0xcf   :  { %389 = vrot.lane.b32.xlu0 %v368_v59, %s9540_s6  ;;  %324 = vrot.lane.b32.xlu1 %v302_v60, %s9542_s10  ;;  %v239_v59 = vmul.f32 %v7042_v40, %v6921_v33  ;;  %v7086_v60 = vpop.permute.xlu1 %764  ;;  %v503_v33 = vmul.f32 %v7027_v31, %v6933_v37 }
  0xd3   :  { %452 = vrot.lane.b32.xlu0 %v433_v62, %s9538_s1  ;;  %450 = vrot.lane.b32.xlu1 %v432_v63, %s9538_s1  ;;  %v437_v62 = vmul.f32 %v6995_v58, %v6959_v46  ;;  %v371_v63 = vmul.f32 %v6963_v47, %v6985_v55 }
  0xd7   :  { %196 = vrot.lane.b32.xlu0 %v171_v17, %s9546_s2  ;;  %454 = vrot.lane.b32.xlu1 %v434_v27, %s9538_s1  ;;  %v569_v17 = vmul.f32 %v7058_v48, %v6908_v29  ;;  %v7098_v27 = vpop.permute.xlu1 %831 }
  0xd8   :  { %v835_v16 = vmul.f32 %v7098_v27, %v6891_v22 }
  0xdb   :  { %326 = vrot.lane.b32.xlu0 %v303_v28, %s9542_s10  ;;  %261 = vrot.lane.b32.xlu1 %v237_v21, %s9548_s5  ;;  %v634_v28 = vmul.f32 %v7076_v56, %v6891_v22  ;;  %v633_v21 = vmul.f32 %v7076_v56, %v6895_v23 }
  0xdf   :  { %456 = vrot.lane.b32.xlu0 %v435_v32, %s9538_s1  ;;  %391 = vrot.lane.b32.xlu1 %v369_v35, %s9540_s6  ;;  %v7108_v32 = vpop.permute.xlu1 %965  ;;  %v7110_v35 = vpop.permute.xlu0 %697 }
  0xe0   :  { %v969_v24 = vmul.f32 %v7108_v32, %v6891_v22 }
  0xe3   :  { %519 = vrot.lane.b32.xlu0 %v500_v36, %s9524_s7  ;;  %517 = vrot.lane.b32.xlu1 %v499_v39, %s9524_s7  ;;  %v306_v36 = vmul.f32 %v7042_v40, %v6937_v38  ;;  %v635_v39 = vmul.f32 %v7076_v56, %v6913_v30  ;;  %v570_v38 = vmul.f32 %v7058_v48, %v6933_v37 }
  0xe7   :  { %198 = vrot.lane.b32.xlu0 %v172_v41, %s9546_s2  ;;  %521 = vrot.lane.b32.xlu1 %v501_v42, %s9524_s7  ;;  %v438_v41 = vmul.f32 %v6995_v58, %v6985_v55  ;;  %v372_v42 = vmul.f32 %v6963_v47, %v7011_v0 }
  0xeb   :  { %328 = vrot.lane.b32.xlu0 %v304_v44, %s9542_s10  ;;  %263 = vrot.lane.b32.xlu1 %v238_v45, %s9548_s5  ;;  %v7122_v44 = vpop.permute.xlu1 %1032  ;;  %v7124_v45 = vpop.permute.xlu0 %898 }
  0xec   :  { %v903_v2 = vmul.f32 %v7124_v45, %v6913_v30 }
  0xef   :  { %458 = vrot.lane.b32.xlu0 %v436_v26, %s9538_s1  ;;  %393 = vrot.lane.b32.xlu1 %v370_v49, %s9540_s6  ;;  %v504_v26 = vmul.f32 %v7027_v31, %v6959_v46  ;;  %v7134_v49 = vpop.permute.xlu1 %101 }
  0xf3   :  { %584 = vrot.lane.b32.xlu0 %v566_v50, %s9522_s28  ;;  %523 = vrot.lane.b32.xlu1 %v502_v51, %s9524_s7  ;;  %v7136_v50 = vpop.permute.xlu0 %1099  ;;  %v700_v51 = vmul.f32 %v7110_v35, %v6895_v23 }
  0xf7   :  { %588 = vrot.lane.b32.xlu0 %v568_v53, %s9522_s28  ;;  %586 = vrot.lane.b32.xlu1 %v567_v54, %s9522_s28  ;;  %v636_v53 = vmul.f32 %v7076_v56, %v6908_v29 }
  0xfb   :  { %330 = vrot.lane.b32.xlu0 %v305_v57, %s9542_s10  ;;  %265 = vrot.lane.b32.xlu1 %v239_v59, %s9548_s5  ;;  %v702_v59 = vmul.f32 %v7110_v35, %v6913_v30 }
  0xff   :  { %460 = vrot.lane.b32.xlu0 %v437_v62, %s9538_s1  ;;  %395 = vrot.lane.b32.xlu1 %v371_v63, %s9540_s6  ;;  %v701_v62 = vmul.f32 %v7110_v35, %v6891_v22 }
 0x103   :  { %590 = vrot.lane.b32.xlu0 %v569_v17, %s9522_s28  ;;  %525 = vrot.lane.b32.xlu1 %v503_v33, %s9524_s7  ;;  %v439_v33 = vmul.f32 %v6995_v58, %v7011_v0 }
 0x107   :  { %653 = vrot.lane.b32.xlu0 %v634_v28, %s9520_s8  ;;  %651 = vrot.lane.b32.xlu1 %v633_v21, %s9520_s8  ;;  %v373_v28 = vmul.f32 %v7042_v40, %v6963_v47 }
 0x10b   :  { %332 = vrot.lane.b32.xlu0 %v306_v36, %s9542_s10  ;;  %655 = vrot.lane.b32.xlu1 %v635_v39, %s9520_s8  ;;  %v571_v39 = vmul.f32 %v7058_v48, %v6959_v46 }
 0x10f   :  { %462 = vrot.lane.b32.xlu0 %v438_v41, %s9538_s1  ;;  %397 = vrot.lane.b32.xlu1 %v372_v42, %s9540_s6  ;;  %v505_v41 = vmul.f32 %v7027_v31, %v6985_v55 }
 0x113   :  { %592 = vrot.lane.b32.xlu0 %v570_v38, %s9522_s28  ;;  %527 = vrot.lane.b32.xlu1 %v504_v26, %s9524_s7  ;;  %v703_v38 = vmul.f32 %v7110_v35, %v6908_v29  ;;  %v637_v26 = vmul.f32 %v7076_v56, %v6933_v37 }
 0x117   :  { %718 = vrot.lane.b32.xlu0 %v700_v51, %s9518_s4  ;;  %657 = vrot.lane.b32.xlu1 %v636_v53, %s9520_s8 }
 0x119   :  { %v7144_v54 = vpop.permute.xlu0 %184  ;;  %v7146_v57 = vpop.permute.xlu1 %182 }
 0x11b   :  { %722 = vrot.lane.b32.xlu0 %v702_v59, %s9518_s4  ;;  %720 = vrot.lane.b32.xlu1 %v701_v62, %s9518_s4  ;;  %v768_v59 = vmul.f32 %v7086_v60, %v6891_v22  ;;  %v767_v62 = vmul.f32 %v7086_v60, %v6895_v23 }
 0x11d   :  { %v7154_v63 = vpop.permute.xlu0 %188  ;;  %v7156_v17 = vpop.permute.xlu1 %186 }
 0x11f   :  { %464 = vrot.lane.b32.xlu0 %v439_v33, %s9538_s1  ;;  %399 = vrot.lane.b32.xlu1 %v373_v28, %s9540_s6 }
 0x121   :  { %v7164_v21 = vpop.permute.xlu0 %251  ;;  %v7166_v36 = vpop.permute.xlu1 %249 }
 0x123   :  { %594 = vrot.lane.b32.xlu0 %v571_v39, %s9522_s28  ;;  %529 = vrot.lane.b32.xlu1 %v505_v41, %s9524_s7  ;;  %v440_v39 = vmul.f32 %v7042_v40, %v6995_v58  ;;  %v769_v41 = vmul.f32 %v7086_v60, %v6913_v30 }
 0x125   :  { %v7174_v42 = vpop.permute.xlu0 %190  ;;  %v7176_v47 = vpop.permute.xlu1 %253 }
 0x127   :  { %724 = vrot.lane.b32.xlu0 %v703_v38, %s9518_s4  ;;  %659 = vrot.lane.b32.xlu1 %v637_v26, %s9520_s8 }
 0x129   :  { %v7184_v51 = vpop.permute.xlu0 %316  ;;  %v7186_v53 = vpop.permute.xlu1 %255 }
 0x12b   :  { %787 = vrot.lane.b32.xlu0 %v768_v59, %s9516_s29  ;;  %785 = vrot.lane.b32.xlu1 %v767_v62, %s9516_s29  ;;  %v572_v59 = vmul.f32 %v7058_v48, %v6985_v55  ;;  %v506_v62 = vmul.f32 %v7027_v31, %v7011_v0 }
 0x12d   :  { %v7194_v33 = vpop.permute.xlu0 %320  ;;  %v7196_v28 = vpop.permute.xlu1 %318 }
 0x12f   :  { %466 = vrot.lane.b32.xlu0 %v440_v39, %s9538_s1  ;;  %789 = vrot.lane.b32.xlu1 %v769_v41, %s9516_s29  ;;  %v704_v39 = vmul.f32 %v7110_v35, %v6933_v37  ;;  %v638_v41 = vmul.f32 %v7076_v56, %v6959_v46 }
 0x131   :  { %v7204_v38 = vpop.permute.xlu0 %257  ;;  %v7206_v26 = vpop.permute.xlu1 %192 }
 0x133   :  { %596 = vrot.lane.b32.xlu0 %v572_v59, %s9522_s28  ;;  %531 = vrot.lane.b32.xlu1 %v506_v62, %s9524_s7  ;;  %v834_v59 = vmul.f32 %v7098_v27, %v6895_v23  ;;  %v770_v62 = vmul.f32 %v7086_v60, %v6908_v29 }
 0x135   :  { %v7214_v58 = vpop.permute.xlu0 %383  ;;  %v7216_v12 = vpop.permute.xlu1 %322 }
 0x137   :  { %726 = vrot.lane.b32.xlu0 %v704_v39, %s9518_s4  ;;  %661 = vrot.lane.b32.xlu1 %v638_v41, %s9520_s8  ;;  %v836_v41 = vmul.f32 %v7098_v27, %v6913_v30 }
 0x139   :  { %v7224_v15 = vpop.permute.xlu0 %387  ;;  %v7226_v10 = vpop.permute.xlu1 %385 }
 0x13b   :  { %852 = vrot.lane.b32.xlu0 %v834_v59, %s9514_s0  ;;  %791 = vrot.lane.b32.xlu1 %v770_v62, %s9516_s29  ;;  %v573_v59 = vmul.f32 %v7058_v48, %v7011_v0  ;;  %v507_v62 = vmul.f32 %v7042_v40, %v7027_v31 }
 0x13d   :  { %v7234_v14 = vpop.permute.xlu0 %259  ;;  %v7236_v39 = vpop.permute.xlu1 %194 }
 0x13f   :  { %856 = vrot.lane.b32.xlu0 %v836_v41, %s9514_s0  ;;  %854 = vrot.lane.b32.xlu1 %v835_v16, %s9514_s0  ;;  %v705_v16 = vmul.f32 %v7110_v35, %v6959_v46  ;;  %v639_v41 = vmul.f32 %v7076_v56, %v6985_v55 }
 0x141   :  { %v7244_v13 = vpop.permute.xlu0 %389  ;;  %v7246_v8 = vpop.permute.xlu1 %324 }
 0x143   :  { %598 = vrot.lane.b32.xlu0 %v573_v59, %s9522_s28  ;;  %533 = vrot.lane.b32.xlu1 %v507_v62, %s9524_s7  ;;  %v837_v59 = vmul.f32 %v7098_v27, %v6908_v29  ;;  %v771_v62 = vmul.f32 %v7086_v60, %v6933_v37  ;;  %s6712_s7 = smov 87  }
 0x145   :  { %v7254_v9 = vpop.permute.xlu0 %452  ;;  %v7256_v11 = vpop.permute.xlu1 %450 }
 0x147   :  { %728 = vrot.lane.b32.xlu0 %v705_v16, %s9518_s4  ;;  %663 = vrot.lane.b32.xlu1 %v639_v41, %s9520_s8  ;;  %v902_v16 = vmul.f32 %v7124_v45, %v6891_v22  ;;  %v901_v41 = vmul.f32 %v7124_v45, %v6895_v23 }
 0x149   :  { %v7264_v7 = vpop.permute.xlu0 %196  ;;  %v7266_v31 = vpop.permute.xlu1 %454 }
 0x14b   :  { %858 = vrot.lane.b32.xlu0 %v837_v59, %s9514_s0  ;;  %793 = vrot.lane.b32.xlu1 %v771_v62, %s9516_s29  ;;  %v574_v62 = vmul.f32 %v7042_v40, %v7058_v48 }
 0x14d   :  { %v7274_v6 = vpop.permute.xlu0 %326  ;;  %v7276_v5 = vpop.permute.xlu1 %261 }
 0x14f   :  { %921 = vrot.lane.b32.xlu0 %v902_v16, %s6697_s11  ;;  %919 = vrot.lane.b32.xlu1 %v901_v41, %s6697_s11  ;;  %v706_v16 = vmul.f32 %v7110_v35, %v6985_v55  ;;  %v640_v41 = vmul.f32 %v7076_v56, %v7011_v0 }
 0x151   :  { %v7284_v4 = vpop.permute.xlu0 %456  ;;  %v7286_v59 = vpop.permute.xlu1 %391 }
 0x153   :  { %600 = vrot.lane.b32.xlu0 %v574_v62, %s9522_s28  ;;  %923 = vrot.lane.b32.xlu1 %v903_v2, %s6697_s11  ;;  %v838_v2 = vmul.f32 %v7098_v27, %v6933_v37  ;;  %v772_v62 = vmul.f32 %v7086_v60, %v6959_v46  ;;  %s6713_s28 = smov 17  }
 0x155   :  { %v7294_v1 = vpop.permute.xlu0 %519  ;;  %v7296_v3 = vpop.permute.xlu1 %517 }
 0x157   :  { %730 = vrot.lane.b32.xlu0 %v706_v16, %s9518_s4  ;;  %665 = vrot.lane.b32.xlu1 %v640_v41, %s9520_s8  ;;  %v968_v16 = vmul.f32 %v7108_v32, %v6895_v23  ;;  %v904_v41 = vmul.f32 %v7124_v45, %v6908_v29 }
 0x159   :  { %v7304_v48 = vpop.permute.xlu0 %198  ;;  %v7306_v61 = vpop.permute.xlu1 %521 }
 0x15b   :  { %860 = vrot.lane.b32.xlu0 %v838_v2, %s9514_s0  ;;  %795 = vrot.lane.b32.xlu1 %v772_v62, %s9516_s29  ;;  %v970_v62 = vmul.f32 %v7108_v32, %v6913_v30 }
 0x15d   :  { %v7314_v52 = vpop.permute.xlu0 %328  ;;  %v7316_v43 = vpop.permute.xlu1 %263 }
 0x15f   :  { %986 = vrot.lane.b32.xlu0 %v968_v16, %s9508_s9  ;;  %925 = vrot.lane.b32.xlu1 %v904_v41, %s6697_s11  ;;  %v707_v16 = vmul.f32 %v7110_v35, %v7011_v0  ;;  %v641_v41 = vmul.f32 %v7042_v40, %v7076_v56 }
 0x161   :  { %v7324_v34 = vpop.permute.xlu0 %458  ;;  %v7326_v2 = vpop.permute.xlu1 %393 }
 0x163   :  { %990 = vrot.lane.b32.xlu0 %v970_v62, %s9508_s9  ;;  %988 = vrot.lane.b32.xlu1 %v969_v24, %s9508_s9  ;;  %v839_v24 = vmul.f32 %v7098_v27, %v6959_v46  ;;  %v773_v62 = vmul.f32 %v7086_v60, %v6985_v55 }
 0x165   :  { %v7334_v25 = vpop.permute.xlu0 %584  ;;  %v7336_v19 = vpop.permute.xlu1 %523 }
 0x166   :  { %9574 = vst [vmem:[#allocation7_spill] sm:$0xff] %v7334_v25 }
 0x167   :  { %732 = vrot.lane.b32.xlu0 %v707_v16, %s9518_s4  ;;  %667 = vrot.lane.b32.xlu1 %v641_v41, %s9520_s8  ;;  %v971_v16 = vmul.f32 %v7108_v32, %v6908_v29  ;;  %v905_v41 = vmul.f32 %v7124_v45, %v6933_v37  ;;  %s6706_s8 = smov 58  }
 0x169   :  { %v7344_v18 = vpop.permute.xlu0 %588  ;;  %v7346_v20 = vpop.permute.xlu1 %586 }
 0x16a   :  { %9575 = vst [vmem:[#allocation8_spill] sm:$0xff] %v7344_v18  ;;  %9576 = vst [vmem:[#allocation9_spill] sm:$0xff] %v7346_v20 }
 0x16b   :  { %862 = vrot.lane.b32.xlu0 %v839_v24, %s9514_s0  ;;  %797 = vrot.lane.b32.xlu1 %v773_v62, %s9516_s29  ;;  %v1036_v24 = vmul.f32 %v7122_v44, %v6891_v22  ;;  %v1035_v62 = vmul.f32 %v7122_v44, %v6895_v23 }
 0x16d   :  { %v7354_v25 = vpop.permute.xlu0 %330  ;;  %v7356_v56 = vpop.permute.xlu1 %265 }
 0x16e   :  { %9577 = vst [vmem:[#allocation10_spill] sm:$0xff] %v7354_v25  ;;  %9578 = vst [vmem:[#allocation11_spill] sm:$0xff] %v7356_v56 }
 0x16f   :  { %992 = vrot.lane.b32.xlu0 %v971_v16, %s9508_s9  ;;  %927 = vrot.lane.b32.xlu1 %v905_v41, %s6697_s11  ;;  %v708_v41 = vmul.f32 %v7042_v40, %v7110_v35 }
 0x171   :  { %v7364_v18 = vpop.permute.xlu0 %460  ;;  %v7366_v20 = vpop.permute.xlu1 %395 }
 0x172   :  { %9579 = vst [vmem:[#allocation12_spill] sm:$0xff] %v7364_v18  ;;  %9580 = vst [vmem:[#allocation13_spill] sm:$0xff] %v7366_v20  ;;  %v1037_v20 = vmul.f32 %v7122_v44, %v6913_v30 }
 0x173   :  { %1055 = vrot.lane.b32.xlu0 %v1036_v24, %s9544_s30  ;;  %1053 = vrot.lane.b32.xlu1 %v1035_v62, %s9544_s30  ;;  %v840_v24 = vmul.f32 %v7098_v27, %v6985_v55  ;;  %v774_v62 = vmul.f32 %v7086_v60, %v7011_v0 }
 0x175   :  { %v7374_v56 = vpop.permute.xlu0 %590  ;;  %v7376_v16 = vpop.permute.xlu1 %525 }
 0x176   :  { %9581 = vst [vmem:[#allocation14_spill] sm:$0xff] %v7376_v16 }
 0x177   :  { %734 = vrot.lane.b32.xlu0 %v708_v41, %s9518_s4  ;;  %1057 = vrot.lane.b32.xlu1 %v1037_v20, %s9544_s30  ;;  %v972_v20 = vmul.f32 %v7108_v32, %v6933_v37  ;;  %v906_v41 = vmul.f32 %v7124_v45, %v6959_v46  ;;  %s6707_s4 = smov 44  }
 0x179   :  { %v7384_v18 = vpop.permute.xlu0 %653  ;;  %v7386_v25 = vpop.permute.xlu1 %651 }
 0x17a   :  { %9582 = vst [vmem:[#allocation15_spill] sm:$0xff] %v7384_v18  ;;  %9583 = vst [vmem:[#allocation16_spill] sm:$0xff] %v7386_v25 }
 0x17b   :  { %864 = vrot.lane.b32.xlu0 %v840_v24, %s9514_s0  ;;  %799 = vrot.lane.b32.xlu1 %v774_v62, %s9516_s29  ;;  %v1102_v24 = vmul.f32 %v7136_v50, %v6895_v23  ;;  %v1038_v62 = vmul.f32 %v7122_v44, %v6908_v29 }
 0x17d   :  { %v7394_v35 = vpop.permute.xlu0 %332  ;;  %v7396_v16 = vpop.permute.xlu1 %655 }
 0x17e   :  { %9584 = vst [vmem:[#allocation17_spill] sm:$0xff] %v7394_v35  ;;  %9585 = vst [vmem:[#allocation18_spill] sm:$0xff] %v7396_v16 }
 0x17f   :  { %994 = vrot.lane.b32.xlu0 %v972_v20, %s9508_s9  ;;  %929 = vrot.lane.b32.xlu1 %v906_v41, %s6697_s11  ;;  %v1104_v41 = vmul.f32 %v7136_v50, %v6913_v30 }
 0x181   :  { %v7404_v25 = vpop.permute.xlu0 %462  ;;  %v7406_v18 = vpop.permute.xlu1 %397 }
 0x182   :  { %9586 = vst [vmem:[#allocation19_spill] sm:$0xff] %v7404_v25  ;;  %9587 = vst [vmem:[#allocation20_spill] sm:$0xff] %v7406_v18  ;;  %v1103_v18 = vmul.f32 %v7136_v50, %v6891_v22 }
 0x183   :  { %1120 = vrot.lane.b32.xlu0 %v1102_v24, %s9506_s27  ;;  %1059 = vrot.lane.b32.xlu1 %v1038_v62, %s9544_s30  ;;  %v841_v24 = vmul.f32 %v7098_v27, %v7011_v0  ;;  %v775_v62 = vmul.f32 %v7042_v40, %v7086_v60 }
 0x185   :  { %v7414_v16 = vpop.permute.xlu0 %592  ;;  %v7416_v20 = vpop.permute.xlu1 %527 }
 0x186   :  { %9588 = vst [vmem:[#allocation21_spill] sm:$0xff] %v7414_v16  ;;  %9589 = vst [vmem:[#allocation22_spill] sm:$0xff] %v7416_v20 }
 0x187   :  { %1124 = vrot.lane.b32.xlu0 %v1104_v41, %s9506_s27  ;;  %1122 = vrot.lane.b32.xlu1 %v1103_v18, %s9506_s27  ;;  %v973_v18 = vmul.f32 %v7108_v32, %v6959_v46  ;;  %v907_v41 = vmul.f32 %v7124_v45, %v6985_v55 }
 0x189   :  { %v7424_v25 = vpop.permute.xlu0 %718  ;;  %v7426_v35 = vpop.permute.xlu1 %657 }
 0x18a   :  { %9590 = vst [vmem:[#allocation23_spill] sm:$0xff] %v7424_v25 }
 0x18b   :  { %866 = vrot.lane.b32.xlu0 %v841_v24, %s9514_s0  ;;  %801 = vrot.lane.b32.xlu1 %v775_v62, %s9516_s29  ;;  %v1105_v24 = vmul.f32 %v7136_v50, %v6908_v29  ;;  %v1039_v62 = vmul.f32 %v7122_v44, %v6933_v37  ;;  %s9698_s29 = sld [smem:[#allocation64_spill]] }
 0x18d   :  { %v7434_v20 = vpop.permute.xlu0 %722  ;;  %v7436_v16 = vpop.permute.xlu1 %720 }
 0x18e   :  { %9591 = vst [vmem:[#allocation24_spill] sm:$0xff] %v7434_v20  ;;  %9592 = vst [vmem:[#allocation25_spill] sm:$0xff] %v7436_v16 }
 0x18f   :  { %996 = vrot.lane.b32.xlu0 %v973_v18, %s9508_s9  ;;  %931 = vrot.lane.b32.xlu1 %v907_v41, %s6697_s11  ;;  %v908_v18 = vmul.f32 %v7124_v45, %v7011_v0  ;;  %v842_v41 = vmul.f32 %v7042_v40, %v7098_v27 }
 0x191   :  { %v7444_v25 = vpop.permute.xlu0 %464  ;;  %v7446_v60 = vpop.permute.xlu1 %399 }
 0x192   :  { %9593 = vst [vmem:[#allocation26_spill] sm:$0xff] %v7444_v25  ;;  %9594 = vst [vmem:[#allocation27_spill] sm:$0xff] %v7446_v60 }
 0x193   :  { %1126 = vrot.lane.b32.xlu0 %v1105_v24, %s9506_s27  ;;  %1061 = vrot.lane.b32.xlu1 %v1039_v62, %s9544_s30  ;;  %v1040_v24 = vmul.f32 %v7122_v44, %v6959_v46  ;;  %v974_v62 = vmul.f32 %v7108_v32, %v6985_v55 }
 0x195   :  { %v7454_v20 = vpop.permute.xlu0 %594  ;;  %v7456_v16 = vpop.permute.xlu1 %529 }
 0x196   :  { %9595 = vst [vmem:[#allocation28_spill] sm:$0xff] %v7456_v16 }
 0x197   :  { %933 = vrot.lane.b32.xlu0 %v908_v18, %s6697_s11  ;;  %868 = vrot.lane.b32.xlu1 %v842_v41, %s9514_s0  ;;  %v909_v18 = vmul.f32 %v7042_v40, %v7124_v45  ;;  %v1106_v41 = vmul.f32 %v7136_v50, %v6933_v37  ;;  %s9536_s0 = smov 100  }
 0x199   :  { %v7464_v60 = vpop.permute.xlu0 %724  ;;  %v7466_v25 = vpop.permute.xlu1 %659 }
 0x19a   :  { %9596 = vst [vmem:[#allocation29_spill] sm:$0xff] %v7464_v60  ;;  %9597 = vst [vmem:[#allocation30_spill] sm:$0xff] %v7466_v25 }
 0x19b   :  { %1063 = vrot.lane.b32.xlu0 %v1040_v24, %s9544_s30  ;;  %998 = vrot.lane.b32.xlu1 %v974_v62, %s9508_s9  ;;  %v1041_v24 = vmul.f32 %v7122_v44, %v6985_v55  ;;  %v975_v62 = vmul.f32 %v7108_v32, %v7011_v0 }
 0x19d   :  { %v7474_v16 = vpop.permute.xlu0 %787  ;;  %v7476_v27 = vpop.permute.xlu1 %785 }
 0x19e   :  { %9598 = vst [vmem:[#allocation31_spill] sm:$0xff] %v7476_v27 }
 0x19f   :  { %935 = vrot.lane.b32.xlu0 %v909_v18, %s6697_s11  ;;  %1128 = vrot.lane.b32.xlu1 %v1106_v41, %s9506_s27  ;;  %v976_v18 = vmul.f32 %v7042_v40, %v7108_v32  ;;  %v1107_v41 = vmul.f32 %v7136_v50, %v6959_v46 }
 0x1a1   :  { %v7484_v25 = vpop.permute.xlu0 %466  ;;  %v7486_v60 = vpop.permute.xlu1 %789 }
 0x1a2   :  { %9599 = vst [vmem:[#allocation32_spill] sm:$0xff] %v7484_v25  ;;  %9600 = vst [vmem:[#allocation33_spill] sm:$0xff] %v7486_v60 }
 0x1a3   :  { %1065 = vrot.lane.b32.xlu0 %v1041_v24, %s9544_s30  ;;  %1000 = vrot.lane.b32.xlu1 %v975_v62, %s9508_s9  ;;  %v1108_v24 = vmul.f32 %v7136_v50, %v6985_v55  ;;  %v1042_v62 = vmul.f32 %v7122_v44, %v7011_v0 }
 0x1a5   :  { %v7494_v45 = vpop.permute.xlu0 %596  ;;  %v7496_v27 = vpop.permute.xlu1 %531 }
 0x1a6   :  { %9601 = vst [vmem:[#allocation34_spill] sm:$0xff] %v7494_v45  ;;  %9602 = vst [vmem:[#allocation35_spill] sm:$0xff] %v7496_v27 }
 0x1a7   :  { %1002 = vrot.lane.b32.xlu0 %v976_v18, %s9508_s9  ;;  %1130 = vrot.lane.b32.xlu1 %v1107_v41, %s9506_s27  ;;  %v1109_v18 = vmul.f32 %v7136_v50, %v7011_v0  ;;  %v1043_v41 = vmul.f32 %v7042_v40, %v7122_v44  ;;  %s9638_s9 = sld [smem:[#allocation63_spill]] }
 0x1a9   :  { %v7504_v60 = vpop.permute.xlu0 %726  ;;  %v7506_v25 = vpop.permute.xlu1 %661 }
 0x1aa   :  { %9603 = vst [vmem:[#allocation36_spill] sm:$0xff] %v7504_v60  ;;  %9604 = vst [vmem:[#allocation37_spill] sm:$0xff] %v7506_v25 }
 0x1ab   :  { %1132 = vrot.lane.b32.xlu0 %v1108_v24, %s9506_s27  ;;  %1067 = vrot.lane.b32.xlu1 %v1042_v62, %s9544_s30  ;;  %v1110_v24 = vmul.f32 %v7042_v40, %v7136_v50 }
 0x1ad   :  { %v7514_v32 = vpop.permute.xlu0 %852  ;;  %v7516_v27 = vpop.permute.xlu1 %791 }
 0x1ae   :  { %9605 = vst [vmem:[#allocation38_spill] sm:$0xff] %v7514_v32  ;;  %9606 = vst [vmem:[#allocation39_spill] sm:$0xff] %v7516_v27 }
 0x1af   :  { %1134 = vrot.lane.b32.xlu0 %v1109_v18, %s9506_s27  ;;  %1069 = vrot.lane.b32.xlu1 %v1043_v41, %s9544_s30 }
 0x1b1   :  { %v7524_v25 = vpop.permute.xlu0 %856  ;;  %v7526_v60 = vpop.permute.xlu1 %854 }
 0x1b2   :  { %9607 = vst [vmem:[#allocation40_spill] sm:$0xff] %v7524_v25  ;;  %9608 = vst [vmem:[#allocation41_spill] sm:$0xff] %v7526_v60 }
 0x1b3   :  { %1136 = vrot.lane.b32.xlu1 %v1110_v24, %s9506_s27  ;;  %s6711_s27 = smov 29  }
 0x1b5   :  { %v7531_v62 = vpop.permute.xlu0 %598  ;;  %v7533_v32 = vpop.permute.xlu1 %533 }
 0x1b6   :  { %9609 = vst [vmem:[#allocation42_spill] sm:$0xff] %v7531_v62  ;;  %9610 = vst [vmem:[#allocation43_spill] sm:$0xff] %v7533_v32 }
 0x1b9   :  { %v7535_v27 = vpop.permute.xlu0 %728  ;;  %v7537_v44 = vpop.permute.xlu1 %663 }
 0x1ba   :  { %9611 = vst [vmem:[#allocation44_spill] sm:$0xff] %v7535_v27  ;;  %9612 = vst [vmem:[#allocation45_spill] sm:$0xff] %v7537_v44 }
 0x1bd   :  { %v7539_v18 = vpop.permute.xlu0 %858  ;;  %v7541_v41 = vpop.permute.xlu1 %793 }
 0x1be   :  { %9613 = vst [vmem:[#allocation46_spill] sm:$0xff] %v7539_v18  ;;  %9614 = vst [vmem:[#allocation47_spill] sm:$0xff] %v7541_v41 }
 0x1c1   :  { %v7543_v25 = vpop.permute.xlu0 %921  ;;  %v7545_v60 = vpop.permute.xlu1 %919 }
 0x1c2   :  { %9615 = vst [vmem:[#allocation48_spill] sm:$0xff] %v7543_v25  ;;  %9616 = vst [vmem:[#allocation49_spill] sm:$0xff] %v7545_v60 }
 0x1c5   :  { %v7547_v45 = vpop.permute.xlu0 %600  ;;  %v7549_v50 = vpop.permute.xlu1 %923 }
 0x1c6   :  { %9617 = vst [vmem:[#allocation50_spill] sm:$0xff] %v7547_v45 }
 0x1c9   :  { %v7551_v24 = vpop.permute.xlu0 %730  ;;  %v7553_v62 = vpop.permute.xlu1 %665 }
 0x1ca   :  { %9618 = vst [vmem:[#allocation51_spill] sm:$0xff] %v7553_v62 }
 0x1cd   :  { %v7555_v32 = vpop.permute.xlu0 %860  ;;  %v7557_v27 = vpop.permute.xlu1 %795 }
 0x1ce   :  { %9619 = vst [vmem:[#allocation52_spill] sm:$0xff] %v7555_v32 }
 0x1d1   :  { %v7559_v44 = vpop.permute.xlu0 %986  ;;  %v7561_v18 = vpop.permute.xlu1 %925 }
 0x1d2   :  { %9620 = vst [vmem:[#allocation53_spill] sm:$0xff] %v7559_v44  ;;  %9621 = vst [vmem:[#allocation54_spill] sm:$0xff] %v7561_v18  ;;  %v151_v44 = vmul.f32 %v6895_v23, %v7134_v49  ;;  %v152_v18 = vmul.f32 %v6891_v22, %v7134_v49  ;;  %v203_v22 = vsel %vm200_vm0, %v7156_v17, %v7154_v63 }
 0x1d3   :  { %v155_v23 = vmul.f32 %v6933_v37, %v7134_v49  ;;  %v7610_v37 = vmul.f32 %v7042_v40, %v7134_v49  ;;  %v335_v40 = vsel %vm334_vm2, %v7184_v51, %v7196_v28  ;;  %v337_v51 = vsel %vm334_vm2, %v7194_v33, %v7216_v12 }
 0x1d5   :  { %v7563_v41 = vpop.permute.xlu0 %990  ;;  %v7565_v25 = vpop.permute.xlu1 %988 }
 0x1d6   :  { %9622 = vst [vmem:[#allocation55_spill] sm:$0xff] %v7563_v41  ;;  %9623 = vst [vmem:[#allocation56_spill] sm:$0xff] %v7565_v25 }
 0x1d9   :  { %v7567_v60 = vpop.permute.xlu0 %732  ;;  %v7569_v45 = vpop.permute.xlu1 %667 }
 0x1da   :  { %9624 = vst [vmem:[#allocation57_spill] sm:$0xff] %v7567_v60  ;;  %9625 = vst [vmem:[#allocation58_spill] sm:$0xff] %v7569_v45  ;;  %v201_v60 = vsel %vm200_vm0, %v7146_v57, %v7144_v54  ;;  %v153_v45 = vmul.f32 %v6913_v30, %v7134_v49  ;;  %v156_v57 = vmul.f32 %v6959_v46, %v7134_v49 }
 0x1db   :  { %v157_v30 = vmul.f32 %v6985_v55, %v7134_v49  ;;  %v218_v55 = vadd.f32 %v201_v60, %v151_v44 }
 0x1dd   :  { %v7571_v62 = vpop.permute.xlu0 %862  ;;  %v7573_v32 = vpop.permute.xlu1 %797 }
 0x1de   :  { %9626 = vst [vmem:[#allocation59_spill] sm:$0xff] %v7571_v62  ;;  %9627 = vst [vmem:[#allocation60_spill] sm:$0xff] %v7573_v32  ;;  %v202_v62 = vsel %vm200_vm0, %v7144_v54, %v7156_v17  ;;  %v154_v32 = vmul.f32 %v6908_v29, %v7134_v49  ;;  %v268_v54 = vsel %vm267_vm1, %v7166_v36, %v7164_v21 }
 0x1df   :  { %v269_v29 = vsel %vm267_vm1, %v7164_v21, %v7176_v47  ;;  %v7606_v17 = vmul.f32 %v7011_v0, %v7134_v49  ;;  %v219_v25 = vadd.f32 %v202_v62, %v152_v18  ;;  %v204_v36 = vsel %vm200_vm0, %v7154_v63, %v7174_v42 }
 0x1e0   :  { %v270_v21 = vsel %vm267_vm1, %v7176_v47, %v7186_v53  ;;  %v220_v0 = vadd.f32 %v203_v22, %v153_v45  ;;  %v336_v49 = vsel %vm334_vm2, %v7196_v28, %v7194_v33  ;;  %v285_v60 = vadd.f32 %v268_v54, %v218_v55 }
 0x1e1   :  { %v7612_v46 = vpop.permute.xlu0 %992  ;;  %v7614_v41 = vpop.permute.xlu1 %927  ;;  %v286_v62 = vadd.f32 %v269_v29, %v219_v25  ;;  %v271_v63 = vsel %vm267_vm1, %v7186_v53, %v7204_v38  ;;  %v205_v47 = vsel %vm200_vm0, %v7174_v42, %v7206_v26  ;;  %v221_v45 = vadd.f32 %v204_v36, %v154_v32 }
 0x1e2   :  { %v287_v44 = vadd.f32 %v270_v21, %v220_v0  ;;  %v402_v28 = vsel %vm401_vm3, %v7214_v58, %v7226_v10  ;;  %v352_v53 = vadd.f32 %v335_v40, %v285_v60  ;;  %v403_v42 = vsel %vm401_vm3, %v7226_v10, %v7224_v15 }
 0x1e3   :  { %v353_v22 = vadd.f32 %v336_v49, %v286_v62  ;;  %v272_v32 = vsel %vm267_vm1, %v7204_v38, %v7234_v14  ;;  %v288_v33 = vadd.f32 %v271_v63, %v221_v45  ;;  %v222_v54 = vadd.f32 %v205_v47, %v155_v23 }
 0x1e4   :  { %v206_v58 = vsel %vm200_vm0, %v7206_v26, %v7236_v39  ;;  %v404_v29 = vsel %vm401_vm3, %v7224_v15, %v7244_v13  ;;  %v354_v55 = vadd.f32 %v337_v51, %v287_v44  ;;  %v419_v36 = vadd.f32 %v402_v28, %v352_v53 }
 0x1e5   :  { %v7640_v25 = vpop.permute.xlu0 %1055  ;;  %v7642_v18 = vpop.permute.xlu1 %1053  ;;  %v338_v10 = vsel %vm334_vm2, %v7216_v12, %v7246_v8  ;;  %v469_v38 = vsel %vm468_vm4, %v7256_v11, %v7254_v9  ;;  %v420_v21 = vadd.f32 %v403_v42, %v353_v22  ;;  %v289_v23 = vadd.f32 %v272_v32, %v222_v54  ;;  %v9628_v54 = vld [vmem:[#allocation9_spill] sm:$0xff] }
 0x1e6   :  { %v207_v26 = vsel %vm200_vm0, %v7236_v39, %v7264_v7  ;;  %v470_v15 = vsel %vm468_vm4, %v7254_v9, %v7266_v31  ;;  %v223_v12 = vadd.f32 %v206_v58, %v156_v57  ;;  %v421_v49 = vadd.f32 %v404_v29, %v354_v55  ;;  %v9629_v58 = vld [vmem:[#allocation7_spill] sm:$0xff] }
 0x1e7   :  { %v339_v11 = vsel %vm334_vm2, %v7246_v8, %v7274_v6  ;;  %v273_v60 = vsel %vm267_vm1, %v7234_v14, %v7276_v5  ;;  %v355_v39 = vadd.f32 %v338_v10, %v288_v33  ;;  %v486_v62 = vadd.f32 %v469_v38, %v419_v36 }
 0x1e8   :  { %v471_v9 = vsel %vm468_vm4, %v7266_v31, %v7284_v4  ;;  %v405_v63 = vsel %vm401_vm3, %v7244_v13, %v7286_v59  ;;  %v224_v57 = vadd.f32 %v207_v26, %v157_v30  ;;  %v487_v47 = vadd.f32 %v470_v15, %v420_v21  ;;  %v9634_v15 = vld [vmem:[#allocation13_spill] sm:$0xff] }
 0x1e9   :  { %v7668_v0 = vpop.permute.xlu0 %734  ;;  %v7670_v40 = vpop.permute.xlu1 %1057  ;;  %v536_v8 = vsel %vm535_vm5, %v7296_v3, %v7294_v1  ;;  %v208_v14 = vsel %vm200_vm0, %v7264_v7, %v7304_v48  ;;  %v356_v45 = vadd.f32 %v339_v11, %v289_v23  ;;  %v290_v44 = vadd.f32 %v273_v60, %v223_v12  ;;  %v9633_v23 = vld [vmem:[#allocation12_spill] sm:$0xff]  ;;  %v9635_v60 = vld [vmem:[#allocation14_spill] sm:$0xff] }
 0x1ea   :  { %v537_v31 = vsel %vm535_vm5, %v7294_v1, %v7306_v61  ;;  %v340_v13 = vsel %vm334_vm2, %v7274_v6, %v7314_v52  ;;  %v488_v28 = vadd.f32 %v471_v9, %v421_v49  ;;  %v422_v3 = vadd.f32 %v405_v63, %v355_v39  ;;  %v9637_v63 = vld [vmem:[#allocation16_spill] sm:$0xff] }
 0x1eb   :  { %v274_v7 = vsel %vm267_vm1, %v7276_v5, %v7316_v43  ;;  %v472_v53 = vsel %vm468_vm4, %v7284_v4, %v7324_v34  ;;  %v553_v1 = vadd.f32 %v536_v8, %v486_v62  ;;  %v225_v22 = vadd.f32 %v208_v14, %v7606_v17  ;;  %v9630_v17 = vld [vmem:[#allocation8_spill] sm:$0xff] }
 0x1ec   :  { %v226_v6 = vadd.f32 %v7304_v48, %v7610_v37  ;;  %v406_v42 = vsel %vm401_vm3, %v7286_v59, %v7326_v2  ;;  %v554_v32 = vadd.f32 %v537_v31, %v487_v47  ;;  %v357_v33 = vadd.f32 %v340_v13, %v290_v44  ;;  %v9631_v37 = vld [vmem:[#allocation10_spill] sm:$0xff] }
 0x1ed   :  { %v7696_v30 = vpop.permute.xlu0 %864  ;;  %v7698_v51 = vpop.permute.xlu1 %799  ;;  %v538_v5 = vsel %vm535_vm5, %v7306_v61, %v7336_v19  ;;  %v603_v4 = vsel %vm602_vm6, %v9629_v58, %v9628_v54  ;;  %v291_v29 = vadd.f32 %v274_v7, %v224_v57  ;;  %v489_v55 = vadd.f32 %v472_v53, %v422_v3  ;;  %v9632_v61 = vld [vmem:[#allocation11_spill] sm:$0xff]  ;;  %v9641_v3 = vld [vmem:[#allocation18_spill] sm:$0xff] }
 0x1ee   :  { %v604_v48 = vsel %vm602_vm6, %v9628_v54, %v9630_v17  ;;  %v341_v59 = vsel %vm334_vm2, %v7314_v52, %v9631_v37  ;;  %v423_v38 = vadd.f32 %v406_v42, %v356_v45  ;;  %v275_v21 = vsel %vm267_vm1, %v7316_v43, %v9632_v61  ;;  %v9640_v45 = vld [vmem:[#allocation17_spill] sm:$0xff]  ;;  %v9642_v53 = vld [vmem:[#allocation19_spill] sm:$0xff] }
 0x1ef   :  { %v473_v26 = vsel %vm468_vm4, %v7324_v34, %v9633_v23  ;;  %v407_v12 = vsel %vm401_vm3, %v7326_v2, %v9634_v15  ;;  %v555_v49 = vadd.f32 %v538_v5, %v488_v28  ;;  %v620_v11 = vadd.f32 %v603_v4, %v553_v1  ;;  %v9636_v34 = vld [vmem:[#allocation15_spill] sm:$0xff]  ;;  %v7750_v2 = vld [vmem:[%s9638_s9] sm:$0xff] }
 0x1f0   :  { %v605_v52 = vsel %vm602_vm6, %v9630_v17, %v7374_v56  ;;  %v539_v39 = vsel %vm535_vm5, %v7336_v19, %v9635_v60  ;;  %v621_v43 = vadd.f32 %v604_v48, %v554_v32  ;;  %v358_v62 = vadd.f32 %v341_v59, %v291_v29  ;;  %9639 = vst [vmem:[#allocation9_spill] sm:$0xff] %v7750_v2  ;;  %v9644_v32 = vld [vmem:[#allocation6_spill] sm:$0xff]  ;;  %v9645_v5 = vld [vmem:[#allocation5_spill] sm:$0xff] }
 0x1f1   :  { %v7724_v36 = vpop.permute.xlu0 %994  ;;  %v7726_v10 = vpop.permute.xlu1 %929  ;;  %v293_v9 = vadd.f32 %v9632_v61, %v226_v6  ;;  %v670_v57 = vsel %vm9535_vm7, %v9637_v63, %v9636_v34  ;;  %v292_v47 = vadd.f32 %v275_v21, %v225_v22  ;;  %v490_v8 = vadd.f32 %v473_v26, %v423_v38  ;;  %v9643_v6 = vld [vmem:[#allocation20_spill] sm:$0xff]  ;;  %v9648_v48 = vld [vmem:[#allocation22_spill] sm:$0xff]  ;;  %v9649_v21 = vld [vmem:[#allocation25_spill] sm:$0xff] }
 0x1f2   :  { %v424_v14 = vadd.f32 %v407_v12, %v357_v33  ;;  %v342_v19 = vsel %vm334_vm2, %v9631_v37, %v9640_v45  ;;  %v622_v13 = vadd.f32 %v605_v52, %v555_v49  ;;  %v556_v28 = vadd.f32 %v539_v39, %v489_v55  ;;  %v9647_v55 = vld [vmem:[#allocation21_spill] sm:$0xff]  ;;  %v9651_v49 = vld [vmem:[#allocation24_spill] sm:$0xff]  ;;  %v9652_v52 = vld [vmem:[#allocation26_spill] sm:$0xff] }
 0x1f3   :  { %v671_v7 = vsel %vm9535_vm7, %v9636_v34, %v9641_v3  ;;  %v474_v1 = vsel %vm468_vm4, %v9633_v23, %v9642_v53  ;;  %v687_v22 = vadd.f32 %v670_v57, %v620_v11  ;;  %v408_v42 = vsel %vm401_vm3, %v9634_v15, %v9643_v6  ;;  %v9650_v23 = vld [vmem:[#allocation23_spill] sm:$0xff] }
 0x1f4   :  { %v7770_v33 = vrot.slane %v7750_v2, %v9644_v32  ;;  %v9646_v54 = vsub.s32 1, %v9645_v5  ;;  %v359_v4 = vadd.f32 %v342_v19, %v292_v47  ;;  %v360_v29 = vadd.f32 %v9640_v45, %v293_v9  ;;  %v9654_v63 = vld [vmem:[#allocation27_spill] sm:$0xff]  ;;  %v9655_v45 = vld [vmem:[#allocation28_spill] sm:$0xff] }
 0x1f5   :  { %v7755_v44 = vpop.permute.xlu0 %1120  ;;  %v7757_v31 = vpop.permute.xlu1 %1059  ;;  %v606_v17 = vsel %vm602_vm6, %v7374_v56, %v9647_v55  ;;  %v540_v37 = vsel %vm535_vm5, %v9635_v60, %v9648_v48  ;;  %v688_v59 = vadd.f32 %v671_v7, %v621_v43  ;;  %v491_v38 = vadd.f32 %v474_v1, %v424_v14  ;;  %v9657_v1 = vld [vmem:[#allocation30_spill] sm:$0xff] }
 0x1f6   :  { %v7775_v58 = vrot.slane %v7750_v2, %v9646_v54  ;;  %v672_v61 = vsel %vm9535_vm7, %v9641_v3, %v7426_v35  ;;  %v737_v26 = vsel %vm9534_vm8, %v9650_v23, %v9649_v21  ;;  %v425_v56 = vadd.f32 %v408_v42, %v358_v62  ;;  %v9656_v3 = vld [vmem:[#allocation29_spill] sm:$0xff] }
 0x1f7   :  { %v738_v11 = vsel %vm9534_vm8, %v9649_v21, %v9651_v49  ;;  %v475_v60 = vsel %vm468_vm4, %v9642_v53, %v9652_v52  ;;  %v9653_v39 = vsub.s32 2, %v9645_v5  ;;  %v623_v9 = vadd.f32 %v606_v17, %v556_v28  ;;  %v9661_v21 = vld [vmem:[#allocation33_spill] sm:$0xff] }
 0x1f8   :  { %v557_v34 = vadd.f32 %v540_v37, %v490_v8  ;;  %v409_v57 = vsel %vm401_vm3, %v9643_v6, %v9654_v63  ;;  %v607_v62 = vsel %vm602_vm6, %v9647_v55, %v7454_v20  ;;  %v689_v47 = vadd.f32 %v672_v61, %v622_v13  ;;  %v9658_v55 = vld [vmem:[#allocation31_spill] sm:$0xff]  ;;  %v9660_v61 = vld [vmem:[#allocation32_spill] sm:$0xff] }
 0x1f9   :  { %v7790_v15 = vpop.permute.xlu0 %1124  ;;  %v7792_v12 = vpop.permute.xlu1 %1122  ;;  %v7803_v43 = vrot.slane %v7750_v2, %v9653_v39  ;;  %v754_v14 = vadd.f32 %v737_v26, %v687_v22  ;;  %v541_v19 = vsel %vm535_vm5, %v9648_v48, %v9655_v45  ;;  %v739_v28 = vsel %vm9534_vm8, %v9651_v49, %v9656_v3  ;;  %v9662_v26 = vld [vmem:[#allocation34_spill] sm:$0xff]  ;;  %v9663_v49 = vld [vmem:[#allocation35_spill] sm:$0xff] }
 0x1fa   :  { %v755_v8 = vadd.f32 %v738_v11, %v688_v59  ;;  %v492_v7 = vadd.f32 %v475_v60, %v425_v56  ;;  %v427_v53 = vadd.f32 %v9654_v63, %v360_v29  ;;  %v673_v6 = vsel %vm9535_vm7, %v7426_v35, %v9657_v1 }
 0x1fb   :  { %v426_v22 = vadd.f32 %v409_v57, %v359_v4  ;;  %v624_v54 = vadd.f32 %v607_v62, %v557_v34  ;;  %v804_v17 = vsel %vm9533_vm9, %v9658_v55, %v7474_v16  ;;  %v9659_v48 = vsub.s32 3, %v9645_v5  ;;  %v9666_v34 = vld [vmem:[#allocation36_spill] sm:$0xff]  ;;  %v9672_v55 = vld [vmem:[#allocation38_spill] sm:$0xff] }
 0x1fc   :  { %v558_v29 = vadd.f32 %v541_v19, %v491_v38  ;;  %v756_v59 = vadd.f32 %v739_v28, %v689_v47  ;;  %v476_v35 = vsel %vm468_vm4, %v9652_v52, %v9660_v61  ;;  %v805_v4 = vsel %vm9533_vm9, %v7474_v16, %v9661_v21  ;;  %v9670_v19 = vld [vmem:[#allocation39_spill] sm:$0xff] }
 0x1fd   :  { %v7821_v42 = vpop.permute.xlu0 %866  ;;  %v7823_v13 = vpop.permute.xlu1 %801  ;;  %v7831_v37 = vrot.slane %v7750_v2, %v9659_v48  ;;  %v690_v23 = vadd.f32 %v673_v6, %v623_v9  ;;  %v608_v56 = vsel %vm602_vm6, %v7454_v20, %v9662_v26  ;;  %v542_v11 = vsel %vm535_vm5, %v9655_v45, %v9663_v49  ;;  %v9669_v45 = vld [vmem:[#allocation37_spill] sm:$0xff]  ;;  %v9673_v48 = vld [vmem:[#allocation40_spill] sm:$0xff] }
 0x1fe   :  { %v9664_v38 = vsub.s32 4, %v9645_v5  ;;  %v821_v52 = vadd.f32 %v804_v17, %v754_v14  ;;  %v494_v39 = vadd.f32 %v9660_v61, %v427_v53  ;;  %v740_v16 = vsel %vm9534_vm8, %v9656_v3, %v9666_v34  ;;  %v9671_v6 = vld [vmem:[#allocation41_spill] sm:$0xff] }
 0x1ff   :  { %v9667_v63 = vsub.s32 5, %v9645_v5  ;;  %v493_v62 = vadd.f32 %v476_v35, %v426_v22  ;;  %v822_v47 = vadd.f32 %v805_v4, %v755_v8  ;;  %v674_v14 = vsel %vm9535_vm7, %v9657_v1, %v9669_v45  ;;  %v9674_v22 = vld [vmem:[#allocation42_spill] sm:$0xff]  ;;  %v9675_v35 = vld [vmem:[#allocation43_spill] sm:$0xff] }
 0x200   :  { %v7848_v60 = vrot.slane %v7750_v2, %v9664_v38  ;;  %v806_v28 = vsel %vm9533_vm9, %v9661_v21, %v9670_v19  ;;  %v625_v3 = vadd.f32 %v608_v56, %v558_v29  ;;  %v559_v53 = vadd.f32 %v542_v11, %v492_v7  ;;  %v9676_v29 = vld [vmem:[#allocation44_spill] sm:$0xff]  ;;  %v9677_v11 = vld [vmem:[#allocation45_spill] sm:$0xff] }
 0x201   :  { %v7854_v9 = vpop.permute.xlu0 %996  ;;  %v7856_v20 = vpop.permute.xlu1 %931  ;;  %v7861_v57 = vrot.slane %v7750_v2, %v9667_v63  ;;  %v871_v17 = vsel %vm9528_vm10, %v9672_v55, %v9671_v6  ;;  %v872_v61 = vsel %vm9528_vm10, %v9671_v6, %v9673_v48  ;;  %v757_v8 = vadd.f32 %v740_v16, %v690_v23  ;;  %v9678_v63 = vld [vmem:[#allocation46_spill] sm:$0xff]  ;;  %v9679_v55 = vld [vmem:[#allocation47_spill] sm:$0xff] }
 0x202   :  { %9665 = vst [vmem:[#allocation7_spill] sm:$0xff] %v7848_v60  ;;  %v609_v1 = vsel %vm602_vm6, %v9662_v26, %v9674_v22  ;;  %v543_v21 = vsel %vm535_vm5, %v9663_v49, %v9675_v35  ;;  %v741_v7 = vsel %vm9534_vm8, %v9666_v34, %v9676_v29  ;;  %v691_v4 = vadd.f32 %v674_v14, %v624_v54  ;;  %v9681_v34 = vld [vmem:[#allocation49_spill] sm:$0xff]  ;;  %v9682_v2 = vld [vmem:[#allocation50_spill] sm:$0xff] }
 0x203   :  { %9668 = vst [vmem:[#allocation8_spill] sm:$0xff] %v7861_v57  ;;  %v823_v56 = vadd.f32 %v806_v28, %v756_v59  ;;  %v675_v38 = vsel %vm9535_vm7, %v9669_v45, %v9677_v11  ;;  %v873_v23 = vsel %vm9528_vm10, %v9673_v48, %v9678_v63  ;;  %v888_v49 = vadd.f32 %v871_v17, %v821_v52  ;;  %v9680_v59 = vld [vmem:[#allocation48_spill] sm:$0xff] }
 0x204   :  { %v889_v6 = vadd.f32 %v872_v61, %v822_v47  ;;  %v807_v54 = vsel %vm9533_vm9, %v9670_v19, %v9679_v55  ;;  %v938_v14 = vsel %vm937_vm11, %v9681_v34, %v9680_v59  ;;  %v626_v45 = vadd.f32 %v609_v1, %v559_v53  ;;  %v9684_v1 = vld [vmem:[#allocation52_spill] sm:$0xff] }
 0x205   :  { %v7890_v26 = vpop.permute.xlu0 %1126  ;;  %v7892_v16 = vpop.permute.xlu1 %1061  ;;  %v560_v28 = vadd.f32 %v543_v21, %v493_v62  ;;  %v561_v32 = vadd.f32 %v9675_v35, %v494_v39  ;;  %v758_v48 = vadd.f32 %v741_v7, %v691_v4  ;;  %v692_v57 = vadd.f32 %v675_v38, %v625_v3  ;;  %v9683_v62 = vld [vmem:[#allocation51_spill] sm:$0xff]  ;;  %v9685_v21 = vld [vmem:[#allocation54_spill] sm:$0xff] }
 0x206   :  { %v890_v60 = vadd.f32 %v873_v23, %v823_v56  ;;  %v610_v52 = vsel %vm602_vm6, %v9674_v22, %v9682_v2  ;;  %v939_v47 = vsel %vm937_vm11, %v9680_v59, %v7549_v50  ;;  %v824_v19 = vadd.f32 %v807_v54, %v757_v8  ;;  %v9686_v56 = vld [vmem:[#allocation56_spill] sm:$0xff]  ;;  %v9688_v23 = vld [vmem:[#allocation55_spill] sm:$0xff]  ;;  %v9690_v54 = vld [vmem:[#allocation58_spill] sm:$0xff] }
 0x207   :  { %v955_v17 = vadd.f32 %v938_v14, %v888_v49  ;;  %v742_v53 = vsel %vm9534_vm8, %v9676_v29, %v7551_v24  ;;  %v676_v39 = vsel %vm9535_vm7, %v9677_v11, %v9683_v62  ;;  %v628_v22 = vadd.f32 %v9682_v2, %v561_v32  ;;  %v9687_v11 = vld [vmem:[#allocation53_spill] sm:$0xff]  ;;  %v9691_v14 = vld [vmem:[#allocation59_spill] sm:$0xff] }
 0x208   :  { %v874_v35 = vsel %vm9528_vm10, %v9678_v63, %v9684_v1  ;;  %v808_v8 = vsel %vm9533_vm9, %v9679_v55, %v7557_v27  ;;  %v940_v29 = vsel %vm937_vm11, %v7549_v50, %v9685_v21  ;;  %v627_v7 = vadd.f32 %v610_v52, %v560_v28  ;;  %v9689_v49 = vld [vmem:[#allocation57_spill] sm:$0xff] }
 0x209   :  { %v7913_v3 = vpop.permute.xlu0 %933  ;;  %v7915_v61 = vpop.permute.xlu1 %868  ;;  %v956_v4 = vadd.f32 %v939_v47, %v889_v6  ;;  %v1005_v38 = vsel %vm9527_vm12, %v9687_v11, %v9686_v56  ;;  %v1006_v2 = vsel %vm9527_vm12, %v9686_v56, %v9688_v23  ;;  %v759_v32 = vadd.f32 %v742_v53, %v692_v57 }
 0x20a   :  { %v693_v63 = vadd.f32 %v676_v39, %v626_v45  ;;  %v743_v55 = vsel %vm9534_vm8, %v7551_v24, %v9689_v49  ;;  %v677_v50 = vsel %vm9535_vm7, %v9683_v62, %v9690_v54  ;;  %v891_v59 = vadd.f32 %v874_v35, %v824_v19  ;;  %v9692_v62 = vld [vmem:[#allocation60_spill] sm:$0xff] }
 0x20b   :  { %v825_v6 = vadd.f32 %v808_v8, %v758_v48  ;;  %v957_v34 = vadd.f32 %v940_v29, %v890_v60  ;;  %v875_v28 = vsel %vm9528_vm10, %v9684_v1, %v9691_v14  ;;  %v1022_v57 = vadd.f32 %v1005_v38, %v955_v17 }
 0x20c   :  { %v1023_v45 = vadd.f32 %v1006_v2, %v956_v4  ;;  %v1072_v24 = vsel %vm9530_vm13, %v7642_v18, %v7640_v25  ;;  %v1073_v53 = vsel %vm9530_vm13, %v7640_v25, %v7670_v40  ;;  %v760_v19 = vadd.f32 %v743_v55, %v693_v63 }
 0x20d   :  { %v1064_v52 = vpop.permute.xlu0 %1063  ;;  %v7942_v47 = vpop.permute.xlu1 %998  ;;  %v694_v48 = vadd.f32 %v677_v50, %v627_v7  ;;  %v695_v60 = vadd.f32 %v9690_v54, %v628_v22  ;;  %v809_v39 = vsel %vm9533_vm9, %v7557_v27, %v9692_v62  ;;  %v892_v1 = vadd.f32 %v875_v28, %v825_v6 }
 0x20e   :  { %v941_v17 = vsel %vm937_vm11, %v9685_v21, %v7614_v41  ;;  %v1139_v18 = vsel %vm9526_vm14, %v7755_v44, %v7792_v12  ;;  %v1140_v25 = vsel %vm9526_vm14, %v7792_v12, %v7790_v15  ;;  %v1007_v22 = vsel %vm9527_vm12, %v9688_v23, %v7612_v46 }
 0x20f   :  { %v1089_v35 = vadd.f32 %v1072_v24, %v1022_v57  ;;  %v744_v27 = vsel %vm9534_vm8, %v9689_v49, %v7668_v0  ;;  %v1090_v8 = vadd.f32 %v1073_v53, %v1023_v45  ;;  %v876_v44 = vsel %vm9528_vm10, %v9691_v14, %v7696_v30 }
 0x210   :  { %v810_v12 = vsel %vm9533_vm9, %v9692_v62, %v7698_v51  ;;  %v1008_v7 = vsel %vm9527_vm12, %v7612_v46, %v7724_v36  ;;  %v942_v4 = vsel %vm937_vm11, %v7614_v41, %v7726_v10  ;;  %v826_v56 = vadd.f32 %v809_v39, %v759_v32 }
 0x211   :  { %v7969_v29 = vpop.permute.xlu0 %935  ;;  %v1129_v21 = vpop.permute.xlu1 %1128  ;;  %v958_v11 = vadd.f32 %v941_v17, %v891_v59  ;;  %v7983_v38 = vadd.f32 %v1139_v18, %v1089_v35  ;;  %v7985_v23 = vadd.f32 %v1140_v25, %v1090_v8  ;;  %v1024_v2 = vadd.f32 %v1007_v22, %v957_v34 }
 0x212   :  { %v761_v63 = vadd.f32 %v744_v27, %v694_v48  ;;  %v762_v49 = vadd.f32 %v7668_v0, %v695_v60  ;;  %v1074_v55 = vsel %vm9530_vm13, %v7670_v40, %v7757_v31  ;;  %v893_v54 = vadd.f32 %v876_v44, %v826_v56 }
 0x213   :  { %v827_v46 = vadd.f32 %v810_v12, %v760_v19  ;;  %v1025_v50 = vadd.f32 %v1008_v7, %v958_v11  ;;  %v959_v6 = vadd.f32 %v942_v4, %v892_v1  ;;  %v1009_v32 = vsel %vm9527_vm12, %v7724_v36, %v7854_v9 }
 0x214   :  { %v943_v59 = vsel %vm937_vm11, %v7726_v10, %v7856_v20  ;;  %v1141_v0 = vsel %vm9526_vm14, %v7790_v15, %v7890_v26  ;;  %v1075_v40 = vsel %vm9530_vm13, %v7757_v31, %v7892_v16  ;;  %v1091_v34 = vadd.f32 %v1074_v55, %v1024_v2 }
 0x215   :  { %v1066_v14 = vpop.permute.xlu0 %1065  ;;  %v1001_v41 = vpop.permute.xlu1 %1000  ;;  %v1214_v28 = vmul.f32 %v7770_v33, %v7983_v38  ;;  %v1215_v57 = vmul.f32 %v7775_v58, %v7985_v23  ;;  %v877_v36 = vsel %vm9528_vm10, %v7696_v30, %v7821_v42  ;;  %v811_v10 = vsel %vm9533_vm9, %v7698_v51, %v7823_v13 }
 0x216   :  { %v1076_v15 = vsel %vm9530_vm13, %v7892_v16, %v1064_v52  ;;  %v1010_v31 = vsel %vm9527_vm12, %v7854_v9, %v7942_v47  ;;  %v1142_v45 = vsel %vm9526_vm14, %v7890_v26, %v1129_v21  ;;  %v1026_v24 = vadd.f32 %v1009_v32, %v959_v6 }
 0x217   :  { %v960_v53 = vadd.f32 %v943_v59, %v893_v54  ;;  %v8020_v19 = vadd.f32 %v1141_v0, %v1091_v34  ;;  %v1092_v48 = vadd.f32 %v1075_v40, %v1025_v50  ;;  %v829_v62 = vadd.f32 %v7823_v13, %v762_v49  ;;  %v9694_v49 = vld [vmem:[#allocation9_spill] sm:$0xff]  ;;  %v9696_v34 = vld [vmem:[#allocation8_spill] sm:$0xff] }
 0x218   :  { %v944_v51 = vsel %vm937_vm11, %v7856_v20, %v7913_v3  ;;  %v1077_v16 = vsel %vm9530_vm13, %v1064_v52, %v1066_v14  ;;  %v894_v39 = vadd.f32 %v877_v36, %v827_v46  ;;  %v1093_v1 = vadd.f32 %v1076_v15, %v1026_v24  ;;  %v9695_v46 = vld [vmem:[#allocation7_spill] sm:$0xff] }
 0x219   :  { %v1003_v30 = vpop.permute.xlu0 %1002  ;;  %v1131_v60 = vpop.permute.xlu1 %1130  ;;  %v1027_v26 = vadd.f32 %v1010_v31, %v960_v53  ;;  %v8028_v17 = vadd.f32 %v1142_v45, %v1092_v48  ;;  %v1223_v18 = vadd.f32 %v1215_v57, %v1214_v28  ;;  %v828_v25 = vadd.f32 %v811_v10, %v761_v63  ;;  %v8066_v45 = vld [vmem:[%s9638_s9 + $0x8] ss:$0 sm:$0xff]  ;;  %s6710_s9 = smov 86  }
 0x21a   :  { %v1143_v9 = vsel %vm9526_vm14, %v1129_v21, %v1131_v60  ;;  %v878_v22 = vsel %vm9528_vm10, %v7821_v42, %v7915_v61  ;;  %v1011_v13 = vsel %vm9527_vm12, %v7942_v47, %v1001_v41  ;;  %v1216_v20 = vmul.f32 %v7803_v43, %v8020_v19 }
 0x21b   :  { %v961_v52 = vadd.f32 %v944_v51, %v894_v39  ;;  %v1094_v35 = vadd.f32 %v1077_v16, %v1027_v26  ;;  %v8037_v27 = vadd.f32 %v1143_v9, %v1093_v1  ;;  %v896_v44 = vadd.f32 %v7915_v61, %v829_v62 }
 0x21c   :  { %v945_v12 = vsel %vm937_vm11, %v7913_v3, %v7969_v29  ;;  %v895_v47 = vadd.f32 %v878_v22, %v828_v25  ;;  %v1217_v4 = vmul.f32 %v7831_v37, %v8028_v17  ;;  %v1012_v63 = vsel %vm9527_vm12, %v1001_v41, %v1003_v30  ;;  %v1325_v25 = vld [vmem:[%s9698_s29] sm:$0xff]  ;;  %v1326_v22 = vld [vmem:[%s9698_s29 + $0x8] sm:$0xff] }
 0x21d   :  { %v1133_v8 = vpop.permute.xlu0 %1132  ;;  %v1068_v21 = vpop.permute.xlu1 %1067  ;;  %v1028_v56 = vadd.f32 %v1011_v13, %v961_v52  ;;  %v963_v2 = vadd.f32 %v7969_v29, %v896_v44  ;;  %v9693_v61 = vsub.s32 6, %v9645_v5  ;;  %v1224_v3 = vadd.f32 %v1223_v18, %v1216_v20  ;;  %v1327_v52 = vld [vmem:[%s9698_s29 + $0x10] sm:$0xff] }
 0x21e   :  { %v1144_v42 = vsel %vm9526_vm14, %v1131_v60, %v1133_v8  ;;  %v1078_v7 = vsel %vm9530_vm13, %v1066_v14, %v1068_v21  ;;  %v962_v54 = vadd.f32 %v945_v12, %v895_v47  ;;  %v1218_v50 = vmul.f32 %v9695_v46, %v8037_v27 }
 0x21f   :  { %v8047_v11 = vadd.f32 %v1144_v42, %v1094_v35  ;;  %v8054_v55 = vrot.slane %v9694_v49, %v9693_v61  ;;  %v1095_v6 = vadd.f32 %v1078_v7, %v1028_v56  ;;  %v1030_v59 = vadd.f32 %v1003_v30, %v963_v2  ;;  %v1328_v35 = vld [vmem:[%s9698_s29 + $0x18] sm:$0xff] }
 0x220   :  { %v1225_v40 = vadd.f32 %v1224_v3, %v1217_v4  ;;  %v1029_v41 = vadd.f32 %v1012_v63, %v962_v54  ;;  %v9697_v24 = vsub.s32 7, %v9645_v5  ;;  %v1286_v5 = vld [vmem:[%s9408_s24] sm:$0xff]  ;;  %v6701_v13 = vmov 0.0|0.0  }
 0x221   :  { %v1135_v14 = vpop.permute.xlu0 %1134  ;;  %v1070_v32 = vpop.permute.xlu1 %1069  ;;  %v1219_v28 = vmul.f32 %v9696_v34, %v8047_v11  ;;  %6057 = vmatprep.subr.bf16.mxu0 %v6701_v13  ;;  %v8087_v20 = vpack.c.bf16 %v1326_v22, %v1325_v25  ;;  %6082 = vmatprep.subr.bf16.mxu1 %v6701_v13  ;;  %v1339_v25 = vld [vmem:[%s9698_s29 + $0x70] sm:$0xff]  ;;  %v1340_v22 = vld [vmem:[%s9698_s29 + $0x78] sm:$0x7f]  ;;  %vm6704_vm12 = vmmov 1   ;;  %vm2007_vm9 = vcmask 375808  }
 0x222   :  { %v1145_v0 = vsel %vm9526_vm14, %v1133_v8, %v1135_v14  ;;  %v1079_v29 = vsel %vm9530_vm13, %v1068_v21, %v1070_v32  ;;  %v1097_v36 = vadd.f32 %v1070_v32, %v1030_v59  ;;  %v1226_v10 = vadd.f32 %v1225_v40, %v1218_v50 }
 0x223   :  { %v1162_v57 = vadd.f32 %v1145_v0, %v1095_v6  ;;  %v1096_v31 = vadd.f32 %v1079_v29, %v1029_v41  ;;  %v8071_v53 = vrot.slane %v9694_v49, %v9697_v24  ;;  %6059 = vmatpush3.bf16.msra.mxu0 %v8087_v20  ;;  %v8097_v8 = vpack.c.bf16 %v1328_v35, %v1327_v52  ;;  %v1331_v24 = vld [vmem:[%s9698_s29 + $0x30] sm:$0xff] }
 0x224   :  { %v1227_v62 = vadd.f32 %v1226_v10, %v1219_v28  ;;  %6084 = vmatpush3.bf16.msra.mxu1 %v8087_v20  ;;  %6060 = vmatprep.subr.bf16.mxu0 %v6701_v13  ;;  %v9699_v21 = vmov 2   ;;  %v8230_v52 = vpack.c.bf16 %v1340_v22, %v1339_v25  ;;  %vm2009_vm8 = vcmask 613376  }
 0x225   :  { %v1220_v15 = vmul.f32 %v8054_v55, %v1162_v57  ;;  %v1137_v48 = vpop.permute.xlu1 %1136  ;;  %6085 = vmatprep.subr.bf16.mxu1 %v6701_v13  ;;  %vm2013_vm7 = vcmask 64512  }
 0x226   :  { %v1146_v30 = vsel %vm9526_vm14, %v1135_v14, %v1137_v48  ;;  %v1164_v60 = vadd.f32 %v1137_v48, %v1097_v36  ;;  %v1333_v48 = vld [vmem:[%s9698_s29 + $0x40] sm:$0xff]  ;;  %vm9529_vm14 = vcmask 1046528  }
 0x227   :  { %v1163_v51 = vadd.f32 %v1146_v30, %v1096_v31  ;;  %v1228_v39 = vadd.f32 %v1227_v62, %v1220_v15  ;;  %6062 = vmatpush3.bf16.msra.mxu0 %v8097_v8  ;;  %v1301_v31 = vld [vmem:[%s9409_s25] sm:$0xff]  ;;  %v6703_v62 = vmov 0.0   ;;  %vm8235_vm10 = vmpackc.low %vm9529_vm14, %vm6704_vm12  ;;  %vm1502_vm14 = vcmask 818176  }
 0x228   :  { %v1222_v16 = vmul.f32 %v8066_v45, %v1164_v60  ;;  %6087 = vmatpush3.bf16.msra.mxu1 %v8097_v8  ;;  %6063 = vmatprep.subr.bf16.mxu0 %v6701_v13 }
 0x229   :  { %v1221_v9 = vmul.f32 %v8071_v53, %v1163_v51  ;;  %6088 = vmatprep.subr.bf16.mxu1 %v6701_v13 }
 0x22a   :  { %v1231_v26 = vsel %vm1230_vm15, %v1222_v16, 0.0  ;;  %v9700_v16 = vmov 1  }
 0x22b   :  { %v1229_v1 = vadd.f32 %v1228_v39, %v1221_v9  ;;  %v1335_v9 = vld [vmem:[%s9698_s29 + $0x50] sm:$0xff]  ;;  %v1336_v39 = vld [vmem:[%s9698_s29 + $0x58] sm:$0xff] }
 0x22d   :  { %v1232_v18 = vadd.f32 %v1231_v26, %v1229_v1  ;;  %v8206_v1 = vpack.c.bf16 %v1336_v39, %v1335_v9  ;;  %v1337_v26 = vld [vmem:[%s9698_s29 + $0x60] sm:$0xff] }
 0x22f   :  { %1233 = vadd.xlane.f32.xlu0 %v1232_v18  ;;  %v1338_v18 = vld [vmem:[%s9698_s29 + $0x68] sm:$0xff] }
 0x245   :  { %1289 = vperm.xlu0 %6464, %v1286_v5   ;;  %v8218_v5 = vpack.c.bf16 %v1338_v18, %v1337_v26 }
 0x249   :  { %6466 = vset.pattern.permute.xlu0 %v9699_v21 }
 0x2bc   :  { %v1234_v44 = vpop.xlane.xlu0 %1233 }
 0x2bd   :  { %v1235_v12 = vmul.f32 0.000984252, %v1234_v44 }
 0x2bf   :  { %v8108_v42 = vsub.f32 %v7983_v38, %v1235_v12  ;;  %v8111_v7 = vsub.f32 %v7985_v23, %v1235_v12  ;;  %v8114_v47 = vsub.f32 %v8020_v19, %v1235_v12  ;;  %v8117_v4 = vsub.f32 %v8028_v17, %v1235_v12 }
 0x2c0   :  { %v8120_v56 = vsub.f32 %v8037_v27, %v1235_v12  ;;  %v8129_v23 = vsub.f32 %v8047_v11, %v1235_v12  ;;  %v8135_v61 = vsub.f32 %v1162_v57, %v1235_v12  ;;  %v8140_v50 = vsub.f32 %v1164_v60, %v1235_v12  ;;  %v1334_v60 = vld [vmem:[%s9698_s29 + $0x48] sm:$0xff] }
 0x2c1   :  { %v1245_v2 = vmul.f32 %v8108_v42, %v8108_v42  ;;  %v1246_v63 = vmul.f32 %v8111_v7, %v8111_v7  ;;  %v1247_v38 = vmul.f32 %v8114_v47, %v8114_v47  ;;  %v1248_v19 = vmul.f32 %v8117_v4, %v8117_v4 }
 0x2c2   :  { %v1249_v49 = vmul.f32 %v8120_v56, %v8120_v56  ;;  %v8142_v6 = vsub.f32 %v1163_v51, %v1235_v12  ;;  %v1250_v11 = vmul.f32 %v8129_v23, %v8129_v23  ;;  %v8193_v51 = vpack.c.bf16 %v1334_v60, %v1333_v48 }
 0x2c3   :  { %v1254_v17 = vmul.f32 %v1245_v2, %v7770_v33  ;;  %v1255_v27 = vmul.f32 %v1246_v63, %v7775_v58  ;;  %v1256_v3 = vmul.f32 %v1247_v38, %v7803_v43  ;;  %v1257_v14 = vmul.f32 %v1248_v19, %v7831_v37 }
 0x2c4   :  { %v1251_v58 = vmul.f32 %v8135_v61, %v8135_v61  ;;  %v1258_v32 = vmul.f32 %v1249_v49, %v9695_v46  ;;  %v1253_v43 = vmul.f32 %v8140_v50, %v8140_v50  ;;  %v1252_v0 = vmul.f32 %v8142_v6, %v8142_v6  ;;  %v8251_v38 = vpop.permute.xlu0 %1289 }
 0x2c5   :  { %v1263_v54 = vadd.f32 %v1255_v27, %v1254_v17  ;;  %v1259_v29 = vmul.f32 %v1250_v11, %v9696_v34  ;;  %v1329_v34 = vld [vmem:[%s9698_s29 + $0x20] sm:$0xff] }
 0x2c6   :  { %v1260_v41 = vmul.f32 %v1251_v58, %v8054_v55  ;;  %v1262_v37 = vmul.f32 %v8066_v45, %v1253_v43  ;;  %v1261_v57 = vmul.f32 %v1252_v0, %v8071_v53  ;;  %v1330_v55 = vld [vmem:[%s9698_s29 + $0x28] sm:$0xff]  ;;  %v1332_v53 = vld [vmem:[%s9698_s29 + $0x38] sm:$0xff]  ;;  %s6705_s29 = smov 72  }
 0x2c7   :  { %v1264_v33 = vadd.f32 %v1263_v54, %v1256_v3  ;;  %v8168_v45 = vpack.c.bf16 %v1330_v55, %v1329_v34  ;;  %v8182_v30 = vpack.c.bf16 %v1332_v53, %v1331_v24 }
 0x2c8   :  { %v1270_v46 = vsel %vm1230_vm15, %v1262_v37, 0.0  ;;  %vm9531_vm15 = vmmov 0  }
 0x2c9   :  { %v1265_v59 = vadd.f32 %v1264_v33, %v1257_v14  ;;  %6065 = vmatpush3.bf16.msra.mxu0 %v8168_v45  ;;  %6090 = vmatpush3.bf16.msra.mxu1 %v8168_v45 }
 0x2ca   :  { %6066 = vmatprep.subr.bf16.mxu0 %v6701_v13  ;;  %6091 = vmatprep.subr.bf16.mxu1 %v6701_v13 }
 0x2cb   :  { %v1266_v40 = vadd.f32 %v1265_v59, %v1258_v32  ;;  %5642 = vmatprep.mubr.msk.f32.mxu0 %vm9531_vm15, %v6703_v62  ;;  %5677 = vmatprep.mubr.msk.f32.mxu1 %vm9531_vm15, %v6703_v62 }
 0x2cd   :  { %v1267_v28 = vadd.f32 %v1266_v40, %v1259_v29  ;;  %6068 = vmatpush3.bf16.msra.mxu0 %v8182_v30  ;;  %6093 = vmatpush3.bf16.msra.mxu1 %v8182_v30 }
 0x2ce   :  { %6069 = vmatprep.subr.bf16.mxu0 %v6701_v13  ;;  %6094 = vmatprep.subr.bf16.mxu1 %v6701_v13 }
 0x2cf   :  { %v1268_v36 = vadd.f32 %v1267_v28, %v1260_v41 }
 0x2d1   :  { %v1269_v10 = vadd.f32 %v1268_v36, %v1261_v57  ;;  %6071 = vmatpush3.bf16.msra.mxu0 %v8193_v51  ;;  %6096 = vmatpush3.bf16.msra.mxu1 %v8193_v51 }
 0x2d2   :  { %6072 = vmatprep.subr.bf16.mxu0 %v6701_v13  ;;  %6097 = vmatprep.subr.bf16.mxu1 %v6701_v13 }
 0x2d3   :  { %v1271_v15 = vadd.f32 %v1270_v46, %v1269_v10 }
 0x2d5   :  { %1272 = vadd.xlane.f32.xlu1 %v1271_v15  ;;  %6074 = vmatpush3.bf16.msra.mxu0 %v8206_v1 }
 0x2d6   :  { %6075 = vmatprep.subr.bf16.mxu0 %v6701_v13  ;;  %6099 = vmatpush3.bf16.msra.mxu1 %v8206_v1 }
 0x2d7   :  { %6100 = vmatprep.subr.bf16.mxu1 %v6701_v13 }
 0x2d9   :  { %6077 = vmatpush3.bf16.msra.mxu0 %v8218_v5 }
 0x2da   :  { %6078 = vmatprep.subr.bf16.mxu0 %v6701_v13  ;;  %6102 = vmatpush3.bf16.msra.mxu1 %v8218_v5 }
 0x2db   :  { %6103 = vmatprep.subr.bf16.mxu1 %v6701_v13 }
 0x2dd   :  { %6081 = vmatpush3.bf16.msk.msra.mxu0 %vm8235_vm10, %v8230_v52 }
 0x2de   :  { %6107 = vmatprep.subr.bf16.mxu0 %v6701_v13  ;;  %6106 = vmatpush3.bf16.msk.msra.mxu1 %vm8235_vm10, %v8230_v52 }
 0x2df   :  { %6132 = vmatprep.subr.bf16.mxu1 %v6701_v13 }
 0x2e6   :  { %1304 = vperm.xlu1 %6463, %v1301_v31  }
 0x2ea   :  { %6465 = vset.pattern.permute.xlu1 %v9700_v16 }
 0x362   :  { %v1273_v44 = vpop.xlane.xlu1 %1272 }
 0x363   :  { %v1274_v12 = vmul.f32 0.000984252, %v1273_v44 }
 0x365   :  { %v1275_v2 = vadd.f32 1e-05, %v1274_v12 }
 0x366   :  { %v1305_v33 = vpop.permute.xlu1 %1304 }
 0x367   :  { %6521 = vrsqrt.f32 %v1275_v2 }
 0x371   :  { %v8249_v63 = vpop.eup %6521 }
 0x372   :  { %v1281_v19 = vmul.f32 %v8249_v63, %v8120_v56  ;;  %v1278_v17 = vmul.f32 %v8249_v63, %v8111_v7  ;;  %v1277_v27 = vmul.f32 %v8249_v63, %v8108_v42  ;;  %v1282_v49 = vmul.f32 %v8249_v63, %v8129_v23 }
 0x373   :  { %v1279_v3 = vmul.f32 %v8249_v63, %v8114_v47  ;;  %v1283_v54 = vmul.f32 %v8249_v63, %v8135_v61  ;;  %v1284_v61 = vmul.f32 %v8249_v63, %v8142_v6  ;;  %v1280_v43 = vmul.f32 %v8249_v63, %v8117_v4 }
 0x374   :  { %v1296_v11 = vmul.f32 %v8251_v38, %v1281_v19  ;;  %v1293_v14 = vmul.f32 %v8251_v38, %v1278_v17  ;;  %v1292_v56 = vmul.f32 %v8251_v38, %v1277_v27  ;;  %v1297_v7 = vmul.f32 %v8251_v38, %v1282_v49 }
 0x375   :  { %v1294_v42 = vmul.f32 %v8251_v38, %v1279_v3  ;;  %v1298_v47 = vmul.f32 %v8251_v38, %v1283_v54  ;;  %v1299_v28 = vmul.f32 %v8251_v38, %v1284_v61  ;;  %v1295_v6 = vmul.f32 %v8251_v38, %v1280_v43 }
 0x376   :  { %v1311_v58 = vadd.f32 %v1305_v33, %v1296_v11  ;;  %v1308_v32 = vadd.f32 %v1305_v33, %v1293_v14  ;;  %v1307_v23 = vadd.f32 %v1305_v33, %v1292_v56  ;;  %v1312_v59 = vadd.f32 %v1305_v33, %v1297_v7 }
 0x377   :  { %v1309_v41 = vadd.f32 %v1305_v33, %v1294_v42  ;;  %v1313_v36 = vadd.f32 %v1305_v33, %v1298_v47  ;;  %v1314_v10 = vadd.f32 %v1305_v33, %v1299_v28  ;;  %v1310_v46 = vadd.f32 %v1305_v33, %v1295_v6 }
 0x378   :  { %v1320_v0 = vmax.f32 %v1311_v58, 0.0  ;;  %v1317_v29 = vmax.f32 %v1308_v32, 0.0  ;;  %v1316_v40 = vmax.f32 %v1307_v23, 0.0  ;;  %v1321_v37 = vmax.f32 %v1312_v59, 0.0 }
 0x379   :  { %v1318_v57 = vmax.f32 %v1309_v41, 0.0  ;;  %v1322_v4 = vmax.f32 %v1313_v36, 0.0  ;;  %v1323_v15 = vmax.f32 %v1314_v10, 0.0  ;;  %v1319_v31 = vmax.f32 %v1310_v46, 0.0 }
 0x37a   :  { %1656 = vrot.lane.b32.xlu0 %v1320_v0, %s6705_s29  ;;  %1420 = vrot.lane.b32.xlu1 %v1317_v29, %s9544_s30  ;;  %v1285_v34 = vmul.f32 %v8249_v63, %v8140_v50  ;;  %v9704_v47 = vmov 3   ;;  %v9705_v61 = vmov 4   ;;  %v9706_v43 = vmov 5  }
 0x37b   :  { %5643 = vmatmul.mubr.msk.f32.vlgmr.msra.gmra.mrb[0].mxu0 %vm200_vm0, %v1316_v40  ;;  %v9708_v29 = vmov 7   ;;  %v9709_v40 = vmov 10   ;;  %v9710_v41 = vmov 8   ;;  %v9711_v28 = vmov 9  }
 0x37c   :  { %6109 = vmatpush3.bf16.msra.mxu0 %v8087_v20  ;;  %5712 = vmatprep.mubr.msk.f32.mxu0 %vm9531_vm15, %v6703_v62  ;;  %v1300_v55 = vmul.f32 %v8251_v38, %v1285_v34  ;;  %v9714_v36 = vmov 0   ;;  %v9715_v6 = vmov 12   ;;  %v9717_v10 = vmov 15  }
 0x37d   :  { %6110 = vmatprep.subr.bf16.mxu0 %v6701_v13 }
 0x37e   :  { %1735 = vrot.lane.b32.xlu0 %v1321_v37, %s6706_s8  ;;  %1422 = vrot.lane.b32.xlu1 %v1318_v57, %s9544_s30  ;;  %v1315_v24 = vadd.f32 %v1305_v33, %v1300_v55 }
 0x380   :  { %6112 = vmatpush3.bf16.msra.mxu0 %v8097_v8  ;;  %v1324_v50 = vmax.f32 %v1315_v24, 0.0 }
 0x381   :  { %6113 = vmatprep.subr.bf16.mxu0 %v6701_v13 }
 0x382   :  { %1814 = vrot.lane.b32.xlu0 %v1322_v4, %s6707_s4  ;;  %1498 = vrot.lane.b32.xlu1 %v1318_v57, %s9536_s0  ;;  %v9713_v57 = vmov 14  }
 0x384   :  { %6115 = vmatpush3.bf16.msra.mxu0 %v8168_v45 }
 0x385   :  { %6116 = vmatprep.subr.bf16.mxu0 %v6701_v13 }
 0x386   :  { %1893 = vrot.lane.b32.xlu0 %v1323_v15, %s6709_s3  ;;  %1500 = vrot.lane.b32.xlu1 %v1319_v31, %s9536_s0  ;;  %s9722_s0 = smov 120  }
 0x388   :  { %6118 = vmatpush3.bf16.msra.mxu0 %v8182_v30 }
 0x389   :  { %6119 = vmatprep.subr.bf16.mxu0 %v6701_v13 }
 0x38a   :  { %1577 = vrot.lane.b32.xlu1 %v1319_v31, %s6710_s9 }
 0x38c   :  { %6121 = vmatpush3.bf16.msra.mxu0 %v8193_v51 }
 0x38d   :  { %6122 = vmatprep.subr.bf16.mxu0 %v6701_v13 }
 0x38e   :  { %1579 = vrot.lane.b32.xlu1 %v1320_v0, %s6710_s9  ;;  %v9707_v0 = vmov 6   ;;  %s9720_s9 = smov 122  }
 0x390   :  { %6124 = vmatpush3.bf16.msra.mxu0 %v8206_v1 }
 0x391   :  { %6125 = vmatprep.subr.bf16.mxu0 %v6701_v13 }
 0x392   :  { %1658 = vrot.lane.b32.xlu1 %v1321_v37, %s6705_s29  ;;  %s6714_s29 = smov 46   ;;  %v9712_v37 = vmov 11  }
 0x394   :  { %6127 = vmatpush3.bf16.msra.mxu0 %v8218_v5 }
 0x395   :  { %6128 = vmatprep.subr.bf16.mxu0 %v6701_v13 }
 0x396   :  { %1737 = vrot.lane.b32.xlu1 %v1322_v4, %s6706_s8  ;;  %v9716_v4 = vmov 13  }
 0x398   :  { %6131 = vmatpush3.bf16.msk.msra.mxu0 %vm8235_vm10, %v8230_v52 }
 0x399   :  { %6157 = vmatprep.subr.bf16.mxu0 %v6701_v13 }
 0x39a   :  { %1816 = vrot.lane.b32.xlu1 %v1323_v15, %s6707_s4  ;;  %s9718_s4 = sld [smem:[#allocation65_spill]] }
 0x39e   :  { %1895 = vrot.lane.b32.xlu1 %v1324_v50, %s6709_s3  ;;  %s9727_s3 = smov 113  }
 0x3ec   :  { %v1421_v53 = vpop.permute.xlu1 %1420  ;;  %v1657_v12 = vpop.permute.xlu0 %1656 }
 0x3f0   :  { %v1423_v48 = vpop.permute.xlu1 %1422  ;;  %v1736_v38 = vpop.permute.xlu0 %1735 }
 0x3f1   :  { %v1424_v60 = vsel %vm9530_vm13, %v1421_v53, %v1423_v48  ;;  %vm1660_vm13 = vcmask 588800  }
 0x3f2   :  { %5678 = vmatmul.mubr.msk.f32.vlgmr.msra.gmra.mrb[0].mxu1 %vm200_vm0, %v1424_v60 }
 0x3f3   :  { %6134 = vmatpush3.bf16.msra.mxu1 %v8087_v20  ;;  %5747 = vmatprep.mubr.msk.f32.mxu1 %vm9531_vm15, %v6703_v62 }
 0x3f4   :  { %v1499_v9 = vpop.permute.xlu1 %1498  ;;  %6135 = vmatprep.subr.bf16.mxu1 %v6701_v13  ;;  %v1815_v27 = vpop.permute.xlu0 %1814 }
 0x3f7   :  { %6137 = vmatpush3.bf16.msra.mxu1 %v8097_v8 }
 0x3f8   :  { %v1501_v39 = vpop.permute.xlu1 %1500  ;;  %6138 = vmatprep.subr.bf16.mxu1 %v6701_v13 }
 0x3f9   :  { %v1503_v26 = vsel %vm1502_vm14, %v1499_v9, %v1501_v39  ;;  %vm1581_vm14 = vcmask 703488  }
 0x3fa   :  { %5713 = vmatmul.mubr.msk.f32.vlgmr.msra.gmra.mrb[2].mxu0 %vm200_vm0, %v1503_v26 }
 0x3fb   :  { %6140 = vmatpush3.bf16.msra.mxu1 %v8168_v45  ;;  %6159 = vmatpush3.bf16.msra.mxu0 %v8087_v20 }
 0x3fc   :  { %6141 = vmatprep.subr.bf16.mxu1 %v6701_v13  ;;  %6160 = vmatprep.subr.bf16.mxu0 %v6701_v13  ;;  %v1578_v18 = vpop.permute.xlu1 %1577 }
 0x3fd   :  { %5782 = vmatprep.mubr.msk.f32.mxu0 %vm9531_vm15, %v6703_v62 }
 0x3ff   :  { %6143 = vmatpush3.bf16.msra.mxu1 %v8182_v30  ;;  %6162 = vmatpush3.bf16.msra.mxu0 %v8097_v8 }
 0x400   :  { %6144 = vmatprep.subr.bf16.mxu1 %v6701_v13  ;;  %6163 = vmatprep.subr.bf16.mxu0 %v6701_v13  ;;  %v1580_v25 = vpop.permute.xlu1 %1579 }
 0x401   :  { %v1582_v22 = vsel %vm1581_vm14, %v1578_v18, %v1580_v25  ;;  %vm1818_vm14 = vcmask 359424   ;;  %v2011_v18 = vld [vmem:[%s9718_s4] sm:$0xff] }
 0x403   :  { %6146 = vmatpush3.bf16.msra.mxu1 %v8193_v51  ;;  %6165 = vmatpush3.bf16.msra.mxu0 %v8168_v45 }
 0x404   :  { %6147 = vmatprep.subr.bf16.mxu1 %v6701_v13  ;;  %6166 = vmatprep.subr.bf16.mxu0 %v6701_v13  ;;  %v1659_v44 = vpop.permute.xlu1 %1658 }
 0x405   :  { %v1661_v2 = vsel %vm1660_vm13, %v1657_v12, %v1659_v44  ;;  %vm1739_vm13 = vcmask 474112  }
 0x407   :  { %6149 = vmatpush3.bf16.msra.mxu1 %v8206_v1  ;;  %6168 = vmatpush3.bf16.msra.mxu0 %v8182_v30 }
 0x408   :  { %6150 = vmatprep.subr.bf16.mxu1 %v6701_v13  ;;  %6169 = vmatprep.subr.bf16.mxu0 %v6701_v13  ;;  %v1738_v63 = vpop.permute.xlu1 %1737 }
 0x409   :  { %v1740_v19 = vsel %vm1739_vm13, %v1736_v38, %v1738_v63 }
 0x40b   :  { %6152 = vmatpush3.bf16.msra.mxu1 %v8218_v5  ;;  %6171 = vmatpush3.bf16.msra.mxu0 %v8193_v51 }
 0x40c   :  { %6153 = vmatprep.subr.bf16.mxu1 %v6701_v13  ;;  %6172 = vmatprep.subr.bf16.mxu0 %v6701_v13  ;;  %v1817_v17 = vpop.permute.xlu1 %1816 }
 0x40d   :  { %v1819_v49 = vsel %vm1818_vm14, %v1815_v27, %v1817_v17  ;;  %vm1897_vm14 = vcmask 244736  }
 0x40f   :  { %6156 = vmatpush3.bf16.msk.msra.mxu1 %vm8235_vm10, %v8230_v52  ;;  %6174 = vmatpush3.bf16.msra.mxu0 %v8206_v1 }
 0x410   :  { %6175 = vmatprep.subr.bf16.mxu0 %v6701_v13  ;;  %6182 = vmatprep.subr.bf16.mxu1 %v6701_v13 }
 0x412   :  { %5748 = vmatmul.mubr.msk.f32.vlgmr.msra.gmra.mrb[2].mxu1 %vm200_vm0, %v1582_v22  ;;  %v2012_v22 = vld [vmem:[%s9718_s4 + $0x8] sm:$0xff]  ;;  %s9721_s4 = smov 121  }
 0x413   :  { %6177 = vmatpush3.bf16.msra.mxu0 %v8218_v5  ;;  %6184 = vmatpush3.bf16.msra.mxu1 %v8087_v20 }
 0x414   :  { %6178 = vmatprep.subr.bf16.mxu0 %v6701_v13  ;;  %6185 = vmatprep.subr.bf16.mxu1 %v6701_v13 }
 0x415   :  { %5817 = vmatprep.mubr.msk.f32.mxu1 %vm9531_vm15, %v6703_v62 }
 0x417   :  { %6181 = vmatpush3.bf16.msk.msra.mxu0 %vm8235_vm10, %v8230_v52  ;;  %6187 = vmatpush3.bf16.msra.mxu1 %v8097_v8 }
 0x418   :  { %6188 = vmatprep.subr.bf16.mxu1 %v6701_v13  ;;  %6207 = vmatprep.subr.bf16.mxu0 %v6701_v13 }
 0x41a   :  { %5783 = vmatmul.mubr.msk.f32.vlgmr.msra.gmra.mrb[4].mxu0 %vm200_vm0, %v1661_v2 }
 0x41b   :  { %6190 = vmatpush3.bf16.msra.mxu1 %v8168_v45  ;;  %6209 = vmatpush3.bf16.msra.mxu0 %v8087_v20 }
 0x41c   :  { %6191 = vmatprep.subr.bf16.mxu1 %v6701_v13  ;;  %6210 = vmatprep.subr.bf16.mxu0 %v6701_v13 }
 0x41d   :  { %5852 = vmatprep.mubr.msk.f32.mxu0 %vm9531_vm15, %v6703_v62 }
 0x41f   :  { %6193 = vmatpush3.bf16.msra.mxu1 %v8182_v30  ;;  %6212 = vmatpush3.bf16.msra.mxu0 %v8097_v8 }
 0x420   :  { %6194 = vmatprep.subr.bf16.mxu1 %v6701_v13  ;;  %6213 = vmatprep.subr.bf16.mxu0 %v6701_v13 }
 0x423   :  { %6196 = vmatpush3.bf16.msra.mxu1 %v8193_v51  ;;  %6215 = vmatpush3.bf16.msra.mxu0 %v8168_v45 }
 0x424   :  { %6197 = vmatprep.subr.bf16.mxu1 %v6701_v13  ;;  %6216 = vmatprep.subr.bf16.mxu0 %v6701_v13 }
 0x427   :  { %6199 = vmatpush3.bf16.msra.mxu1 %v8206_v1  ;;  %6218 = vmatpush3.bf16.msra.mxu0 %v8182_v30 }
 0x428   :  { %6200 = vmatprep.subr.bf16.mxu1 %v6701_v13  ;;  %6219 = vmatprep.subr.bf16.mxu0 %v6701_v13 }
 0x42b   :  { %6202 = vmatpush3.bf16.msra.mxu1 %v8218_v5  ;;  %6221 = vmatpush3.bf16.msra.mxu0 %v8193_v51 }
 0x42c   :  { %6203 = vmatprep.subr.bf16.mxu1 %v6701_v13  ;;  %6222 = vmatprep.subr.bf16.mxu0 %v6701_v13 }
 0x42f   :  { %6206 = vmatpush3.bf16.msk.msra.mxu1 %vm8235_vm10, %v8230_v52  ;;  %6224 = vmatpush3.bf16.msra.mxu0 %v8206_v1 }
 0x430   :  { %6225 = vmatprep.subr.bf16.mxu0 %v6701_v13  ;;  %6232 = vmatprep.subr.bf16.mxu1 %v6701_v13 }
 0x432   :  { %5818 = vmatmul.mubr.msk.f32.vlgmr.msra.gmra.mrb[4].mxu1 %vm200_vm0, %v1740_v19 }
 0x433   :  { %6227 = vmatpush3.bf16.msra.mxu0 %v8218_v5  ;;  %6234 = vmatpush3.bf16.msra.mxu1 %v8087_v20  ;;  %v1896_v20 = vpop.permute.xlu1 %1895 }
 0x434   :  { %6228 = vmatprep.subr.bf16.mxu0 %v6701_v13  ;;  %6235 = vmatprep.subr.bf16.mxu1 %v6701_v13 }
 0x435   :  { %5887 = vmatprep.mubr.msk.f32.mxu1 %vm9531_vm15, %v6703_v62  ;;  %vm2005_vm15 = vcmask 138240  }
 0x437   :  { %6231 = vmatpush3.bf16.msk.msra.mxu0 %vm8235_vm10, %v8230_v52  ;;  %6237 = vmatpush3.bf16.msra.mxu1 %v8097_v8 }
 0x438   :  { %6238 = vmatprep.subr.bf16.mxu1 %v6701_v13 }
 0x43a   :  { %5853 = vmatmul.mubr.msk.f32.vlgmr.msra.gmra.mrb[6].mxu0 %vm200_vm0, %v1819_v49 }
 0x43b   :  { %6240 = vmatpush3.bf16.msra.mxu1 %v8168_v45  ;;  %2084 = vmatprep.mubr.f32.mxu0 %v6703_v62 }
 0x43c   :  { %6241 = vmatprep.subr.bf16.mxu1 %v6701_v13 }
 0x43f   :  { %6243 = vmatpush3.bf16.msra.mxu1 %v8182_v30  ;;  %v1894_v30 = vpop.permute.xlu0 %1893 }
 0x440   :  { %6244 = vmatprep.subr.bf16.mxu1 %v6701_v13 }
 0x443   :  { %6246 = vmatpush3.bf16.msra.mxu1 %v8193_v51  ;;  %v1898_v51 = vsel %vm1897_vm14, %v1894_v30, %v1896_v20  ;;  %vm2002_vm14 = vcmask 711680  }
 0x444   :  { %6247 = vmatprep.subr.bf16.mxu1 %v6701_v13 }
 0x447   :  { %6249 = vmatpush3.bf16.msra.mxu1 %v8206_v1 }
 0x448   :  { %6250 = vmatprep.subr.bf16.mxu1 %v6701_v13 }
 0x44b   :  { %6252 = vmatpush3.bf16.msra.mxu1 %v8218_v5 }
 0x44c   :  { %6253 = vmatprep.subr.bf16.mxu1 %v6701_v13 }
 0x44e   :  { %v8413_v8 = vpop.f32.mrb[0].mxu0 }
 0x44f   :  { %v5644_v45 = vpop.f32.mrb[1].mxu0  ;;  %6256 = vmatpush3.bf16.msk.msra.mxu1 %vm8235_vm10, %v8230_v52  ;;  %vm1999_vm10 = vcmask 236544  }
 0x450   :  { %6257 = vmatprep.subr.bf16.mxu1 %v6701_v13 }
 0x452   :  { %5888 = vmatmul.mubr.msk.f32.vlgmr.msra.gmra.mrb[6].mxu1 %vm200_vm0, %v1898_v51 }
 0x4c5   :  { %v1493_v1 = vpop.f32.mrb[0].mxu1 }
 0x4c6   :  { %1972 = vrot.lane.b32.xlu0 %v1493_v1, %s6711_s27  ;;  %v5679_v5 = vpop.f32.mrb[1].mxu1  ;;  %s5325_s27 = sld [smem:[#allocation2 + $0x8]] }
 0x4cd   :  { %v1572_v3 = vpop.f32.mrb[2].mxu0 }
 0x4ce   :  { %1976 = vrot.lane.b32.xlu1 %v1572_v3, %s6706_s8  ;;  %v5714_v54 = vpop.f32.mrb[3].mxu0  ;;  %s9703_s8 = sld [smem:[#allocation66_spill]] }
 0x4d4   :  { %v2125_v58 = vld [vmem:[%s9703_s8] sm:$0xff]  ;;  %v2126_v32 = vld [vmem:[%s9703_s8 + $0x8] sm:$0xff]  ;;  %s9730_s8 = smov 123  }
 0x4e5   :  { %v1651_v11 = vpop.f32.mrb[2].mxu1 }
 0x4e6   :  { %v5749_v14 = vpop.f32.mrb[3].mxu1 }
 0x4ed   :  { %v1730_v56 = vpop.f32.mrb[4].mxu0 }
 0x4ee   :  { %1984 = vrot.lane.b32.xlu1 %v1730_v56, %s6697_s11  ;;  %v5784_v52 = vpop.f32.mrb[5].mxu0 }
 0x4f2   :  { %1980 = vrot.lane.b32.xlu1 %v1651_v11, %s6712_s7  ;;  %s6715_s7 = smov 75  }
 0x4f6   :  { %2142 = vperm.xlu1 %6465, %v2125_v58  }
 0x4fa   :  { %2146 = vperm.xlu1 %6465, %v2126_v32  }
 0x4fe   :  { %6467 = vset.pattern.permute.xlu1 %v9704_v47 }
 0x4ff   :  { %2210 = vperm.xlu1 %6467, %v2125_v58  }
 0x503   :  { %6468 = vset.pattern.permute.xlu1 %v9705_v61 }
 0x504   :  { %2244 = vperm.xlu1 %6468, %v2125_v58  }
 0x505   :  { %v1809_v35 = vpop.f32.mrb[4].mxu1 }
 0x506   :  { %1988 = vrot.lane.b32.xlu0 %v1809_v35, %s6713_s28  ;;  %v5819_v7 = vpop.f32.mrb[5].mxu1  ;;  %s9723_s28 = smov 119  }
 0x508   :  { %6470 = vset.pattern.permute.xlu1 %v9706_v43 }
 0x509   :  { %2278 = vperm.xlu1 %6470, %v2125_v58  }
 0x50d   :  { %v1888_v33 = vpop.f32.mrb[6].mxu0  ;;  %6471 = vset.pattern.permute.xlu1 %v9705_v61 }
 0x50e   :  { %1992 = vrot.lane.b32.xlu0 %v1888_v33, %s6714_s29  ;;  %v5854_v42 = vpop.f32.mrb[7].mxu0  ;;  %2248 = vperm.xlu1 %6471, %v2126_v32   ;;  %s9725_s29 = smov 117  }
 0x512   :  { %6473 = vset.pattern.permute.xlu1 %v9706_v43 }
 0x513   :  { %2282 = vperm.xlu1 %6473, %v2126_v32  }
 0x517   :  { %6474 = vset.pattern.permute.xlu1 %v9708_v29 }
 0x518   :  { %2346 = vperm.xlu1 %6474, %v2125_v58  }
 0x51c   :  { %6475 = vset.pattern.permute.xlu1 %v9710_v41 }
 0x51d   :  { %2380 = vperm.xlu1 %6475, %v2125_v58  }
 0x521   :  { %6477 = vset.pattern.permute.xlu1 %v9711_v28 }
 0x522   :  { %2414 = vperm.xlu1 %6477, %v2125_v58  }
 0x525   :  { %v1967_v23 = vpop.f32.mrb[6].mxu1 }
 0x526   :  { %v5889_v59 = vpop.f32.mrb[7].mxu1  ;;  %1996 = vrot.lane.b32.xlu0 %v1967_v23, %s6715_s7  ;;  %6478 = vset.pattern.permute.xlu1 %v9710_v41  ;;  %s9719_s7 = sld [smem:[#allocation67_spill]] }
 0x527   :  { %2384 = vperm.xlu1 %6478, %v2126_v32  }
 0x52a   :  { %2176 = vperm.xlu0 %6466, %v2125_v58  }
 0x52b   :  { %6480 = vset.pattern.permute.xlu1 %v9711_v28 }
 0x52c   :  { %2418 = vperm.xlu1 %6480, %v2126_v32   ;;  %v2651_v28 = vld [vmem:[%s9719_s7] sm:$0xff] }
 0x52e   :  { %2180 = vperm.xlu0 %6466, %v2126_v32  }
 0x530   :  { %6481 = vset.pattern.permute.xlu1 %v9712_v37 }
 0x531   :  { %2482 = vperm.xlu1 %6481, %v2125_v58  }
 0x532   :  { %6469 = vset.pattern.permute.xlu0 %v9704_v47 }
 0x533   :  { %2214 = vperm.xlu0 %6469, %v2126_v32  }
 0x535   :  { %6482 = vset.pattern.permute.xlu1 %v9715_v6 }
 0x536   :  { %2516 = vperm.xlu1 %6482, %v2125_v58  }
 0x537   :  { %6472 = vset.pattern.permute.xlu0 %v9707_v0 }
 0x538   :  { %2312 = vperm.xlu0 %6472, %v2125_v58   ;;  %v1973_v15 = vpop.permute.xlu0 %1972 }
 0x539   :  { %v2000_v50 = vsel %vm1999_vm10, %v8413_v8, %v1973_v15  ;;  %vm9735_vm10 = vcmask 957440  }
 0x53a   :  { %6484 = vset.pattern.permute.xlu1 %v9716_v4 }
 0x53b   :  { %2550 = vperm.xlu1 %6484, %v2125_v58  }
 0x53c   :  { %2316 = vperm.xlu0 %6472, %v2126_v32  }
 0x53f   :  { %6485 = vset.pattern.permute.xlu1 %v9715_v6  ;;  %v2653_v6 = vld [vmem:[%s9719_s7 + $0x10] sm:$0xff] }
 0x540   :  { %6476 = vset.pattern.permute.xlu0 %v9708_v29  ;;  %2520 = vperm.xlu1 %6485, %v2126_v32   ;;  %v1977_v46 = vpop.permute.xlu1 %1976 }
 0x541   :  { %2350 = vperm.xlu0 %6476, %v2126_v32   ;;  %v2001_v53 = vsel %vm1739_vm13, %v2000_v50, %v1977_v46  ;;  %vm9734_vm13 = vcmask 965632  }
 0x544   :  { %6487 = vset.pattern.permute.xlu1 %v9716_v4  ;;  %v2654_v4 = vld [vmem:[%s9719_s7 + $0x18] sm:$0xff] }
 0x545   :  { %6479 = vset.pattern.permute.xlu0 %v9709_v40  ;;  %2554 = vperm.xlu1 %6487, %v2126_v32  }
 0x546   :  { %2448 = vperm.xlu0 %6479, %v2125_v58  }
 0x549   :  { %6488 = vset.pattern.permute.xlu1 %v9717_v10 }
 0x54a   :  { %2452 = vperm.xlu0 %6479, %v2126_v32   ;;  %2618 = vperm.xlu1 %6488, %v2125_v58  }
 0x54e   :  { %6483 = vset.pattern.permute.xlu0 %v9712_v37  ;;  %2622 = vperm.xlu1 %6488, %v2126_v32   ;;  %v2652_v37 = vld [vmem:[%s9719_s7 + $0x8] sm:$0xff] }
 0x54f   :  { %2486 = vperm.xlu0 %6483, %v2126_v32   ;;  %v6258_v46 = vpack.c.bf16 %v2652_v37, %v2651_v28  ;;  %v2666_v28 = vld [vmem:[%s9719_s7 + $0x78] sm:$0xff] }
 0x551   :  { %6259 = vmatpush1.bf16.msra.mxu1 %v6258_v46 }
 0x552   :  { %6490 = vset.pattern.permute.xlu1 %v9714_v36  ;;  %6260 = vmatprep.subr.bf16.mxu1 %v6701_v13 }
 0x553   :  { %6486 = vset.pattern.permute.xlu0 %v9713_v57  ;;  %2134 = vperm.xlu1 %6490, %v2126_v32  }
 0x554   :  { %2584 = vperm.xlu0 %6486, %v2125_v58  }
 0x558   :  { %2588 = vperm.xlu0 %6486, %v2126_v32  }
 0x55c   :  { %6489 = vset.pattern.permute.xlu0 %v9714_v36 }
 0x55d   :  { %2129 = vperm.xlu0 %6489, %v2125_v58  }
 0x560   :  { %v1985_v31 = vpop.permute.xlu1 %1984 }
 0x564   :  { %v1981_v55 = vpop.permute.xlu1 %1980 }
 0x565   :  { %v2003_v48 = vsel %vm2002_vm14, %v2001_v53, %v1981_v55  ;;  %v2655_v55 = vld [vmem:[%s9719_s7 + $0x20] sm:$0xff]  ;;  %vm9736_vm14 = vcmask 941056  }
 0x566   :  { %v2004_v25 = vsel %vm937_vm11, %v2003_v48, %v1985_v31 }
 0x575   :  { %v2143_v44 = vpop.permute.xlu1 %2142 }
 0x578   :  { %v1989_v34 = vpop.permute.xlu0 %1988 }
 0x579   :  { %v2006_v60 = vsel %vm2005_vm15, %v1985_v31, %v1989_v34  ;;  %v8462_v12 = vpop.permute.xlu1 %2146  ;;  %v6261_v34 = vpack.c.bf16 %v2654_v4, %v2653_v6  ;;  %vm9733_vm15 = vcmask 973824  }
 0x57b   :  { %6262 = vmatpush1.bf16.msra.mxu1 %v6261_v34  ;;  %v2667_v34 = vld [vmem:[%s9719_s7 + $0x80] sm:$0xff] }
 0x57c   :  { %6263 = vmatprep.subr.bf16.mxu1 %v6701_v13 }
 0x57e   :  { %v2211_v2 = vpop.permute.xlu1 %2210 }
 0x580   :  { %v1993_v24 = vpop.permute.xlu0 %1992 }
 0x581   :  { %v2008_v9 = vsel %vm2007_vm9, %v2006_v60, %v1993_v24  ;;  %v2656_v24 = vld [vmem:[%s9719_s7 + $0x28] sm:$0xff]  ;;  %vm9732_vm9 = vcmask 982016  }
 0x583   :  { %v2245_v27 = vpop.permute.xlu1 %2244 }
 0x588   :  { %v2279_v8 = vpop.permute.xlu1 %2278 }
 0x58d   :  { %v8468_v5 = vpop.permute.xlu1 %2248 }
 0x592   :  { %v8470_v3 = vpop.permute.xlu1 %2282 }
 0x597   :  { %v2347_v14 = vpop.permute.xlu1 %2346 }
 0x598   :  { %v1997_v39 = vpop.permute.xlu0 %1996 }
 0x599   :  { %v2010_v26 = vsel %vm2009_vm8, %v2008_v9, %v1997_v39  ;;  %v6264_v9 = vpack.c.bf16 %v2656_v24, %v2655_v55  ;;  %v2657_v39 = vld [vmem:[%s9719_s7 + $0x30] sm:$0xff]  ;;  %v2668_v55 = vld [vmem:[%s9719_s7 + $0x88] sm:$0xff] }
 0x59a   :  { %2020 = vmatprep.subr.mxu0 %v2010_v26  ;;  %v2658_v26 = vld [vmem:[%s9719_s7 + $0x38] sm:$0xff] }
 0x59b   :  { %2021 = vmatpush1.msra.mxu0 %v2004_v25  ;;  %6265 = vmatpush1.bf16.msra.mxu1 %v6264_v9 }
 0x59c   :  { %5295 = vmatmul.mubr.msk.f32.vlgmr.msra.gmra.mrb[8].mxu0 %vm2013_vm7, %v2011_v18  ;;  %v8476_v7 = vpop.permute.xlu1 %2380  ;;  %6266 = vmatprep.subr.bf16.mxu1 %v6701_v13 }
 0x59d   :  { %2090 = vmatprep.mubr.f32.mxu0 %v6703_v62 }
 0x5a0   :  { %5296 = vmatmul.mubr.msk.f32.gmra.mrb[10].mxu0 %vm2013_vm7, %v2012_v22  ;;  %vm2686_vm7 = vcmask 1040384  }
 0x5a1   :  { %v8486_v59 = vpop.permute.xlu1 %2414  ;;  %vm6298_vm8 = vmpackc.low %vm2686_vm7, %vm6704_vm12 }
 0x5a6   :  { %v8508_v10 = vpop.permute.xlu1 %2384 }
 0x5a9   :  { %v2177_v35 = vpop.permute.xlu0 %2176 }
 0x5ab   :  { %v8523_v60 = vpop.permute.xlu1 %2418 }
 0x5ad   :  { %v8482_v58 = vpop.permute.xlu0 %2180 }
 0x5b2   :  { %v8498_v57 = vpop.permute.xlu0 %2214 }
 0x5b7   :  { %v2313_v50 = vpop.permute.xlu0 %2312 }
 0x5bb   :  { %v8536_v22 = vpop.permute.xlu0 %2316 }
 0x66f   :  { %v2086_v63 = vpop.f32.mrb[8].mxu0 }
 0x670   :  { %v5297_v38 = vmul.f32 -1.442695, %v2086_v63  ;;  %v2088_v19 = vpop.f32.mrb[9].mxu0 }
 0x671   :  { %v5298_v17 = vmul.f32 -1.442695, %v2088_v19 }
 0x672   :  { %6523 = vpow2.f32 %v5297_v38  ;;  %v2659_v38 = vld [vmem:[%s9719_s7 + $0x40] sm:$0xff] }
 0x673   :  { %6525 = vpow2.f32 %v5298_v17  ;;  %v8464_v49 = vpop.f32.mrb[10].mxu0  ;;  %v2483_v17 = vpop.permute.xlu1 %2482 }
 0x674   :  { %v8466_v20 = vpop.f32.mrb[11].mxu0 }
 0x67c   :  { %v6524_v45 = vpop.eup %6523 }
 0x67d   :  { %v6526_v30 = vpop.eup %6525  ;;  %v2109_v51 = vadd.f32 1.0, %v6524_v45 }
 0x67e   :  { %v2110_v1 = vadd.f32 1.0, %v6526_v30  ;;  %v2661_v30 = vld [vmem:[%s9719_s7 + $0x50] sm:$0xff] }
 0x67f   :  { %6527 = vrcp.f32 %v2109_v51  ;;  %v2662_v51 = vld [vmem:[%s9719_s7 + $0x58] sm:$0xff] }
 0x680   :  { %6529 = vrcp.f32 %v2110_v1  ;;  %v8559_v1 = vpop.permute.xlu0 %2350 }
 0x689   :  { %v6528_v54 = vpop.eup %6527 }
 0x68a   :  { %v6530_v11 = vpop.eup %6529  ;;  %v8472_v56 = vmul.f32 %v6528_v54, %v2086_v63  ;;  %v5300_v63 = vmul.f32 -1.442695, %v8466_v20 }
 0x68b   :  { %v8474_v52 = vmul.f32 %v6530_v11, %v2088_v19  ;;  %v2660_v19 = vld [vmem:[%s9719_s7 + $0x48] sm:$0xff] }
 0x68c   :  { %v2149_v33 = vmul.f32 %v2143_v44, %v8472_v56  ;;  %v2183_v32 = vmul.f32 %v2177_v35, %v8472_v56  ;;  %v2217_v40 = vmul.f32 %v2211_v2, %v8472_v56  ;;  %v2251_v15 = vmul.f32 %v2245_v27, %v8472_v56 }
 0x68d   :  { %v2150_v42 = vmul.f32 %v2143_v44, %v8474_v52  ;;  %v2184_v23 = vmul.f32 %v2177_v35, %v8474_v52  ;;  %v2218_v41 = vmul.f32 %v2211_v2, %v8474_v52  ;;  %v2252_v31 = vmul.f32 %v2245_v27, %v8474_v52 }
 0x68e   :  { %2157 = vrot.lane.b32.xlu1 %v2149_v33, %s9546_s2  ;;  %v2285_v53 = vmul.f32 %v2279_v8, %v8472_v56  ;;  %v2286_v48 = vmul.f32 %v2279_v8, %v8474_v52  ;;  %v2319_v18 = vmul.f32 %v2313_v50, %v8472_v56  ;;  %v2320_v25 = vmul.f32 %v2313_v50, %v8474_v52  ;;  %v2663_v33 = vld [vmem:[%s9719_s7 + $0x60] sm:$0xff] }
 0x68f   :  { %2159 = vrot.lane.b32.xlu0 %v2150_v42, %s9546_s2  ;;  %v5299_v44 = vmul.f32 -1.442695, %v8464_v49  ;;  %v6267_v2 = vpack.c.bf16 %v2658_v26, %v2657_v39  ;;  %v2353_v27 = vmul.f32 %v2347_v14, %v8472_v56  ;;  %v2354_v8 = vmul.f32 %v2347_v14, %v8474_v52  ;;  %v2517_v14 = vpop.permute.xlu1 %2516  ;;  %v2664_v42 = vld [vmem:[%s9719_s7 + $0x68] sm:$0xff]  ;;  %v2669_v26 = vld [vmem:[%s9719_s7 + $0x90] sm:$0xff] }
 0x690   :  { %v6270_v45 = vpack.c.bf16 %v2660_v19, %v2659_v38  ;;  %v2387_v54 = vmul.f32 %v8476_v7, %v8472_v56  ;;  %v2388_v11 = vmul.f32 %v8476_v7, %v8474_v52  ;;  %v6273_v35 = vpack.c.bf16 %v2662_v51, %v2661_v30  ;;  %v2671_v38 = vld [vmem:[%s9719_s7 + $0xa0] sm:$0xff]  ;;  %v2672_v19 = vld [vmem:[%s9719_s7 + $0xa8] sm:$0xff]  ;;  %v2673_v30 = vld [vmem:[%s9719_s7 + $0xb0] sm:$0xff] }
 0x691   :  { %6531 = vpow2.f32 %v5299_v44  ;;  %6268 = vmatpush1.bf16.msra.mxu1 %v6267_v2  ;;  %v2421_v7 = vmul.f32 %v8486_v59, %v8472_v56  ;;  %v6282_v39 = vpack.c.bf16 %v2668_v55, %v2667_v34  ;;  %v2524_v44 = vmul.f32 %v2517_v14, %v8474_v52  ;;  %v2674_v51 = vld [vmem:[%s9719_s7 + $0xb8] sm:$0xff] }
 0x692   :  { %2191 = vrot.lane.b32.xlu1 %v2183_v32, %s9548_s5  ;;  %6533 = vpow2.f32 %v5300_v63  ;;  %6269 = vmatprep.subr.bf16.mxu1 %v6701_v13  ;;  %v2422_v32 = vmul.f32 %v8486_v59, %v8474_v52 }
 0x693   :  { %2193 = vrot.lane.b32.xlu0 %v2184_v23, %s9548_s5  ;;  %v2449_v23 = vpop.permute.xlu0 %2448  ;;  %v2551_v6 = vpop.permute.xlu1 %2550 }
 0x694   :  { %v2455_v4 = vmul.f32 %v2449_v23, %v8472_v56  ;;  %v2456_v46 = vmul.f32 %v2449_v23, %v8474_v52  ;;  %v2676_v23 = vld [vmem:[%s9719_s7 + $0xc8] sm:$0xff] }
 0x695   :  { %6271 = vmatpush1.bf16.msra.mxu1 %v6270_v45  ;;  %v6288_v45 = vpack.c.bf16 %v2672_v19, %v2671_v38 }
 0x696   :  { %2225 = vrot.lane.b32.xlu1 %v2217_v40, %s9542_s10  ;;  %6272 = vmatprep.subr.bf16.mxu1 %v6701_v13  ;;  %v6276_v40 = vpack.c.bf16 %v2664_v42, %v2663_v33 }
 0x697   :  { %2227 = vrot.lane.b32.xlu0 %v2218_v41, %s9542_s10  ;;  %v2665_v41 = vld [vmem:[%s9719_s7 + $0x70] sm:$0xff]  ;;  %v8598_v50 = vpop.permute.xlu0 %2452  ;;  %v8603_v9 = vpop.permute.xlu1 %2520  ;;  %s9726_s10 = smov 115  }
 0x699   :  { %6274 = vmatpush1.bf16.msra.mxu1 %v6273_v35 }
 0x69a   :  { %2259 = vrot.lane.b32.xlu1 %v2251_v15, %s9540_s6  ;;  %6275 = vmatprep.subr.bf16.mxu1 %v6701_v13  ;;  %v6279_v15 = vpack.c.bf16 %v2666_v28, %v2665_v41 }
 0x69b   :  { %2261 = vrot.lane.b32.xlu0 %v2252_v31, %s9540_s6  ;;  %v6532_v37 = vpop.eup %6531  ;;  %v8616_v2 = vpop.permute.xlu0 %2486  ;;  %s9749_s6 = sld [smem:[#allocation69_spill]] }
 0x69c   :  { %v6534_v59 = vpop.eup %6533  ;;  %v2111_v31 = vadd.f32 1.0, %v6532_v37 }
 0x69d   :  { %6277 = vmatpush1.bf16.msra.mxu1 %v6276_v40  ;;  %v2112_v24 = vadd.f32 1.0, %v6534_v59  ;;  %v2677_v59 = vld [vmem:[%s9719_s7 + $0xd0] sm:$0xff] }
 0x69e   :  { %2293 = vrot.lane.b32.xlu1 %v2285_v53, %s9538_s1  ;;  %6278 = vmatprep.subr.bf16.mxu1 %v6701_v13  ;;  %v2489_v53 = vmul.f32 %v2483_v17, %v8472_v56  ;;  %6535 = vrcp.f32 %v2111_v31 }
 0x69f   :  { %2295 = vrot.lane.b32.xlu0 %v2286_v48, %s9538_s1  ;;  %s9724_s1 = smov 118   ;;  %v2490_v48 = vmul.f32 %v2483_v17, %v8474_v52  ;;  %6537 = vrcp.f32 %v2112_v24  ;;  %v8626_v17 = vpop.permute.xlu1 %2554 }
 0x6a1   :  { %6280 = vmatpush1.bf16.msra.mxu1 %v6279_v15 }
 0x6a2   :  { %2327 = vrot.lane.b32.xlu1 %v2319_v18, %s9720_s9  ;;  %v2670_v18 = vld [vmem:[%s9719_s7 + $0x98] sm:$0xff]  ;;  %6281 = vmatprep.subr.bf16.mxu1 %v6701_v13 }
 0x6a3   :  { %2329 = vrot.lane.b32.xlu0 %v2320_v25, %s9720_s9  ;;  %v2523_v25 = vmul.f32 %v2517_v14, %v8472_v56  ;;  %v6285_v63 = vpack.c.bf16 %v2670_v18, %v2669_v26  ;;  %v2619_v42 = vpop.permute.xlu1 %2618 }
 0x6a4   :  { %v2625_v28 = vmul.f32 %v2619_v42, %v8472_v56  ;;  %v2626_v37 = vmul.f32 %v2619_v42, %v8474_v52 }
 0x6a5   :  { %6283 = vmatpush1.bf16.msra.mxu1 %v6282_v39 }
 0x6a6   :  { %2361 = vrot.lane.b32.xlu1 %v2353_v27, %s9721_s4  ;;  %6284 = vmatprep.subr.bf16.mxu1 %v6701_v13  ;;  %v2557_v27 = vmul.f32 %v2551_v6, %v8472_v56 }
 0x6a7   :  { %2363 = vrot.lane.b32.xlu0 %v2354_v8, %s9721_s4  ;;  %v2558_v8 = vmul.f32 %v2551_v6, %v8474_v52  ;;  %v2623_v38 = vpop.permute.xlu1 %2622 }
 0x6a9   :  { %6286 = vmatpush1.bf16.msra.mxu1 %v6285_v63 }
 0x6aa   :  { %2395 = vrot.lane.b32.xlu1 %v2387_v54, %s9722_s0  ;;  %v2585_v54 = vpop.permute.xlu0 %2584  ;;  %6287 = vmatprep.subr.bf16.mxu1 %v6701_v13 }
 0x6ab   :  { %2397 = vrot.lane.b32.xlu0 %v2388_v11, %s9722_s0  ;;  %v6536_v11 = vpop.eup %6535  ;;  %v2591_v14 = vmul.f32 %v2585_v54, %v8472_v56  ;;  %v2592_v35 = vmul.f32 %v2585_v54, %v8474_v52 }
 0x6ac   :  { %v6538_v33 = vpop.eup %6537  ;;  %v8652_v40 = vmul.f32 %v6536_v11, %v8464_v49  ;;  %v2678_v49 = vld [vmem:[%s9719_s7 + $0xd8] sm:$0x1] }
 0x6ad   :  { %6289 = vmatpush1.bf16.msra.mxu1 %v6288_v45  ;;  %v8655_v41 = vmul.f32 %v6538_v33, %v8466_v20  ;;  %v8751_v45 = vpop.permute.xlu1 %2134 }
 0x6ae   :  { %2429 = vrot.lane.b32.xlu1 %v2421_v7, %s9723_s28  ;;  %v6291_v7 = vpack.c.bf16 %v2674_v51, %v2673_v30  ;;  %6290 = vmatprep.subr.bf16.mxu1 %v6701_v13  ;;  %v2151_v20 = vmul.f32 %v8462_v12, %v8652_v40  ;;  %v2185_v15 = vmul.f32 %v8482_v58, %v8652_v40  ;;  %v2589_v63 = vpop.permute.xlu0 %2588 }
 0x6af   :  { %2431 = vrot.lane.b32.xlu0 %v2422_v32, %s9723_s28  ;;  %v2675_v32 = vld [vmem:[%s9719_s7 + $0xc0] sm:$0xff]  ;;  %v2186_v31 = vmul.f32 %v8482_v58, %v8655_v41  ;;  %v2220_v34 = vmul.f32 %v8498_v57, %v8655_v41  ;;  %v2253_v55 = vmul.f32 %v8468_v5, %v8652_v40  ;;  %v2254_v58 = vmul.f32 %v8468_v5, %v8655_v41  ;;  %s9729_s7 = smov 124  }
 0x6b0   :  { %v6294_v6 = vpack.c.bf16 %v2676_v23, %v2675_v32  ;;  %v2287_v24 = vmul.f32 %v8470_v3, %v8652_v40  ;;  %v2322_v5 = vmul.f32 %v8536_v22, %v8655_v41  ;;  %v2389_v39 = vmul.f32 %v8508_v10, %v8652_v40 }
 0x6b1   :  { %6292 = vmatpush1.bf16.msra.mxu1 %v6291_v7  ;;  %v2423_v26 = vmul.f32 %v8523_v60, %v8652_v40  ;;  %v2457_v18 = vmul.f32 %v8598_v50, %v8652_v40  ;;  %v2559_v19 = vmul.f32 %v8626_v17, %v8652_v40  ;;  %v2627_v30 = vmul.f32 %v2623_v38, %v8652_v40 }
 0x6b2   :  { %2463 = vrot.lane.b32.xlu1 %v2455_v4, %s9724_s1  ;;  %6293 = vmatprep.subr.bf16.mxu1 %v6701_v13  ;;  %v2152_v4 = vmul.f32 %v8462_v12, %v8655_v41  ;;  %v2219_v12 = vmul.f32 %v8498_v57, %v8652_v40  ;;  %v2288_v57 = vmul.f32 %v8470_v3, %v8655_v41 }
 0x6b3   :  { %2465 = vrot.lane.b32.xlu0 %v2456_v46, %s9724_s1  ;;  %v6297_v46 = vpack.c.bf16 %v2678_v49, %v2677_v59  ;;  %v2356_v3 = vmul.f32 %v8559_v1, %v8655_v41  ;;  %v2628_v51 = vmul.f32 %v2623_v38, %v8655_v41 }
 0x6b5   :  { %6295 = vmatpush1.bf16.msra.mxu1 %v6294_v6 }
 0x6b6   :  { %2497 = vrot.lane.b32.xlu1 %v2489_v53, %s9725_s29  ;;  %6296 = vmatprep.subr.bf16.mxu1 %v6701_v13  ;;  %v2321_v53 = vmul.f32 %v8536_v22, %v8652_v40  ;;  %v2390_v22 = vmul.f32 %v8508_v10, %v8655_v41  ;;  %v2458_v10 = vmul.f32 %v8598_v50, %v8655_v41 }
 0x6b7   :  { %2499 = vrot.lane.b32.xlu0 %v2490_v48, %s9725_s29  ;;  %v2355_v48 = vmul.f32 %v8559_v1, %v8652_v40  ;;  %v2424_v1 = vmul.f32 %v8523_v60, %v8655_v41  ;;  %v2492_v60 = vmul.f32 %v8616_v2, %v8655_v41  ;;  %v2526_v50 = vmul.f32 %v8603_v9, %v8655_v41 }
 0x6b9   :  { %6299 = vmatpush1.bf16.msk.msra.mxu1 %vm6298_vm8, %v6297_v46  ;;  %vm9737_vm8 = vcmask 932864  }
 0x6ba   :  { %2531 = vrot.lane.b32.xlu1 %v2523_v25, %s6697_s11  ;;  %v2491_v25 = vmul.f32 %v8616_v2, %v8652_v40  ;;  %v2560_v2 = vmul.f32 %v8626_v17, %v8655_v41 }
 0x6bb   :  { %2533 = vrot.lane.b32.xlu0 %v2524_v44, %s6697_s11  ;;  %v2525_v44 = vmul.f32 %v8603_v9, %v8652_v40  ;;  %v2594_v9 = vmul.f32 %v2589_v63, %v8655_v41 }
 0x6be   :  { %2565 = vrot.lane.b32.xlu1 %v2557_v27, %s9726_s10  ;;  %v2593_v27 = vmul.f32 %v2589_v63, %v8652_v40 }
 0x6bf   :  { %2567 = vrot.lane.b32.xlu0 %v2558_v8, %s9726_s10  ;;  %v2130_v8 = vpop.permute.xlu0 %2129 }
 0x6c0   :  { %v2138_v49 = vmul.f32 %v2130_v8, %v8474_v52 }
 0x6c2   :  { %2599 = vrot.lane.b32.xlu1 %v2591_v14, %s9544_s30 }
 0x6c3   :  { %2601 = vrot.lane.b32.xlu0 %v2592_v35, %s9544_s30  ;;  %s9728_s30 = smov 125  }
 0x6c6   :  { %2633 = vrot.lane.b32.xlu1 %v2625_v28, %s9727_s3 }
 0x6c7   :  { %2635 = vrot.lane.b32.xlu0 %v2626_v37, %s9727_s3 }
 0x6ca   :  { %2161 = vrot.lane.b32.xlu1 %v2151_v20, %s9546_s2 }
 0x6cb   :  { %2163 = vrot.lane.b32.xlu0 %v2152_v4, %s9546_s2  ;;  %v2137_v4 = vmul.f32 %v2130_v8, %v8472_v56  ;;  %s9752_s2 = sld [smem:[#allocation71_spill]] }
 0x6ce   :  { %2195 = vrot.lane.b32.xlu1 %v2185_v15, %s9548_s5 }
 0x6cf   :  { %2197 = vrot.lane.b32.xlu0 %v2186_v31, %s9548_s5  ;;  %s9746_s5 = sld [smem:[#allocation68_spill]] }
 0x6d2   :  { %2229 = vrot.lane.b32.xlu1 %v2219_v12, %s9728_s30 }
 0x6d3   :  { %2231 = vrot.lane.b32.xlu0 %v2220_v34, %s9728_s30 }
 0x6d6   :  { %2263 = vrot.lane.b32.xlu1 %v2253_v55, %s9729_s7 }
 0x6d7   :  { %2265 = vrot.lane.b32.xlu0 %v2254_v58, %s9729_s7 }
 0x6da   :  { %2297 = vrot.lane.b32.xlu1 %v2287_v24, %s9730_s8 }
 0x6db   :  { %2299 = vrot.lane.b32.xlu0 %v2288_v57, %s9730_s8 }
 0x6de   :  { %2331 = vrot.lane.b32.xlu1 %v2321_v53, %s9720_s9 }
 0x6df   :  { %2333 = vrot.lane.b32.xlu0 %v2322_v5, %s9720_s9  ;;  %s6716_s9 = smov 112  }
 0x6e2   :  { %2365 = vrot.lane.b32.xlu1 %v2355_v48, %s9721_s4 }
 0x6e3   :  { %2367 = vrot.lane.b32.xlu0 %v2356_v3, %s9721_s4 }
 0x6e6   :  { %2399 = vrot.lane.b32.xlu1 %v2389_v39, %s9722_s0 }
 0x6e7   :  { %2401 = vrot.lane.b32.xlu0 %v2390_v22, %s9722_s0 }
 0x6ea   :  { %2433 = vrot.lane.b32.xlu1 %v2423_v26, %s9723_s28 }
 0x6eb   :  { %2435 = vrot.lane.b32.xlu0 %v2424_v1, %s9723_s28 }
 0x6ee   :  { %2467 = vrot.lane.b32.xlu1 %v2457_v18, %s9724_s1 }
 0x6ef   :  { %2469 = vrot.lane.b32.xlu0 %v2458_v10, %s9724_s1 }
 0x6f2   :  { %2501 = vrot.lane.b32.xlu1 %v2491_v25, %s9725_s29 }
 0x6f3   :  { %2503 = vrot.lane.b32.xlu0 %v2492_v60, %s9725_s29  ;;  %s9731_s29 = smov 114  }
 0x6f6   :  { %2535 = vrot.lane.b32.xlu1 %v2525_v44, %s6697_s11 }
 0x6f7   :  { %2537 = vrot.lane.b32.xlu0 %v2526_v50, %s6697_s11  ;;  %s9748_s11 = smov 100  }
 0x6fa   :  { %2569 = vrot.lane.b32.xlu1 %v2559_v19, %s9726_s10 }
 0x6fb   :  { %2571 = vrot.lane.b32.xlu0 %v2560_v2, %s9726_s10  ;;  %s9750_s10 = sld [smem:[#allocation70_spill]] }
 0x6fe   :  { %2603 = vrot.lane.b32.xlu1 %v2593_v27, %s9731_s29 }
 0x6ff   :  { %2605 = vrot.lane.b32.xlu0 %v2594_v9, %s9731_s29 }
 0x700   :  { %v2158_v17 = vpop.permute.xlu1 %2157 }
 0x701   :  { %v2160_v54 = vpop.permute.xlu0 %2159 }
 0x702   :  { %2637 = vrot.lane.b32.xlu1 %v2627_v30, %s9727_s3  ;;  %v2165_v20 = vsel %vm200_vm0, %v2158_v17, %v2160_v54  ;;  %v2172_v31 = vadd.f32 %v2160_v54, %v2138_v49 }
 0x703   :  { %2639 = vrot.lane.b32.xlu0 %v2628_v51, %s9727_s3  ;;  %v2171_v34 = vadd.f32 %v2165_v20, %v2137_v4  ;;  %s5321_s3 = sld [smem:[#allocation2 + $0x4]] }
 0x704   :  { %v2192_v11 = vpop.permute.xlu1 %2191 }
 0x705   :  { %v2194_v14 = vpop.permute.xlu0 %2193 }
 0x706   :  { %v2199_v12 = vsel %vm267_vm1, %v2192_v11, %v2194_v14  ;;  %v2206_v55 = vadd.f32 %v2194_v14, %v2172_v31 }
 0x707   :  { %v2205_v24 = vadd.f32 %v2199_v12, %v2171_v34 }
 0x708   :  { %v2226_v35 = vpop.permute.xlu1 %2225 }
 0x709   :  { %v2228_v33 = vpop.permute.xlu0 %2227 }
 0x70a   :  { %v2233_v58 = vsel %vm334_vm2, %v2226_v35, %v2228_v33  ;;  %v2240_v5 = vadd.f32 %v2228_v33, %v2206_v55 }
 0x70b   :  { %v2239_v52 = vadd.f32 %v2233_v58, %v2205_v24 }
 0x70c   :  { %v2260_v42 = vpop.permute.xlu1 %2259 }
 0x70d   :  { %v2262_v7 = vpop.permute.xlu0 %2261 }
 0x70e   :  { %v2267_v48 = vsel %vm401_vm3, %v2260_v42, %v2262_v7  ;;  %v2274_v3 = vadd.f32 %v2262_v7, %v2240_v5 }
 0x70f   :  { %v2273_v56 = vadd.f32 %v2267_v48, %v2239_v52 }
 0x710   :  { %v2294_v32 = vpop.permute.xlu1 %2293 }
 0x711   :  { %v2296_v23 = vpop.permute.xlu0 %2295 }
 0x712   :  { %v2301_v39 = vsel %vm468_vm4, %v2294_v32, %v2296_v23  ;;  %v2308_v1 = vadd.f32 %v2296_v23, %v2274_v3 }
 0x713   :  { %v2307_v10 = vadd.f32 %v2301_v39, %v2273_v56 }
 0x714   :  { %v2328_v28 = vpop.permute.xlu1 %2327 }
 0x715   :  { %v2330_v37 = vpop.permute.xlu0 %2329 }
 0x716   :  { %v2335_v18 = vsel %vm535_vm5, %v2328_v28, %v2330_v37  ;;  %v2342_v25 = vadd.f32 %v2330_v37, %v2308_v1 }
 0x717   :  { %v2341_v44 = vadd.f32 %v2335_v18, %v2307_v10 }
 0x718   :  { %v2362_v6 = vpop.permute.xlu1 %2361 }
 0x719   :  { %v2364_v59 = vpop.permute.xlu0 %2363 }
 0x71a   :  { %v2369_v60 = vsel %vm602_vm6, %v2362_v6, %v2364_v59  ;;  %v2376_v38 = vadd.f32 %v2364_v59, %v2342_v25 }
 0x71b   :  { %v2375_v2 = vadd.f32 %v2369_v60, %v2341_v44  ;;  %v2140_v44 = vmul.f32 %v8751_v45, %v8655_v41 }
 0x71c   :  { %v2396_v46 = vpop.permute.xlu1 %2395 }
 0x71d   :  { %v2398_v15 = vpop.permute.xlu0 %2397 }
 0x71e   :  { %v2403_v19 = vsel %vm9732_vm9, %v2396_v46, %v2398_v15  ;;  %v2410_v27 = vadd.f32 %v2398_v15, %v2376_v38  ;;  %vm2679_vm9 = vcmask 728064  }
 0x71f   :  { %v2409_v8 = vadd.f32 %v2403_v19, %v2375_v2 }
 0x720   :  { %v2430_v57 = vpop.permute.xlu1 %2429 }
 0x721   :  { %v2432_v53 = vpop.permute.xlu0 %2431 }
 0x722   :  { %v2437_v9 = vsel %vm9733_vm15, %v2430_v57, %v2432_v53  ;;  %v2444_v17 = vadd.f32 %v2432_v53, %v2410_v27  ;;  %vm9738_vm15 = vcmask 924672  }
 0x723   :  { %v2443_v11 = vadd.f32 %v2437_v9, %v2409_v8 }
 0x724   :  { %v2464_v22 = vpop.permute.xlu1 %2463 }
 0x725   :  { %v2466_v26 = vpop.permute.xlu0 %2465 }
 0x726   :  { %v2471_v54 = vsel %vm9734_vm13, %v2464_v22, %v2466_v26  ;;  %v2478_v14 = vadd.f32 %v2466_v26, %v2444_v17 }
 0x727   :  { %v2477_v33 = vadd.f32 %v2471_v54, %v2443_v11 }
 0x728   :  { %v2498_v50 = vpop.permute.xlu1 %2497 }
 0x729   :  { %v2500_v63 = vpop.permute.xlu0 %2499 }
 0x72a   :  { %v2505_v35 = vsel %vm9735_vm10, %v2498_v50, %v2500_v63  ;;  %v2512_v32 = vadd.f32 %v2500_v63, %v2478_v14  ;;  %v2139_v63 = vmul.f32 %v8751_v45, %v8652_v40 }
 0x72b   :  { %v2511_v28 = vadd.f32 %v2505_v35, %v2477_v33 }
 0x72c   :  { %v2532_v30 = vpop.permute.xlu1 %2531 }
 0x72d   :  { %v2534_v51 = vpop.permute.xlu0 %2533 }
 0x72e   :  { %v2539_v23 = vsel %vm937_vm11, %v2532_v30, %v2534_v51  ;;  %v2546_v37 = vadd.f32 %v2534_v51, %v2512_v32 }
 0x72f   :  { %v2545_v59 = vadd.f32 %v2539_v23, %v2511_v28 }
 0x730   :  { %v2566_v42 = vpop.permute.xlu1 %2565 }
 0x731   :  { %v2568_v7 = vpop.permute.xlu0 %2567 }
 0x732   :  { %v2573_v6 = vsel %vm9736_vm14, %v2566_v42, %v2568_v7  ;;  %v2580_v4 = vadd.f32 %v2568_v7, %v2546_v37 }
 0x733   :  { %v2579_v15 = vadd.f32 %v2573_v6, %v2545_v59 }
 0x734   :  { %v2600_v49 = vpop.permute.xlu1 %2599 }
 0x735   :  { %v2602_v20 = vpop.permute.xlu0 %2601 }
 0x736   :  { %v2607_v46 = vsel %vm9737_vm8, %v2600_v49, %v2602_v20  ;;  %v2614_v31 = vadd.f32 %v2602_v20, %v2580_v4 }
 0x737   :  { %v2613_v12 = vadd.f32 %v2607_v46, %v2579_v15 }
 0x738   :  { %v2634_v34 = vpop.permute.xlu1 %2633 }
 0x739   :  { %v2636_v55 = vpop.permute.xlu0 %2635 }
 0x73a   :  { %v2641_v58 = vsel %vm9738_vm15, %v2634_v34, %v2636_v55  ;;  %v2648_v24 = vadd.f32 %v2636_v55, %v2614_v31 }
 0x73b   :  { %v2647_v57 = vadd.f32 %v2641_v58, %v2613_v12 }
 0x73c   :  { %5302 = vmatprep.mubr.msk.f32.mxu1 %vm2679_vm9, %v2648_v24  ;;  %v2162_v53 = vpop.permute.xlu1 %2161 }
 0x73d   :  { %2755 = vmatmul.mubr.f32.vlgmr.msra.gmra.mrb[8].mxu1 %v2647_v57  ;;  %v2164_v5 = vpop.permute.xlu0 %2163 }
 0x73e   :  { %v2166_v50 = vsel %vm200_vm0, %v2162_v53, %v2164_v5  ;;  %v2174_v2 = vadd.f32 %v2164_v5, %v2140_v44  ;;  %vm9739_vm0 = vcmask 982016  }
 0x73f   :  { %v2173_v9 = vadd.f32 %v2166_v50, %v2139_v63 }
 0x740   :  { %v2196_v48 = vpop.permute.xlu1 %2195 }
 0x741   :  { %v2198_v52 = vpop.permute.xlu0 %2197 }
 0x742   :  { %v2200_v27 = vsel %vm267_vm1, %v2196_v48, %v2198_v52  ;;  %v2208_v8 = vadd.f32 %v2198_v52, %v2174_v2  ;;  %vm9740_vm1 = vcmask 973824  }
 0x743   :  { %v2207_v51 = vadd.f32 %v2200_v27, %v2173_v9 }
 0x744   :  { %v2230_v3 = vpop.permute.xlu1 %2229 }
 0x745   :  { %v2232_v39 = vpop.permute.xlu0 %2231 }
 0x746   :  { %v2234_v30 = vsel %vm334_vm2, %v2230_v3, %v2232_v39  ;;  %v2242_v11 = vadd.f32 %v2232_v39, %v2208_v8  ;;  %vm9741_vm2 = vmmov %vm9734_vm13  ;;  %vm2837_vm13 = vcmask 130048  }
 0x747   :  { %v2241_v14 = vadd.f32 %v2234_v30, %v2207_v51 }
 0x748   :  { %v2264_v56 = vpop.permute.xlu1 %2263 }
 0x749   :  { %v2266_v22 = vpop.permute.xlu0 %2265 }
 0x74a   :  { %v2268_v41 = vsel %vm401_vm3, %v2264_v56, %v2266_v22  ;;  %v2276_v35 = vadd.f32 %v2266_v22, %v2242_v11  ;;  %vm9742_vm3 = vmmov %vm9735_vm10  ;;  %vm9747_vm10 = vmmov 0  }
 0x74b   :  { %v2275_v40 = vadd.f32 %v2268_v41, %v2241_v14 }
 0x74c   :  { %v2298_v26 = vpop.permute.xlu1 %2297 }
 0x74d   :  { %v2300_v1 = vpop.permute.xlu0 %2299 }
 0x74e   :  { %v2302_v33 = vsel %vm468_vm4, %v2298_v26, %v2300_v1  ;;  %v2310_v7 = vadd.f32 %v2300_v1, %v2276_v35  ;;  %vm9743_vm4 = vmmov %vm9736_vm14  ;;  %v2793_v35 = vld [vmem:[%s9408_s24 + $0x8] sm:$0xff]  ;;  %vm2973_vm14 = vcmask 228352  }
 0x74f   :  { %v2309_v23 = vadd.f32 %v2302_v33, %v2275_v40 }
 0x750   :  { %v2332_v18 = vpop.permute.xlu1 %2331 }
 0x751   :  { %v2334_v10 = vpop.permute.xlu0 %2333 }
 0x752   :  { %v2336_v32 = vsel %vm535_vm5, %v2332_v18, %v2334_v10  ;;  %v2344_v28 = vadd.f32 %v2334_v10, %v2310_v7  ;;  %vm9744_vm5 = vmmov %vm9737_vm8  ;;  %vm3005_vm8 = vcmask 457952  }
 0x753   :  { %v2343_v6 = vadd.f32 %v2336_v32, %v2309_v23  ;;  %v2808_v32 = vld [vmem:[%s9409_s25 + $0x10] sm:$0xff] }
 0x754   :  { %v2366_v25 = vpop.permute.xlu1 %2365 }
 0x755   :  { %v2368_v60 = vpop.permute.xlu0 %2367 }
 0x756   :  { %v2370_v37 = vsel %vm602_vm6, %v2366_v25, %v2368_v60  ;;  %v2378_v20 = vadd.f32 %v2368_v60, %v2344_v28  ;;  %vm9745_vm6 = vmmov %vm9738_vm15  ;;  %vm3015_vm15 = vcmask 15360  }
 0x757   :  { %v2377_v46 = vadd.f32 %v2370_v37, %v2343_v6 }
 0x758   :  { %v2400_v38 = vpop.permute.xlu1 %2399 }
 0x759   :  { %v2402_v19 = vpop.permute.xlu0 %2401 }
 0x75a   :  { %v2404_v4 = vsel %vm9739_vm0, %v2400_v38, %v2402_v19  ;;  %v2412_v15 = vadd.f32 %v2402_v19, %v2378_v20  ;;  %v2835_v20 = vld [vmem:[%s9746_s5] sm:$0xff]  ;;  %vm3018_vm0 = vcmask 23552  }
 0x75b   :  { %v2411_v12 = vadd.f32 %v2404_v4, %v2377_v46  ;;  %5894 = vmatprep.mubr.msk.f32.mxu0 %vm2837_vm13, %v2835_v20 }
 0x75c   :  { %v2434_v17 = vpop.permute.xlu1 %2433 }
 0x75d   :  { %v2436_v54 = vpop.permute.xlu0 %2435 }
 0x75e   :  { %v2438_v31 = vsel %vm9740_vm1, %v2434_v17, %v2436_v54  ;;  %v2446_v58 = vadd.f32 %v2436_v54, %v2412_v15  ;;  %v2794_v54 = vld [vmem:[%s9408_s24 + $0x10] sm:$0xff]  ;;  %vm3098_vm1 = vcmask 31744  }
 0x75f   :  { %v2445_v57 = vadd.f32 %v2438_v31, %v2411_v12 }
 0x760   :  { %v2468_v45 = vpop.permute.xlu1 %2467 }
 0x761   :  { %v2470_v42 = vpop.permute.xlu0 %2469 }
 0x762   :  { %v2472_v24 = vsel %vm9741_vm2, %v2468_v45, %v2470_v42  ;;  %v2480_v53 = vadd.f32 %v2470_v42, %v2446_v58  ;;  %vm3105_vm2 = vcmask 1043456  }
 0x763   :  { %v2479_v48 = vadd.f32 %v2472_v24, %v2445_v57 }
 0x764   :  { %v2502_v59 = vpop.permute.xlu1 %2501 }
 0x765   :  { %v2504_v49 = vpop.permute.xlu0 %2503 }
 0x766   :  { %v2506_v5 = vsel %vm9742_vm3, %v2502_v59, %v2504_v49  ;;  %v2514_v39 = vadd.f32 %v2504_v49, %v2480_v53  ;;  %v2807_v49 = vld [vmem:[%s9409_s25 + $0x8] sm:$0xff]  ;;  %vm3213_vm3 = vcmask 1041408  }
 0x767   :  { %v2513_v22 = vadd.f32 %v2506_v5, %v2479_v48 }
 0x768   :  { %v2536_v34 = vpop.permute.xlu1 %2535 }
 0x769   :  { %v2538_v55 = vpop.permute.xlu0 %2537 }
 0x76a   :  { %v2540_v56 = vsel %vm937_vm11, %v2536_v34, %v2538_v55  ;;  %v2548_v26 = vadd.f32 %v2538_v55, %v2514_v39  ;;  %vm2765_vm11 = vcmask 457728  }
 0x76b   :  { %v2547_v18 = vadd.f32 %v2540_v56, %v2513_v22 }
 0x76c   :  { %v2570_v52 = vpop.permute.xlu1 %2569 }
 0x76d   :  { %v2572_v3 = vpop.permute.xlu0 %2571 }
 0x76e   :  { %v2574_v1 = vsel %vm9743_vm4, %v2570_v52, %v2572_v3  ;;  %v2582_v60 = vadd.f32 %v2572_v3, %v2548_v26  ;;  %vm9754_vm4 = vcmask 1046528  }
 0x76f   :  { %v2581_v50 = vadd.f32 %v2574_v1, %v2547_v18 }
 0x770   :  { %v2604_v10 = vpop.permute.xlu1 %2603 }
 0x771   :  { %v2606_v25 = vpop.permute.xlu0 %2605 }
 0x772   :  { %v2608_v44 = vsel %vm9744_vm5, %v2604_v10, %v2606_v25  ;;  %v2616_v63 = vadd.f32 %v2606_v25, %v2582_v60  ;;  %vm3559_vm5 = vcmask 580608  }
 0x773   :  { %v2615_v38 = vadd.f32 %v2608_v44, %v2581_v50 }
 0x774   :  { %v2638_v19 = vpop.permute.xlu1 %2637 }
 0x775   :  { %v2640_v2 = vpop.permute.xlu0 %2639 }
 0x776   :  { %v2642_v27 = vsel %vm9745_vm6, %v2638_v19, %v2640_v2  ;;  %v2650_v9 = vadd.f32 %v2640_v2, %v2616_v63  ;;  %v2836_v2 = vld [vmem:[%s9746_s5 + $0x8] sm:$0xff]  ;;  %s9751_s5 = smov 126   ;;  %vm6341_vm6 = vmpackc.low %vm3213_vm3, %vm6704_vm12 }
 0x777   :  { %v2649_v8 = vadd.f32 %v2642_v27, %v2615_v38 }
 0x778   :  { %5303 = vmatprep.mubr.msk.f32.mxu1 %vm2679_vm9, %v2650_v9  ;;  %vm3012_vm9 = vcmask 7168  }
 0x779   :  { %2760 = vmatmul.mubr.f32.gmra.mrb[10].mxu1 %v2649_v8 }
 0x810   :  { %v2756_v30 = vpop.f32.mrb[8].mxu1 }
 0x811   :  { %v2758_v51 = vpop.f32.mrb[9].mxu1  ;;  %v2766_v17 = vsel %vm2765_vm11, %v2756_v30, 0.0 }
 0x812   :  { %2767 = vadd.xlane.f32.xlu1 %v2766_v17  ;;  %v2946_v51 = vld [vmem:[%s9408_s24 + $0x20] sm:$0xff]  ;;  %v2945_v17 = vld [vmem:[%s9408_s24 + $0x18] sm:$0xff] }
 0x823   :  { %2802 = vperm.xlu1 %6490, %v2794_v54  }
 0x84c   :  { %v2761_v11 = vpop.f32.mrb[10].mxu1 }
 0x84d   :  { %v2763_v41 = vpop.f32.mrb[11].mxu1  ;;  %v2769_v14 = vsel %vm2765_vm11, %v2761_v11, 0.0 }
 0x84e   :  { %2770 = vadd.xlane.f32.xlu0 %v2769_v14 }
 0x864   :  { %2797 = vperm.xlu0 %6489, %v2793_v35  }
 0x89f   :  { %v2768_v33 = vpop.xlane.xlu1 %2767 }
 0x8a0   :  { %v2773_v40 = vmul.f32 0.017857144, %v2768_v33 }
 0x8a2   :  { %v2775_v45 = vsub.f32 %v2756_v30, %v2773_v40 }
 0x8a3   :  { %v2803_v12 = vpop.permute.xlu1 %2802 }
 0x8a4   :  { %v2777_v42 = vmul.f32 %v2775_v45, %v2775_v45 }
 0x8a6   :  { %v2779_v7 = vsel %vm2765_vm11, %v2777_v42, 0.0 }
 0x8a7   :  { %2780 = vadd.xlane.f32.xlu0 %v2779_v7 }
 0x8bd   :  { %2816 = vperm.xlu0 %6489, %v2808_v32   ;;  %v2959_v32 = vld [vmem:[%s9409_s25 + $0x18] sm:$0xff] }
 0x8db   :  { %v2771_v23 = vpop.xlane.xlu0 %2770 }
 0x8dc   :  { %v2774_v28 = vmul.f32 0.017857144, %v2771_v23  ;;  %v2960_v23 = vld [vmem:[%s9409_s25 + $0x20] sm:$0xff] }
 0x8de   :  { %v2776_v37 = vsub.f32 %v2761_v11, %v2774_v28 }
 0x8e0   :  { %v2778_v6 = vmul.f32 %v2776_v37, %v2776_v37 }
 0x8e2   :  { %v2782_v59 = vsel %vm2765_vm11, %v2778_v6, 0.0 }
 0x8e3   :  { %2783 = vadd.xlane.f32.xlu1 %v2782_v59  ;;  %v2798_v4 = vpop.permute.xlu0 %2797 }
 0x8f4   :  { %2811 = vperm.xlu1 %6490, %v2807_v49  }
 0x934   :  { %v2781_v46 = vpop.xlane.xlu0 %2780 }
 0x935   :  { %v2785_v15 = vmul.f32 0.017857144, %v2781_v46 }
 0x937   :  { %v2787_v31 = vadd.f32 1e-05, %v2785_v15 }
 0x939   :  { %6539 = vrsqrt.f32 %v2787_v31 }
 0x93c   :  { %v2817_v22 = vpop.permute.xlu0 %2816 }
 0x943   :  { %v6540_v55 = vpop.eup %6539 }
 0x944   :  { %v2791_v57 = vmul.f32 %v6540_v55, %v2775_v45 }
 0x946   :  { %v2805_v5 = vmul.f32 %v2798_v4, %v2791_v57 }
 0x970   :  { %v2784_v34 = vpop.xlane.xlu1 %2783 }
 0x971   :  { %v2786_v58 = vmul.f32 0.017857144, %v2784_v34 }
 0x973   :  { %v2788_v24 = vadd.f32 1e-05, %v2786_v58 }
 0x974   :  { %v2812_v53 = vpop.permute.xlu1 %2811 }
 0x975   :  { %6541 = vrsqrt.f32 %v2788_v24  ;;  %v2819_v48 = vadd.f32 %v2812_v53, %v2805_v5 }
 0x977   :  { %v5304_v52 = vmul.f32 -1.442695, %v2819_v48 }
 0x979   :  { %6543 = vpow2.f32 %v5304_v52 }
 0x97f   :  { %v6542_v3 = vpop.eup %6541 }
 0x980   :  { %v2792_v39 = vmul.f32 %v6542_v3, %v2776_v37 }
 0x982   :  { %v2806_v56 = vmul.f32 %v2803_v12, %v2792_v39 }
 0x983   :  { %v6544_v18 = vpop.eup %6543 }
 0x984   :  { %v2820_v26 = vadd.f32 %v2817_v22, %v2806_v56  ;;  %v2827_v10 = vadd.f32 1.0, %v6544_v18 }
 0x986   :  { %v5305_v1 = vmul.f32 -1.442695, %v2820_v26 }
 0x988   :  { %6545 = vpow2.f32 %v5305_v1 }
 0x989   :  { %6547 = vrcp.f32 %v2827_v10 }
 0x992   :  { %v6546_v25 = vpop.eup %6545 }
 0x993   :  { %v2828_v60 = vadd.f32 1.0, %v6546_v25  ;;  %v6548_v44 = vpop.eup %6547 }
 0x994   :  { %v2833_v63 = vmul.f32 %v6548_v44, %v2819_v48 }
 0x995   :  { %6549 = vrcp.f32 %v2828_v60 }
 0x99f   :  { %v6550_v50 = vpop.eup %6549 }
 0x9a0   :  { %v2834_v38 = vmul.f32 %v6550_v50, %v2820_v26 }
 0x9a2   :  { %v6300_v19 = vpack.c.bf16 %v2834_v38, %v2833_v63 }
 0x9a4   :  { %6301 = vmatprep.subr.bf16.mxu0 %v6300_v19 }
 0x9a5   :  { %6303 = vmatpush3.bf16.msra.mxu0 %v6300_v19 }
 0x9a6   :  { %6304 = vmatprep.subr.bf16.mxu0 %v6701_v13 }
 0x9a8   :  { %5895 = vmatmul.mubr.msk.f32.vlgmr.msra.gmra.mrb[12].mxu0 %vm2837_vm13, %v2836_v2 }
 0x9a9   :  { %5901 = vmatprep.mubr.msk.f32.mxu0 %vm9747_vm10, %v6703_v62 }
 0xa7b   :  { %v5896_v27 = vpop.f32.mrb[12].mxu0 }
 0xa7c   :  { %v2910_v9 = vpop.f32.mrb[13].mxu0  ;;  %v2922_v8 = vsel %vm2765_vm11, %v5896_v27, 0.0 }
 0xa7d   :  { %2923 = vadd.xlane.f32.xlu0 %v2922_v8  ;;  %v2919_v30 = vsel %vm2765_vm11, %v2910_v9, 0.0 }
 0xa7e   :  { %2920 = vadd.xlane.f32.xlu1 %v2919_v30 }
 0xa8f   :  { %2954 = vperm.xlu1 %6490, %v2946_v51  }
 0xa93   :  { %2949 = vperm.xlu0 %6489, %v2945_v17  }
 0xb0a   :  { %v2924_v54 = vpop.xlane.xlu0 %2923 }
 0xb0b   :  { %v2926_v11 = vmul.f32 0.017857144, %v2924_v54  ;;  %v2921_v41 = vpop.xlane.xlu1 %2920 }
 0xb0c   :  { %v2925_v14 = vmul.f32 0.017857144, %v2921_v41 }
 0xb0d   :  { %v2928_v35 = vsub.f32 %v5896_v27, %v2926_v11 }
 0xb0e   :  { %v2927_v33 = vsub.f32 %v2910_v9, %v2925_v14 }
 0xb0f   :  { %v2930_v40 = vmul.f32 %v2928_v35, %v2928_v35  ;;  %v2955_v28 = vpop.permute.xlu1 %2954 }
 0xb10   :  { %v2929_v45 = vmul.f32 %v2927_v33, %v2927_v33 }
 0xb11   :  { %v2934_v42 = vsel %vm2765_vm11, %v2930_v40, 0.0  ;;  %v3021_v40 = vld [vmem:[%s9750_s10] sm:$0xff] }
 0xb12   :  { %2935 = vadd.xlane.f32.xlu1 %v2934_v42  ;;  %v2931_v7 = vsel %vm2765_vm11, %v2929_v45, 0.0  ;;  %v2950_v37 = vpop.permute.xlu0 %2949 }
 0xb13   :  { %2932 = vadd.xlane.f32.xlu0 %v2931_v7 }
 0xb23   :  { %2963 = vperm.xlu1 %6490, %v2959_v32   ;;  %v3022_v32 = vld [vmem:[%s9750_s10 + $0x8] sm:$0xff]  ;;  %s5324_s10 = sld [smem:[#allocation2 + $0x7]] }
 0xb27   :  { %6492 = vset.pattern.permute.xlu1 %v9700_v16 }
 0xb29   :  { %2968 = vperm.xlu0 %6489, %v2960_v23  }
 0xb2d   :  { %6491 = vset.pattern.permute.xlu0 %v9700_v16 }
 0xb9f   :  { %v2936_v6 = vpop.xlane.xlu1 %2935 }
 0xba0   :  { %v2938_v59 = vmul.f32 0.017857144, %v2936_v6  ;;  %v2933_v49 = vpop.xlane.xlu0 %2932 }
 0xba1   :  { %v2937_v20 = vmul.f32 0.017857144, %v2933_v49 }
 0xba2   :  { %v2940_v4 = vadd.f32 1e-05, %v2938_v59 }
 0xba3   :  { %v2939_v46 = vadd.f32 1e-05, %v2937_v20  ;;  %v2964_v57 = vpop.permute.xlu1 %2963 }
 0xba4   :  { %6551 = vrsqrt.f32 %v2940_v4 }
 0xba5   :  { %6553 = vrsqrt.f32 %v2939_v46 }
 0xba8   :  { %v2969_v24 = vpop.permute.xlu0 %2968 }
 0xbae   :  { %v6552_v15 = vpop.eup %6551 }
 0xbaf   :  { %v6554_v31 = vpop.eup %6553  ;;  %v2944_v12 = vmul.f32 %v6552_v15, %v2928_v35 }
 0xbb0   :  { %v2943_v34 = vmul.f32 %v6554_v31, %v2927_v33  ;;  %v3023_v33 = vld [vmem:[%s9749_s6] sm:$0xf]  ;;  %s5320_s6 = sld [smem:[#allocation2 + $0x3]] }
 0xbb1   :  { %v2958_v55 = vmul.f32 %v2955_v28, %v2944_v12 }
 0xbb2   :  { %v2957_v58 = vmul.f32 %v2950_v37, %v2943_v34  ;;  %v3206_v37 = vld [vmem:[%s9752_s2] sm:$0x3]  ;;  %s5323_s2 = sld [smem:[#allocation2 + $0x6]] }
 0xbb3   :  { %v8842_v53 = vadd.f32 %v2969_v24, %v2958_v55  ;;  %v3315_v24 = vld [vmem:[%s9396_s12] sm:$0xff] }
 0xbb4   :  { %v8844_v5 = vadd.f32 %v2964_v57, %v2957_v58  ;;  %v3316_v57 = vld [vmem:[%s9396_s12 + $0x8] sm:$0xff] }
 0xbb5   :  { %2987 = vrot.lane.b32.xlu0 %v8842_v53, %s9748_s11  ;;  %v2977_v48 = vsel %vm2973_vm14, %v8842_v53, 0.0  ;;  %v3002_v3 = vsel %vm2973_vm14, %v8842_v53, -inf  ;;  %v3009_v18 = vsel %vm3005_vm8, %v8842_v53, -inf }
 0xbb6   :  { %2985 = vrot.lane.b32.xlu1 %v8844_v5, %s9748_s11  ;;  %v2999_v52 = vsel %vm2973_vm14, %v8844_v5, -inf  ;;  %v2974_v39 = vsel %vm2973_vm14, %v8844_v5, 0.0  ;;  %v3006_v10 = vsel %vm3005_vm8, %v8844_v5, -inf  ;;  %s5327_s11 = sld [smem:[#allocation2 + $0xa]] }
 0xbd4   :  { %2978 = vadd.xlane.f32.xlu0 %v2977_v48  ;;  %v6308_v48 = vpack.c.bf16 %v3316_v57, %v3315_v24 }
 0xbd8   :  { %3000 = vmax.xlane.f32.xlu0 %v2999_v52  ;;  %v3317_v52 = vld [vmem:[%s9396_s12 + $0x10] sm:$0xff] }
 0xbda   :  { %3003 = vmax.xlane.f32.xlu1 %v3002_v3  ;;  %v3318_v3 = vld [vmem:[%s9396_s12 + $0x18] sm:$0xff] }
 0xbde   :  { %2975 = vadd.xlane.f32.xlu1 %v2974_v39  ;;  %v6311_v39 = vpack.c.bf16 %v3318_v3, %v3317_v52 }
 0xc27   :  { %v2988_v56 = vpop.permute.xlu0 %2987 }
 0xc28   :  { %v2986_v22 = vpop.permute.xlu1 %2985  ;;  %v2994_v26 = vsel %vm2973_vm14, %v2988_v56, 0.0  ;;  %v3319_v56 = vld [vmem:[%s9396_s12 + $0x20] sm:$0xff] }
 0xc29   :  { %2995 = vadd.xlane.f32.xlu1 %v2994_v26  ;;  %v2991_v1 = vsel %vm2973_vm14, %v2986_v22, 0.0  ;;  %v3320_v22 = vld [vmem:[%s9396_s12 + $0x28] sm:$0xff] }
 0xc2a   :  { %2992 = vadd.xlane.f32.xlu0 %v2991_v1  ;;  %v6314_v26 = vpack.c.bf16 %v3320_v22, %v3319_v56  ;;  %v3321_v1 = vld [vmem:[%s9396_s12 + $0x30] sm:$0xff]  ;;  %s5319_s12 = sld [smem:[#allocation2 + $0x2]] }
 0xc2d   :  { %3010 = vmax.xlane.f32.xlu1 %v3009_v18 }
 0xc2e   :  { %3007 = vmax.xlane.f32.xlu0 %v3006_v10 }
 0xc61   :  { %v2979_v60 = vpop.xlane.xlu0 %2978 }
 0xc62   :  { %v2982_v38 = vmul.f32 0.035714287, %v2979_v60 }
 0xc65   :  { %v3001_v50 = vpop.xlane.xlu0 %3000 }
 0xc67   :  { %v3004_v25 = vpop.xlane.xlu1 %3003 }
 0xc6b   :  { %v2976_v44 = vpop.xlane.xlu1 %2975 }
 0xc6c   :  { %v2981_v27 = vmul.f32 0.035714287, %v2976_v44 }
 0xcb6   :  { %v2996_v63 = vpop.xlane.xlu1 %2995 }
 0xcb7   :  { %v2998_v19 = vmul.f32 0.035714287, %v2996_v63  ;;  %v2993_v2 = vpop.xlane.xlu0 %2992 }
 0xcb8   :  { %v2997_v9 = vmul.f32 0.035714287, %v2993_v2 }
 0xcb9   :  { %v3014_v8 = vsel %vm3012_vm9, %v2982_v38, %v2998_v19 }
 0xcba   :  { %v3017_v30 = vsel %vm3015_vm15, %v3014_v8, %v3004_v25  ;;  %v3011_v51 = vpop.xlane.xlu1 %3010  ;;  %v3013_v17 = vsel %vm3012_vm9, %v2981_v27, %v2997_v9 }
 0xcbb   :  { %v3020_v54 = vsel %vm3018_vm0, %v3017_v30, %v3011_v51  ;;  %v3008_v11 = vpop.xlane.xlu0 %3007  ;;  %v3016_v41 = vsel %vm3015_vm15, %v3013_v17, %v3001_v50 }
 0xcbc   :  { %v3019_v14 = vsel %vm3018_vm0, %v3016_v41, %v3008_v11 }
 0xcbd   :  { %v6305_v35 = vpack.c.bf16 %v3020_v54, %v3019_v14 }
 0xcbf   :  { %6306 = vmatpush3.bf16.msra.mxu0 %v6305_v35 }
 0xcc2   :  { %5902 = vmatmul.mubr.msk.f32.vlgmr.msra.gmra.mrb[14].mxu0 %vm2837_vm13, %v3023_v33 }
 0xcc3   :  { %5906 = vmatprep.mubr.msk.f32.mxu0 %vm3098_vm1, %v3021_v40  ;;  %v3407_v40 = vstv %s5319_s12  ;;  %s5330_s12 = sld [smem:[#allocation2 + $0xd]] }
 0xd95   :  { %v3093_v45 = vpop.f32.mrb[14].mxu0 }
 0xd96   :  { %v3097_v42 = vmax.f32 %v3093_v45, 0.0  ;;  %v5903_v7 = vpop.f32.mrb[15].mxu0  ;;  %v3399_v45 = vstv %s5318_s22  ;;  %s5329_s22 = sld [smem:[#allocation2 + $0xc]] }
 0xd98   :  { %5904 = vmatprep.subr.msk.mxu0 %vm3105_vm2, %v3097_v42 }
 0xd99   :  { %5905 = vmatpush3.msk.msra.mxu0 %vm3105_vm2, %v3097_v42 }
 0xd9a   :  { %5907 = vmatmul.mubr.msk.f32.vlgmr.msra.gmra.mrb[16].mxu0 %vm3098_vm1, %v3022_v32  ;;  %5909 = vmatprep.subr.msk.mxu0 %vm3213_vm3, %v3206_v37 }
 0xd9b   :  { %5910 = vmatpush3.msk.msra.mxu0 %vm3213_vm3, %v3206_v37  ;;  %v3415_v37 = vstv %s5320_s6  ;;  %s5331_s6 = sld [smem:[#allocation2 + $0xe]] }
 0xd9c   :  { %6307 = vmatprep.subr.bf16.mxu0 %v6701_v13  ;;  %v3488_v52 = vstv %s5329_s22  ;;  %s5326_s22 = sld [smem:[#allocation2 + $0x9]] }
 0xe6d   :  { %v5908_v23 = vpop.f32.mrb[16].mxu0 }
 0xe6e   :  { %3188 = vrot.lane.b32.xlu1 %v5908_v23, %s9751_s5  ;;  %v3175_v28 = vpop.f32.mrb[17].mxu0 }
 0xe6f   :  { %3186 = vrot.lane.b32.xlu0 %v3175_v28, %s9751_s5 }
 0xee0   :  { %v3189_v6 = vpop.permute.xlu1 %3188 }
 0xee1   :  { %v3193_v59 = vadd.f32 %v5908_v23, %v3189_v6  ;;  %v3187_v49 = vpop.permute.xlu0 %3186 }
 0xee2   :  { %v3192_v20 = vadd.f32 %v3187_v49, %v3175_v28  ;;  %v3423_v28 = vstv %s5321_s3  ;;  %v3439_v49 = vstv %s5323_s2  ;;  %s5332_s3 = sld [smem:[#allocation2 + $0xf]]  ;;  %s5334_s2 = sld [smem:[#allocation2 + $0x11]] }
 0xee3   :  { %v5313_v4 = vmul.f32 -1.442695, %v3193_v59 }
 0xee4   :  { %v5312_v46 = vmul.f32 -1.442695, %v3192_v20  ;;  %v3431_v20 = vstv %s5322_s26  ;;  %s5333_s26 = sld [smem:[#allocation2 + $0x10]] }
 0xee5   :  { %6555 = vpow2.f32 %v5313_v4 }
 0xee6   :  { %6557 = vpow2.f32 %v5312_v46 }
 0xeef   :  { %v6556_v15 = vpop.eup %6555 }
 0xef0   :  { %v6558_v31 = vpop.eup %6557  ;;  %v3201_v12 = vadd.f32 1.0, %v6556_v15  ;;  %v3455_v15 = vstv %s5325_s27  ;;  %s6717_s27 = smov 110  }
 0xef1   :  { %v3200_v34 = vadd.f32 1.0, %v6558_v31  ;;  %v3447_v31 = vstv %s5324_s10  ;;  %s6718_s10 = smov 111  }
 0xef3   :  { %6559 = vrcp.f32 %v3200_v34  ;;  %v3470_v34 = vstv %s5327_s11 }
 0xef4   :  { %6561 = vrcp.f32 %v3201_v12  ;;  %v3479_v12 = vstv %s5328_s23 }
 0xefd   :  { %v6560_v55 = vpop.eup %6559 }
 0xefe   :  { %v6562_v58 = vpop.eup %6561  ;;  %5911 = vmatprep.mubr.msk.f32.mxu0 %vm3015_vm15, %v6560_v55 }
 0xeff   :  { %5912 = vmatmul.mubr.msk.f32.vlgmr.msra.gmra.mrb[18].mxu0 %vm3015_vm15, %v6562_v58 }
 0xf00   :  { %5928 = vmatprep.mubr.msk.f32.mxu0 %vm9747_vm10, %v6703_v62  ;;  %6309 = vmatpush3.bf16.msra.mxu0 %v6308_v48  ;;  %v3497_v48 = vstv %s5330_s12  ;;  %s3395_s12 = sld [smem:[#allocation2]] }
 0xf01   :  { %6310 = vmatprep.subr.bf16.mxu0 %v6701_v13 }
 0xf04   :  { %6312 = vmatpush3.bf16.msra.mxu0 %v6311_v39 }
 0xf05   :  { %6313 = vmatprep.subr.bf16.mxu0 %v6701_v13 }
 0xf08   :  { %6315 = vmatpush3.bf16.msra.mxu0 %v6314_v26  ;;  %v3515_v26 = vstv %s5332_s3 }
 0xf09   :  { %5926 = vmatprep.subr.mxu0 %v6703_v62 }
 0xf0c   :  { %5927 = vmatpush3.msra.mxu0 %v3321_v1  ;;  %v3506_v1 = vstv %s5331_s6  ;;  %s9759_s6 = sld [smem:[#allocation72_spill]] }
 0xf0d   :  { %6316 = vmatprep.subr.bf16.mxu0 %v6701_v13 }
 0xfd2   :  { %v5913_v18 = vpop.f32.mrb[18].mxu0 }
 0xfd3   :  { %v8914_v10 = vmul.f32 %v5913_v18, %v8842_v53  ;;  %v3283_v25 = vpop.f32.mrb[19].mxu0 }
 0xfd4   :  { %v8917_v60 = vmul.f32 %v3283_v25, %v8844_v5 }
 0xfd5   :  { %v3295_v44 = vsel %vm2765_vm11, %v8914_v10, 0.0  ;;  %v3306_v50 = vsel %vm2765_vm11, %v8914_v10, -inf }
 0xfd6   :  { %v3294_v63 = vsel %vm2765_vm11, %v8917_v60, 0.0  ;;  %v3305_v38 = vsel %vm2765_vm11, %v8917_v60, -inf }
 0xfd7   :  { %v3296_v19 = vadd.f32 %v3295_v44, %v3294_v63  ;;  %v3307_v2 = vmax.f32 %v3305_v38, %v3306_v50  ;;  %v3533_v63 = vstv %s5334_s2  ;;  %v3524_v38 = vstv %s5333_s26  ;;  %s9760_s26 = sld [smem:[#allocation73_spill]] }
 0xfd9   :  { %v3297_v53 = vrot.slane %v3296_v19, 4  ;;  %v3308_v27 = vrot.slane %v3307_v2, 4 }
 0xfdb   :  { %v3298_v9 = vadd.f32 %v3297_v53, %v3296_v19  ;;  %v3309_v8 = vmax.f32 %v3307_v2, %v3308_v27 }
 0xfdd   :  { %v3299_v5 = vrot.slane %v3298_v9, 2  ;;  %v3310_v30 = vrot.slane %v3309_v8, 2 }
 0xfdf   :  { %v3300_v51 = vadd.f32 %v3299_v5, %v3298_v9  ;;  %v3311_v17 = vmax.f32 %v3309_v8, %v3310_v30  ;;  %v3547_v5 = vld [vmem:[%s9397_s13] sm:$0xff]  ;;  %v3548_v30 = vld [vmem:[%s9397_s13 + $0x8] sm:$0xff] }
 0xfe1   :  { %v3301_v54 = vrot.slane %v3300_v51, 1  ;;  %v3312_v11 = vrot.slane %v3311_v17, 1 }
 0xfe3   :  { %v3302_v41 = vadd.f32 %v3301_v54, %v3300_v51  ;;  %v3313_v35 = vmax.f32 %v3311_v17, %v3312_v11  ;;  %v3549_v51 = vld [vmem:[%s9397_s13 + $0x10] sm:$0xff]  ;;  %v6317_v17 = vpack.c.bf16 %v3548_v30, %v3547_v5  ;;  %v3550_v54 = vld [vmem:[%s9397_s13 + $0x18] sm:$0xff] }
 0xfe4   :  { %v6320_v11 = vpack.c.bf16 %v3550_v54, %v3549_v51  ;;  %v3641_v51 = vld [vmem:[%s9398_s14] sm:$0xff] }
 0xfe5   :  { %v3304_v14 = vmul.f32 0.0625, %v3302_v41  ;;  %v3551_v41 = vld [vmem:[%s9397_s13 + $0x20] sm:$0xff] }
 0xfe6   :  { %v3770_v54 = vld [vmem:[%s9399_s15] sm:$0xff] }
 0xfe7   :  { %v3314_v33 = vsel %vm2686_vm7, %v3304_v14, %v3313_v35  ;;  %v3552_v14 = vld [vmem:[%s9397_s13 + $0x28] sm:$0xff] }
 0xfe8   :  { %5929 = vmatmul.mubr.msk.f32.vlgmr.msra.gmra.mrb[20].mxu0 %vm2765_vm11, %v3314_v33  ;;  %v6323_v35 = vpack.c.bf16 %v3552_v14, %v3551_v41  ;;  %v3553_v33 = vld [vmem:[%s9397_s13 + $0x30] sm:$0xff]  ;;  %v3773_v41 = vld [vmem:[%s9399_s15 + $0x18] sm:$0xff]  ;;  %vm3884_vm11 = vcmask 343040  }
 0xfe9   :  { %5949 = vmatprep.mubr.msk.f32.mxu0 %vm9747_vm10, %v6703_v62  ;;  %6318 = vmatpush3.bf16.msra.mxu0 %v6317_v17  ;;  %v3771_v17 = vld [vmem:[%s9399_s15 + $0x8] sm:$0xff]  ;;  %vm4123_vm10 = vcmask 261120  }
 0xfea   :  { %6319 = vmatprep.subr.bf16.mxu0 %v6701_v13 }
 0xfed   :  { %6321 = vmatpush3.bf16.msra.mxu0 %v6320_v11  ;;  %v3772_v11 = vld [vmem:[%s9399_s15 + $0x10] sm:$0xff] }
 0xfee   :  { %6322 = vmatprep.subr.bf16.mxu0 %v6701_v13 }
 0xff1   :  { %6324 = vmatpush3.bf16.msra.mxu0 %v6323_v35  ;;  %v9755_v35 = vld [vmem:[#allocation6_spill] sm:$0xff] }
 0xff2   :  { %6325 = vmatprep.subr.bf16.mxu0 %v6701_v13 }
0x10bb   :  { %v8931_v42 = vpop.f32.mrb[20].mxu0 }
0x10bc   :  { %v5930_v7 = vpop.f32.mrb[21].mxu0  ;;  %v3408_v32 = vmul.f32 %v3407_v40, %v8931_v42  ;;  %v3400_v23 = vmul.f32 %v3399_v45, %v8931_v42  ;;  %v3424_v6 = vmul.f32 %v3423_v28, %v8931_v42  ;;  %v3416_v59 = vmul.f32 %v3415_v37, %v8931_v42  ;;  %v3554_v40 = vld [vmem:[%s9397_s13 + $0x38] sm:$0xff] }
0x10bd   :  { %v3440_v4 = vmul.f32 %v3439_v49, %v8931_v42  ;;  %v3432_v46 = vmul.f32 %v3431_v20, %v8931_v42  ;;  %v3456_v55 = vmul.f32 %v3455_v15, %v8931_v42  ;;  %v3448_v58 = vmul.f32 %v3447_v31, %v8931_v42  ;;  %v3555_v7 = vld [vmem:[%s9397_s13 + $0x40] sm:$0x7f] }
0x10be   :  { %3410 = vrot.lane.b32.xlu0 %v3408_v32, %s9751_s5  ;;  %3402 = vrot.lane.b32.xlu1 %v3400_v23, %s9753_s21  ;;  %v3480_v24 = vmul.f32 %v3479_v12, %v8931_v42  ;;  %v3471_v57 = vmul.f32 %v3470_v34, %v8931_v42  ;;  %v3498_v56 = vmul.f32 %v3497_v48, %v8931_v42  ;;  %v3396_v32 = vstv %s3395_s12 }
0x10bf   :  { %v3489_v22 = vmul.f32 %v3488_v52, %v8931_v42  ;;  %v3516_v44 = vmul.f32 %v3515_v26, %v8931_v42  ;;  %v3507_v50 = vmul.f32 %v3506_v1, %v8931_v42  ;;  %v3534_v53 = vmul.f32 %v3533_v63, %v8931_v42 }
0x10c0   :  { %v3482_v3 = vrot.slane %v3480_v24, 1  ;;  %v3473_v39 = vrot.slane %v3471_v57, 1  ;;  %v3500_v18 = vrot.slane %v3498_v56, 1  ;;  %v3525_v27 = vmul.f32 %v3524_v38, %v8931_v42 }
0x10c1   :  { %v3491_v25 = vrot.slane %v3489_v22, 1  ;;  %v3518_v19 = vrot.slane %v3516_v44, 1  ;;  %v3509_v2 = vrot.slane %v3507_v50, 1  ;;  %v3536_v9 = vrot.slane %v3534_v53, 1 }
0x10c2   :  { %3426 = vrot.lane.b32.xlu0 %v3424_v6, %s9723_s28  ;;  %3418 = vrot.lane.b32.xlu1 %v3416_v59, %s9722_s0  ;;  %v3527_v8 = vrot.slane %v3525_v27, 1  ;;  %v6326_v45 = vpack.c.bf16 %v3554_v40, %v3553_v33  ;;  %v3397_v23 = vmul.f32 %v3396_v32, %v8931_v42  ;;  %v3463_v15 = vstv %s5326_s22  ;;  %s9762_s22 = sld [smem:[#allocation75_spill]] }
0x10c3   :  { %v3464_v34 = vmul.f32 %v3463_v15, %v8931_v42 }
0x10c4   :  { %6327 = vmatpush3.bf16.msra.mxu0 %v6326_v45 }
0x10c5   :  { %5947 = vmatprep.subr.mxu0 %v6703_v62  ;;  %v3466_v48 = vrot.slane %v3464_v34, 1 }
0x10c6   :  { %3442 = vrot.lane.b32.xlu0 %v3440_v4, %s6716_s9  ;;  %3434 = vrot.lane.b32.xlu1 %v3432_v46, %s9724_s1 }
0x10c8   :  { %5948 = vmatpush3.msk.msra.mxu0 %vm9754_vm4, %v3555_v7 }
0x10ca   :  { %3458 = vrot.lane.b32.xlu0 %v3456_v55, %s6717_s27  ;;  %3450 = vrot.lane.b32.xlu1 %v3448_v58, %s6718_s10 }
0x10ce   :  { %3483 = vrot.lane.b32.xlu0 %v3482_v3, %s9751_s5  ;;  %3474 = vrot.lane.b32.xlu1 %v3473_v39, %s9753_s21 }
0x10d2   :  { %3501 = vrot.lane.b32.xlu0 %v3500_v18, %s9723_s28  ;;  %3492 = vrot.lane.b32.xlu1 %v3491_v25, %s9722_s0 }
0x10d6   :  { %3519 = vrot.lane.b32.xlu0 %v3518_v19, %s6716_s9  ;;  %3510 = vrot.lane.b32.xlu1 %v3509_v2, %s9724_s1 }
0x10da   :  { %3537 = vrot.lane.b32.xlu0 %v3536_v9, %s6717_s27  ;;  %3528 = vrot.lane.b32.xlu1 %v3527_v8, %s6718_s10 }
0x10de   :  { %3799 = vperm.xlu0 %6491, %v3770_v54  }
0x10e2   :  { %6494 = vset.pattern.permute.xlu0 %v9699_v21 }
0x10e3   :  { %3843 = vperm.xlu0 %6494, %v3771_v17  }
0x10e7   :  { %3847 = vperm.xlu0 %6494, %v3772_v11  }
0x10eb   :  { %6497 = vset.pattern.permute.xlu0 %v9714_v36 }
0x10ec   :  { %3776 = vperm.xlu0 %6497, %v3770_v54  }
0x10f0   :  { %3791 = vperm.xlu0 %6497, %v3773_v41  }
0x1130   :  { %v3411_v28 = vpop.permute.xlu0 %3410  ;;  %v3403_v37 = vpop.permute.xlu1 %3402 }
0x1131   :  { %v3405_v6 = vadd.f32 %v3403_v37, %v3397_v23  ;;  %v3642_v23 = vld [vmem:[%s9398_s14 + $0x8] sm:$0xff] }
0x1132   :  { %v3879_v37 = vld [vmem:[%s9400_s16 + $0x8] sm:$0xff] }
0x1133   :  { %v3413_v59 = vadd.f32 %v3411_v28, %v3405_v6  ;;  %v3643_v28 = vld [vmem:[%s9398_s14 + $0x10] sm:$0xff] }
0x1134   :  { %v3427_v49 = vpop.permute.xlu0 %3426  ;;  %v3419_v13 = vpop.permute.xlu1 %3418 }
0x1135   :  { %v3421_v20 = vadd.f32 %v3419_v13, %v3413_v59 }
0x1137   :  { %v3429_v4 = vadd.f32 %v3427_v49, %v3421_v20 }
0x1138   :  { %v3443_v62 = vpop.permute.xlu0 %3442  ;;  %v3435_v46 = vpop.permute.xlu1 %3434 }
0x1139   :  { %v3437_v31 = vadd.f32 %v3435_v46, %v3429_v4 }
0x113b   :  { %v3445_v12 = vadd.f32 %v3443_v62, %v3437_v31 }
0x113c   :  { %v3459_v55 = vpop.permute.xlu0 %3458  ;;  %v3451_v58 = vpop.permute.xlu1 %3450 }
0x113d   :  { %v3453_v24 = vadd.f32 %v3451_v58, %v3445_v12 }
0x113f   :  { %v3461_v57 = vadd.f32 %v3459_v55, %v3453_v24 }
0x1140   :  { %v3484_v52 = vpop.permute.xlu0 %3483  ;;  %v3475_v3 = vpop.permute.xlu1 %3474 }
0x1141   :  { %v3468_v39 = vadd.f32 %v3466_v48, %v3461_v57 }
0x1143   :  { %v3477_v56 = vadd.f32 %v3475_v3, %v3468_v39  ;;  %v3881_v3 = vld [vmem:[%s9400_s16 + $0x18] sm:$0xff] }
0x1144   :  { %v3502_v22 = vpop.permute.xlu0 %3501  ;;  %v3493_v26 = vpop.permute.xlu1 %3492 }
0x1145   :  { %v3486_v1 = vadd.f32 %v3484_v52, %v3477_v56  ;;  %v3880_v52 = vld [vmem:[%s9400_s16 + $0x10] sm:$0xff] }
0x1146   :  { %v6336_v56 = vpack.c.bf16 %v3881_v3, %v3880_v52 }
0x1147   :  { %v3495_v18 = vadd.f32 %v3493_v26, %v3486_v1  ;;  %v3882_v26 = vld [vmem:[%s9400_s16 + $0x20] sm:$0xff]  ;;  %v3883_v1 = vld [vmem:[%s9400_s16 + $0x28] sm:$0x3] }
0x1148   :  { %v3511_v25 = vpop.permute.xlu1 %3510  ;;  %v3520_v50 = vpop.permute.xlu0 %3519 }
0x1149   :  { %v3504_v44 = vadd.f32 %v3502_v22, %v3495_v18  ;;  %v6340_v18 = vpack.c.bf16 %v3883_v1, %v3882_v26  ;;  %v4038_v1 = vld [vmem:[%s9408_s24 + $0x30] sm:$0xff] }
0x114b   :  { %v3513_v63 = vadd.f32 %v3511_v25, %v3504_v44 }
0x114c   :  { %v3529_v19 = vpop.permute.xlu1 %3528  ;;  %v3538_v2 = vpop.permute.xlu0 %3537 }
0x114d   :  { %v3522_v38 = vadd.f32 %v3520_v50, %v3513_v63 }
0x114f   :  { %v3531_v42 = vadd.f32 %v3529_v19, %v3522_v38 }
0x1151   :  { %v3540_v53 = vadd.f32 %v3538_v2, %v3531_v42 }
0x1153   :  { %v5335_v27 = vmul.f32 -1.442695, %v3540_v53 }
0x1155   :  { %6563 = vpow2.f32 %v5335_v27 }
0x115d   :  { %v3800_v44 = vpop.permute.xlu0 %3799 }
0x115f   :  { %v6564_v9 = vpop.eup %6563 }
0x1160   :  { %v3544_v8 = vadd.f32 1.0, %v6564_v9 }
0x1162   :  { %6565 = vrcp.f32 %v3544_v8  ;;  %v3844_v9 = vpop.permute.xlu0 %3843 }
0x116c   :  { %v6566_v5 = vpop.eup %6565 }
0x116d   :  { %3557 = vrot.lane.b32.xlu1 %v6566_v5, %s9721_s4 }
0x1171   :  { %3803 = vperm.xlu1 %6492, %v3771_v17  }
0x1175   :  { %6493 = vset.pattern.permute.xlu1 %v9699_v21 }
0x1176   :  { %3839 = vperm.xlu1 %6493, %v3770_v54  }
0x117a   :  { %6495 = vset.pattern.permute.xlu1 %v9700_v16 }
0x117b   :  { %3807 = vperm.xlu1 %6495, %v3772_v11  }
0x117f   :  { %3811 = vperm.xlu1 %6495, %v3773_v41  }
0x1183   :  { %6496 = vset.pattern.permute.xlu1 %v9699_v21 }
0x1184   :  { %3851 = vperm.xlu1 %6496, %v3773_v41  }
0x1188   :  { %6498 = vset.pattern.permute.xlu1 %v9714_v36 }
0x1189   :  { %3781 = vperm.xlu1 %6498, %v3771_v17  }
0x118d   :  { %3786 = vperm.xlu1 %6498, %v3772_v11  }
0x11df   :  { %v3558_v30 = vpop.permute.xlu1 %3557 }
0x11e0   :  { %5950 = vmatmul.mubr.msk.f32.vlgmr.msra.gmra.mrb[22].mxu0 %vm3559_vm5, %v3558_v30 }
0x11e1   :  { %5956 = vmatprep.mubr.msk.f32.mxu0 %vm2837_vm13, %v3641_v51 }
0x11f0   :  { %v3804_v58 = vpop.permute.xlu1 %3803 }
0x11f5   :  { %v3840_v22 = vpop.permute.xlu1 %3839 }
0x11fa   :  { %v3808_v19 = vpop.permute.xlu1 %3807 }
0x11fe   :  { %v3812_v17 = vpop.permute.xlu1 %3811 }
0x1203   :  { %v3852_v41 = vpop.permute.xlu1 %3851 }
0x12b3   :  { %v3631_v14 = vpop.f32.mrb[22].mxu0 }
0x12b4   :  { %v3638_v33 = vrot.slane %v3631_v14, %v9755_v35  ;;  %v5951_v40 = vpop.f32.mrb[23].mxu0  ;;  %v3848_v14 = vpop.permute.xlu0 %3847 }
0x12b6   :  { %v3639_v45 = vmul.f32 %v3638_v33, %v8917_v60  ;;  %v3640_v7 = vmul.f32 %v3638_v33, %v8914_v10  ;;  %v3644_v60 = vld [vmem:[%s9398_s14 + $0x18] sm:$0xff]  ;;  %v3878_v10 = vld [vmem:[%s9400_s16] sm:$0xff] }
0x12b7   :  { %v6332_v6 = vpack.c.bf16 %v3879_v37, %v3878_v10 }
0x12b8   :  { %v6328_v32 = vpack.c.bf16 %v3640_v7, %v3639_v45  ;;  %v3777_v40 = vpop.permute.xlu0 %3776  ;;  %v3782_v45 = vpop.permute.xlu1 %3781 }
0x12b9   :  { %6333 = vmatprep.subr.bf16.mxu1 %v6332_v6 }
0x12ba   :  { %6329 = vmatprep.subr.bf16.mxu0 %v6328_v32  ;;  %6335 = vmatpush3.bf16.msra.mxu1 %v6332_v6 }
0x12bb   :  { %6331 = vmatpush3.bf16.msra.mxu0 %v6328_v32  ;;  %6337 = vmatprep.subr.bf16.mxu1 %v6336_v56 }
0x12bc   :  { %v3792_v7 = vpop.permute.xlu0 %3791  ;;  %v3787_v32 = vpop.permute.xlu1 %3786 }
0x12be   :  { %5957 = vmatmul.mubr.msk.f32.vlgmr.msra.gmra.mrb[24].mxu0 %vm2837_vm13, %v3642_v23  ;;  %6339 = vmatpush3.bf16.msra.mxu1 %v6336_v56 }
0x12bf   :  { %5959 = vmatprep.mubr.msk.f32.mxu0 %vm2837_vm13, %v3643_v28  ;;  %6342 = vmatprep.subr.msk.bf16.mxu1 %vm6341_vm6, %v6340_v18 }
0x12c2   :  { %5960 = vmatmul.mubr.msk.f32.gmra.mrb[26].mxu0 %vm2837_vm13, %v3644_v60  ;;  %6345 = vmatpush3.bf16.msk.msra.mxu1 %vm6341_vm6, %v6340_v18  ;;  %v4065_v18 = vld [vmem:[%s9409_s25 + $0x28] sm:$0xff] }
0x1391   :  { %v5958_v59 = vpop.f32.mrb[24].mxu0 }
0x1392   :  { %v5343_v49 = vmul.f32 -1.442695, %v5958_v59  ;;  %v3723_v13 = vpop.f32.mrb[25].mxu0 }
0x1393   :  { %v5342_v20 = vmul.f32 -1.442695, %v3723_v13 }
0x1394   :  { %6567 = vpow2.f32 %v5343_v49 }
0x1395   :  { %6569 = vpow2.f32 %v5342_v20  ;;  %v5961_v4 = vpop.f32.mrb[26].mxu0 }
0x1396   :  { %v5345_v62 = vmul.f32 -1.442695, %v5961_v4  ;;  %v3733_v46 = vpop.f32.mrb[27].mxu0 }
0x1397   :  { %v5344_v15 = vmul.f32 -1.442695, %v3733_v46 }
0x1398   :  { %6571 = vpow2.f32 %v5345_v62 }
0x1399   :  { %6573 = vpow2.f32 %v5344_v15 }
0x139e   :  { %v6568_v31 = vpop.eup %6567 }
0x139f   :  { %v6570_v12 = vpop.eup %6569  ;;  %v3755_v34 = vadd.f32 1.0, %v6568_v31 }
0x13a0   :  { %v3754_v55 = vadd.f32 1.0, %v6570_v12 }
0x13a1   :  { %6575 = vrcp.f32 %v3755_v34 }
0x13a2   :  { %v6572_v24 = vpop.eup %6571  ;;  %6577 = vrcp.f32 %v3754_v55 }
0x13a3   :  { %v6574_v57 = vpop.eup %6573  ;;  %v3757_v48 = vadd.f32 1.0, %v6572_v24 }
0x13a4   :  { %v3756_v39 = vadd.f32 1.0, %v6574_v57 }
0x13a5   :  { %6579 = vrcp.f32 %v3757_v48 }
0x13a6   :  { %6581 = vrcp.f32 %v3756_v39 }
0x13ab   :  { %v6576_v25 = vpop.eup %6575 }
0x13ac   :  { %v6578_v50 = vpop.eup %6577  ;;  %v3767_v63 = vmul.f32 %v6576_v25, %v5958_v59  ;;  %v4037_v25 = vld [vmem:[%s9408_s24 + $0x28] sm:$0xff] }
0x13ad   :  { %v3766_v38 = vmul.f32 %v6578_v50, %v3723_v13  ;;  %v4066_v50 = vld [vmem:[%s9409_s25 + $0x30] sm:$0xff] }
0x13ae   :  { %v3815_v42 = vmul.f32 %v3804_v58, %v3767_v63  ;;  %v3855_v5 = vmul.f32 %v3844_v9, %v3767_v63  ;;  %v3795_v10 = vmul.f32 %v3782_v45, %v3767_v63  ;;  %v4040_v63 = vld [vmem:[%s9408_s24 + $0x40] sm:$0xff] }
0x13af   :  { %v6580_v2 = vpop.eup %6579  ;;  %v3814_v53 = vmul.f32 %v3800_v44, %v3766_v38  ;;  %v3854_v51 = vmul.f32 %v3840_v22, %v3766_v38  ;;  %v3794_v60 = vmul.f32 %v3777_v40, %v3766_v38  ;;  %v4039_v44 = vld [vmem:[%s9408_s24 + $0x38] sm:$0xff] }
0x13b0   :  { %v6582_v27 = vpop.eup %6581  ;;  %3824 = vrot.lane.b32.xlu0 %v3815_v42, %s9721_s4  ;;  %v3769_v8 = vmul.f32 %v6580_v2, %v5961_v4 }
0x13b1   :  { %3822 = vrot.lane.b32.xlu1 %v3814_v53, %s9721_s4  ;;  %v3768_v30 = vmul.f32 %v6582_v27, %v3733_v46 }
0x13b2   :  { %v3817_v54 = vmul.f32 %v3812_v17, %v3769_v8  ;;  %v3857_v35 = vmul.f32 %v3852_v41, %v3769_v8  ;;  %v3797_v15 = vmul.f32 %v3792_v7, %v3769_v8  ;;  %v4067_v7 = vld [vmem:[%s9409_s25 + $0x38] sm:$0xff] }
0x13b3   :  { %v3816_v11 = vmul.f32 %v3808_v19, %v3768_v30  ;;  %v3856_v33 = vmul.f32 %v3848_v14, %v3768_v30  ;;  %v3796_v46 = vmul.f32 %v3787_v32, %v3768_v30  ;;  %v4068_v32 = vld [vmem:[%s9409_s25 + $0x40] sm:$0xff] }
0x13b4   :  { %3864 = vrot.lane.b32.xlu0 %v3855_v5, %s9731_s29 }
0x13b5   :  { %3862 = vrot.lane.b32.xlu1 %v3854_v51, %s9731_s29 }
0x13b8   :  { %3828 = vrot.lane.b32.xlu0 %v3817_v54, %s9721_s4 }
0x13b9   :  { %3826 = vrot.lane.b32.xlu1 %v3816_v11, %s9721_s4 }
0x13bc   :  { %3868 = vrot.lane.b32.xlu0 %v3857_v35, %s9731_s29 }
0x13bd   :  { %3866 = vrot.lane.b32.xlu1 %v3856_v33, %s9731_s29 }
0x1422   :  { %v3825_v23 = vpop.permute.xlu0 %3824 }
0x1423   :  { %v3823_v28 = vpop.permute.xlu1 %3822  ;;  %v3835_v59 = vadd.f32 %v3825_v23, %v3795_v10  ;;  %v4121_v23 = vld [vmem:[%s9401_s17] sm:$0xff] }
0x1424   :  { %v3834_v37 = vadd.f32 %v3823_v28, %v3794_v60  ;;  %5988 = vmatprep.mubr.msk.f32.mxu0 %vm4123_vm10, %v4121_v23 }
0x1426   :  { %v3865_v6 = vpop.permute.xlu0 %3864 }
0x1427   :  { %v3863_v49 = vpop.permute.xlu1 %3862  ;;  %v3875_v20 = vadd.f32 %v3865_v6, %v3835_v59 }
0x1428   :  { %v3874_v13 = vadd.f32 %v3863_v49, %v3834_v37 }
0x142a   :  { %5974 = vmatprep.mubr.msk.f32.mxu1 %vm3884_vm11, %v3874_v13  ;;  %v3829_v4 = vpop.permute.xlu0 %3828 }
0x142b   :  { %5975 = vmatmul.mubr.msk.f32.vlgmr.msra.gmra.mrb[12].mxu1 %vm3884_vm11, %v3875_v20  ;;  %v3827_v62 = vpop.permute.xlu1 %3826  ;;  %v3837_v34 = vadd.f32 %v3829_v4, %v3797_v15 }
0x142c   :  { %v3836_v31 = vadd.f32 %v3827_v62, %v3796_v46 }
0x142e   :  { %v3869_v12 = vpop.permute.xlu0 %3868 }
0x142f   :  { %v3867_v55 = vpop.permute.xlu1 %3866  ;;  %v3877_v24 = vadd.f32 %v3869_v12, %v3837_v34 }
0x1430   :  { %v3876_v58 = vadd.f32 %v3867_v55, %v3836_v31 }
0x1432   :  { %5977 = vmatprep.mubr.msk.f32.mxu1 %vm3884_vm11, %v3876_v58 }
0x1433   :  { %5978 = vmatmul.mubr.msk.f32.gmra.mrb[14].mxu1 %vm3884_vm11, %v3877_v24 }
0x14fe   :  { %v5976_v57 = vpop.f32.mrb[12].mxu1 }
0x14ff   :  { %v3966_v48 = vpop.f32.mrb[13].mxu1  ;;  %v3988_v52 = vsel %vm2973_vm14, %v5976_v57, 0.0 }
0x1500   :  { %3989 = vadd.xlane.f32.xlu0 %v3988_v52  ;;  %v3985_v3 = vsel %vm2973_vm14, %v3966_v48, 0.0 }
0x1501   :  { %3986 = vadd.xlane.f32.xlu1 %v3985_v3 }
0x1506   :  { %v5979_v39 = vpop.f32.mrb[14].mxu1 }
0x1507   :  { %v3976_v56 = vpop.f32.mrb[15].mxu1  ;;  %v3994_v22 = vsel %vm2973_vm14, %v5979_v39, 0.0 }
0x1508   :  { %3995 = vadd.xlane.f32.xlu1 %v3994_v22  ;;  %v3991_v26 = vsel %vm2973_vm14, %v3976_v56, 0.0 }
0x1509   :  { %3992 = vadd.xlane.f32.xlu0 %v3991_v26 }
0x1519   :  { %4048 = vperm.xlu1 %6498, %v4038_v1  }
0x151d   :  { %4071 = vperm.xlu1 %6498, %v4065_v18  }
0x151f   :  { %4043 = vperm.xlu0 %6497, %v4037_v25  }
0x1521   :  { %4053 = vperm.xlu1 %6498, %v4039_v44  }
0x1523   :  { %4076 = vperm.xlu0 %6497, %v4066_v50  }
0x1527   :  { %4058 = vperm.xlu0 %6497, %v4040_v63  }
0x158d   :  { %v3990_v38 = vpop.xlane.xlu0 %3989 }
0x158e   :  { %v3998_v19 = vmul.f32 0.035714287, %v3990_v38  ;;  %v3987_v42 = vpop.xlane.xlu1 %3986 }
0x158f   :  { %v3997_v2 = vmul.f32 0.035714287, %v3987_v42 }
0x1590   :  { %v4002_v53 = vsub.f32 %v5976_v57, %v3998_v19 }
0x1591   :  { %v4001_v27 = vsub.f32 %v3966_v48, %v3997_v2 }
0x1592   :  { %v4006_v9 = vmul.f32 %v4002_v53, %v4002_v53 }
0x1593   :  { %v4005_v8 = vmul.f32 %v4001_v27, %v4001_v27 }
0x1594   :  { %v4012_v5 = vsel %vm2973_vm14, %v4006_v9, 0.0 }
0x1595   :  { %4013 = vadd.xlane.f32.xlu1 %v4012_v5  ;;  %v3996_v30 = vpop.xlane.xlu1 %3995  ;;  %v4009_v51 = vsel %vm2973_vm14, %v4005_v8, 0.0 }
0x1596   :  { %v4000_v17 = vmul.f32 0.035714287, %v3996_v30  ;;  %4010 = vadd.xlane.f32.xlu0 %v4009_v51  ;;  %v3993_v54 = vpop.xlane.xlu0 %3992 }
0x1597   :  { %v3999_v11 = vmul.f32 0.035714287, %v3993_v54 }
0x1598   :  { %v4004_v41 = vsub.f32 %v5979_v39, %v4000_v17 }
0x1599   :  { %v4003_v14 = vsub.f32 %v3976_v56, %v3999_v11  ;;  %v4049_v28 = vpop.permute.xlu1 %4048 }
0x159a   :  { %v4008_v35 = vmul.f32 %v4004_v41, %v4004_v41 }
0x159b   :  { %v4007_v33 = vmul.f32 %v4003_v14, %v4003_v14 }
0x159c   :  { %v4018_v40 = vsel %vm2973_vm14, %v4008_v35, 0.0 }
0x159d   :  { %4019 = vadd.xlane.f32.xlu1 %v4018_v40  ;;  %v4015_v45 = vsel %vm2973_vm14, %v4007_v33, 0.0  ;;  %v4072_v10 = vpop.permute.xlu1 %4071 }
0x159e   :  { %4016 = vadd.xlane.f32.xlu0 %v4015_v45  ;;  %v4044_v60 = vpop.permute.xlu0 %4043 }
0x15a1   :  { %v4054_v6 = vpop.permute.xlu1 %4053 }
0x15a2   :  { %v4077_v37 = vpop.permute.xlu0 %4076 }
0x15a6   :  { %v4059_v59 = vpop.permute.xlu0 %4058 }
0x15ae   :  { %4081 = vperm.xlu1 %6498, %v4067_v7  }
0x15b4   :  { %4086 = vperm.xlu0 %6497, %v4068_v32  }
0x1622   :  { %v4014_v49 = vpop.xlane.xlu1 %4013 }
0x1623   :  { %v4022_v13 = vmul.f32 0.035714287, %v4014_v49  ;;  %v4011_v20 = vpop.xlane.xlu0 %4010 }
0x1624   :  { %v4021_v4 = vmul.f32 0.035714287, %v4011_v20  ;;  %v4231_v20 = vld [vmem:[%s9408_s24 + $0x48] sm:$0xff] }
0x1625   :  { %v4026_v62 = vadd.f32 1e-05, %v4022_v13  ;;  %v4232_v13 = vld [vmem:[%s9408_s24 + $0x50] sm:$0xff] }
0x1626   :  { %v4025_v46 = vadd.f32 1e-05, %v4021_v4 }
0x1627   :  { %6583 = vrsqrt.f32 %v4026_v62 }
0x1628   :  { %6585 = vrsqrt.f32 %v4025_v46 }
0x162a   :  { %v4020_v15 = vpop.xlane.xlu1 %4019 }
0x162b   :  { %v4024_v31 = vmul.f32 0.035714287, %v4020_v15  ;;  %v4017_v12 = vpop.xlane.xlu0 %4016 }
0x162c   :  { %v4023_v34 = vmul.f32 0.035714287, %v4017_v12 }
0x162d   :  { %v4028_v55 = vadd.f32 1e-05, %v4024_v31 }
0x162e   :  { %v4027_v58 = vadd.f32 1e-05, %v4023_v34  ;;  %v4082_v42 = vpop.permute.xlu1 %4081 }
0x162f   :  { %6587 = vrsqrt.f32 %v4028_v55 }
0x1630   :  { %6589 = vrsqrt.f32 %v4027_v58 }
0x1631   :  { %v6584_v24 = vpop.eup %6583 }
0x1632   :  { %v6586_v57 = vpop.eup %6585  ;;  %v4034_v48 = vmul.f32 %v6584_v24, %v4002_v53 }
0x1633   :  { %v4033_v52 = vmul.f32 %v6586_v57, %v4001_v27  ;;  %v4087_v19 = vpop.permute.xlu0 %4086  ;;  %v4245_v57 = vld [vmem:[%s9409_s25 + $0x48] sm:$0xff] }
0x1634   :  { %v4062_v3 = vmul.f32 %v4049_v28, %v4034_v48  ;;  %v4246_v48 = vld [vmem:[%s9409_s25 + $0x50] sm:$0xff] }
0x1635   :  { %v4061_v39 = vmul.f32 %v4044_v60, %v4033_v52  ;;  %v4259_v52 = vld [vmem:[%s9402_s18] sm:$0xff] }
0x1636   :  { %v4090_v56 = vadd.f32 %v4077_v37, %v4062_v3 }
0x1637   :  { %v4089_v22 = vadd.f32 %v4072_v10, %v4061_v39  ;;  %v4122_v10 = vld [vmem:[%s9401_s17 + $0x8] sm:$0xff] }
0x1638   :  { %v5352_v26 = vmul.f32 -1.442695, %v4090_v56 }
0x1639   :  { %v6588_v1 = vpop.eup %6587  ;;  %v5351_v18 = vmul.f32 -1.442695, %v4089_v22 }
0x163a   :  { %v6590_v25 = vpop.eup %6589  ;;  %v4036_v44 = vmul.f32 %v6588_v1, %v4004_v41  ;;  %6591 = vpow2.f32 %v5352_v26 }
0x163b   :  { %v4035_v50 = vmul.f32 %v6590_v25, %v4003_v14  ;;  %6593 = vpow2.f32 %v5351_v18 }
0x163c   :  { %v4064_v63 = vmul.f32 %v4059_v59, %v4036_v44 }
0x163d   :  { %v4063_v38 = vmul.f32 %v4054_v6, %v4035_v50 }
0x163e   :  { %v4092_v2 = vadd.f32 %v4087_v19, %v4064_v63 }
0x163f   :  { %v4091_v9 = vadd.f32 %v4082_v42, %v4063_v38 }
0x1640   :  { %v5354_v53 = vmul.f32 -1.442695, %v4092_v2 }
0x1641   :  { %v5353_v27 = vmul.f32 -1.442695, %v4091_v9 }
0x1642   :  { %6595 = vpow2.f32 %v5354_v53 }
0x1643   :  { %6597 = vpow2.f32 %v5353_v27 }
0x1644   :  { %v6592_v8 = vpop.eup %6591 }
0x1645   :  { %v6594_v5 = vpop.eup %6593  ;;  %v4106_v30 = vadd.f32 1.0, %v6592_v8  ;;  %v4260_v8 = vld [vmem:[%s9402_s18 + $0x8] sm:$0xff] }
0x1646   :  { %v4105_v51 = vadd.f32 1.0, %v6594_v5  ;;  %v4261_v5 = vld [vmem:[%s9402_s18 + $0x10] sm:$0xff] }
0x1647   :  { %6599 = vrcp.f32 %v4106_v30  ;;  %v4262_v30 = vld [vmem:[%s9402_s18 + $0x18] sm:$0xff] }
0x1648   :  { %6601 = vrcp.f32 %v4105_v51  ;;  %v4388_v51 = vld [vmem:[%s9403_s19] sm:$0xff] }
0x164c   :  { %v6596_v17 = vpop.eup %6595 }
0x164d   :  { %v6598_v54 = vpop.eup %6597  ;;  %v4108_v11 = vadd.f32 1.0, %v6596_v17  ;;  %v4389_v17 = vld [vmem:[%s9403_s19 + $0x8] sm:$0xff] }
0x164e   :  { %v4107_v41 = vadd.f32 1.0, %v6598_v54  ;;  %v6358_v54 = vpack.c.bf16 %v4389_v17, %v4388_v51 }
0x164f   :  { %6603 = vrcp.f32 %v4108_v11  ;;  %v4390_v11 = vld [vmem:[%s9403_s19 + $0x10] sm:$0xff] }
0x1650   :  { %6605 = vrcp.f32 %v4107_v41  ;;  %6359 = vmatprep.subr.bf16.mxu1 %v6358_v54  ;;  %v4391_v41 = vld [vmem:[%s9403_s19 + $0x18] sm:$0xf] }
0x1651   :  { %v6600_v14 = vpop.eup %6599  ;;  %6361 = vmatpush3.bf16.msra.mxu1 %v6358_v54 }
0x1652   :  { %v6602_v35 = vpop.eup %6601  ;;  %v4118_v33 = vmul.f32 %v6600_v14, %v4090_v56  ;;  %v6362_v14 = vpack.c.bf16 %v4391_v41, %v4390_v11 }
0x1653   :  { %v4117_v40 = vmul.f32 %v6602_v35, %v4089_v22 }
0x1655   :  { %v6346_v45 = vpack.c.bf16 %v4118_v33, %v4117_v40  ;;  %v4492_v33 = vld [vmem:[%s9404_s20] sm:$0xff]  ;;  %v4493_v40 = vld [vmem:[%s9404_s20 + $0x8] sm:$0xff] }
0x1657   :  { %6347 = vmatprep.subr.bf16.mxu0 %v6346_v45 }
0x1658   :  { %6349 = vmatpush3.bf16.msra.mxu0 %v6346_v45  ;;  %v4494_v45 = vld [vmem:[%s9404_s20 + $0x10] sm:$0xff] }
0x1659   :  { %v6604_v7 = vpop.eup %6603 }
0x165a   :  { %v6606_v32 = vpop.eup %6605  ;;  %v4120_v23 = vmul.f32 %v6604_v7, %v4092_v2  ;;  %v4495_v7 = vld [vmem:[%s9404_s20 + $0x18] sm:$0xff]  ;;  %s9758_s20 = smov 122  }
0x165b   :  { %v4119_v28 = vmul.f32 %v6606_v32, %v4091_v9 }
0x165d   :  { %v6350_v60 = vpack.c.bf16 %v4120_v23, %v4119_v28 }
0x165f   :  { %6351 = vmatprep.subr.bf16.mxu0 %v6350_v60 }
0x1660   :  { %6353 = vmatpush3.bf16.msra.mxu0 %v6350_v60 }
0x1663   :  { %5989 = vmatmul.mubr.msk.f32.vlgmr.msra.gmra.mrb[28].mxu0 %vm4123_vm10, %v4122_v10 }
0x1664   :  { %5995 = vmatprep.mubr.msk.f32.mxu0 %vm2837_vm13, %v4259_v52 }
0x1736   :  { %v5990_v37 = vpop.f32.mrb[28].mxu0 }
0x1737   :  { %v4196_v6 = vpop.f32.mrb[29].mxu0  ;;  %v4208_v59 = vsel %vm2973_vm14, %v5990_v37, 0.0 }
0x1738   :  { %4209 = vadd.xlane.f32.xlu0 %v4208_v59  ;;  %v4205_v49 = vsel %vm2973_vm14, %v4196_v6, 0.0 }
0x1739   :  { %4206 = vadd.xlane.f32.xlu1 %v4205_v49 }
0x174a   :  { %4240 = vperm.xlu1 %6498, %v4232_v13  }
0x174e   :  { %4235 = vperm.xlu0 %6497, %v4231_v20  }
0x17c5   :  { %v4210_v4 = vpop.xlane.xlu0 %4209 }
0x17c6   :  { %v4212_v62 = vmul.f32 0.035714287, %v4210_v4  ;;  %v4207_v46 = vpop.xlane.xlu1 %4206 }
0x17c7   :  { %v4211_v15 = vmul.f32 0.035714287, %v4207_v46 }
0x17c8   :  { %v4214_v31 = vsub.f32 %v5990_v37, %v4212_v62 }
0x17c9   :  { %v4213_v12 = vsub.f32 %v4196_v6, %v4211_v15 }
0x17ca   :  { %v4216_v34 = vmul.f32 %v4214_v31, %v4214_v31  ;;  %v4241_v3 = vpop.permute.xlu1 %4240 }
0x17cb   :  { %v4215_v55 = vmul.f32 %v4213_v12, %v4213_v12 }
0x17cc   :  { %v4220_v58 = vsel %vm2973_vm14, %v4216_v34, 0.0 }
0x17cd   :  { %4221 = vadd.xlane.f32.xlu1 %v4220_v58  ;;  %v4217_v24 = vsel %vm2973_vm14, %v4215_v55, 0.0  ;;  %v4236_v39 = vpop.permute.xlu0 %4235 }
0x17ce   :  { %4218 = vadd.xlane.f32.xlu0 %v4217_v24 }
0x17de   :  { %4249 = vperm.xlu1 %6498, %v4245_v57  }
0x17e2   :  { %6499 = vset.pattern.permute.xlu1 %v9700_v16 }
0x17e3   :  { %4521 = vperm.xlu1 %6499, %v4492_v33  }
0x17e4   :  { %4254 = vperm.xlu0 %6497, %v4246_v48  }
0x17e7   :  { %6501 = vset.pattern.permute.xlu1 %v9699_v21 }
0x17e8   :  { %6500 = vset.pattern.permute.xlu0 %v9700_v16  ;;  %4561 = vperm.xlu1 %6501, %v4492_v33  }
0x17e9   :  { %4525 = vperm.xlu0 %6500, %v4493_v40  }
0x17ec   :  { %4565 = vperm.xlu1 %6501, %v4493_v40  }
0x17ed   :  { %4529 = vperm.xlu0 %6500, %v4494_v45  }
0x17f0   :  { %6502 = vset.pattern.permute.xlu1 %v9704_v47 }
0x17f1   :  { %4533 = vperm.xlu0 %6500, %v4495_v7   ;;  %4601 = vperm.xlu1 %6502, %v4492_v33  }
0x17f5   :  { %6503 = vset.pattern.permute.xlu0 %v9699_v21  ;;  %4605 = vperm.xlu1 %6502, %v4493_v40  }
0x17f6   :  { %4569 = vperm.xlu0 %6503, %v4494_v45  }
0x17f9   :  { %6504 = vset.pattern.permute.xlu1 %v9705_v61 }
0x17fa   :  { %6506 = vset.pattern.permute.xlu0 %v9705_v61  ;;  %4641 = vperm.xlu1 %6504, %v4492_v33  }
0x17fb   :  { %4645 = vperm.xlu0 %6506, %v4493_v40  }
0x17fe   :  { %6505 = vset.pattern.permute.xlu1 %v9699_v21 }
0x17ff   :  { %6509 = vset.pattern.permute.xlu0 %v9704_v47  ;;  %4573 = vperm.xlu1 %6505, %v4495_v7  }
0x1800   :  { %4613 = vperm.xlu0 %6509, %v4495_v7  }
0x1803   :  { %6507 = vset.pattern.permute.xlu1 %v9704_v47 }
0x1804   :  { %6511 = vset.pattern.permute.xlu0 %v9707_v0  ;;  %4609 = vperm.xlu1 %6507, %v4494_v45  }
0x1805   :  { %4721 = vperm.xlu0 %6511, %v4492_v33  }
0x1808   :  { %6508 = vset.pattern.permute.xlu1 %v9706_v43 }
0x1809   :  { %6513 = vset.pattern.permute.xlu0 %v9706_v43  ;;  %4681 = vperm.xlu1 %6508, %v4492_v33  }
0x180a   :  { %4689 = vperm.xlu0 %6513, %v4494_v45  }
0x180d   :  { %4685 = vperm.xlu1 %6508, %v4493_v40  }
0x180e   :  { %6516 = vset.pattern.permute.xlu0 %v9708_v29 }
0x180f   :  { %4765 = vperm.xlu0 %6516, %v4493_v40  }
0x1811   :  { %6510 = vset.pattern.permute.xlu1 %v9705_v61 }
0x1812   :  { %4649 = vperm.xlu1 %6510, %v4494_v45  }
0x1813   :  { %4769 = vperm.xlu0 %6516, %v4494_v45  }
0x1816   :  { %4653 = vperm.xlu1 %6510, %v4495_v7  }
0x1817   :  { %6519 = vset.pattern.permute.xlu0 %v9714_v36 }
0x1818   :  { %4498 = vperm.xlu0 %6519, %v4492_v33  }
0x181a   :  { %6512 = vset.pattern.permute.xlu1 %v9707_v0 }
0x181b   :  { %4725 = vperm.xlu1 %6512, %v4493_v40  }
0x181c   :  { %4513 = vperm.xlu0 %6519, %v4495_v7  }
0x181f   :  { %6514 = vset.pattern.permute.xlu1 %v9708_v29 }
0x1820   :  { %4761 = vperm.xlu1 %6514, %v4492_v33  }
0x1824   :  { %6515 = vset.pattern.permute.xlu1 %v9706_v43 }
0x1825   :  { %4693 = vperm.xlu1 %6515, %v4495_v7  }
0x1829   :  { %6517 = vset.pattern.permute.xlu1 %v9707_v0 }
0x182a   :  { %4729 = vperm.xlu1 %6517, %v4494_v45  }
0x182e   :  { %4733 = vperm.xlu1 %6517, %v4495_v7  }
0x1832   :  { %6518 = vset.pattern.permute.xlu1 %v9708_v29 }
0x1833   :  { %4773 = vperm.xlu1 %6518, %v4495_v7   ;;  %v4800_v7 = vld [vmem:[%s9759_s6] sm:$0xff] }
0x1837   :  { %6520 = vset.pattern.permute.xlu1 %v9714_v36 }
0x1838   :  { %4503 = vperm.xlu1 %6520, %v4493_v40  }
0x183c   :  { %4508 = vperm.xlu1 %6520, %v4494_v45  }
0x185a   :  { %v4222_v56 = vpop.xlane.xlu1 %4221 }
0x185b   :  { %v4224_v22 = vmul.f32 0.035714287, %v4222_v56  ;;  %v4219_v26 = vpop.xlane.xlu0 %4218 }
0x185c   :  { %v4223_v1 = vmul.f32 0.035714287, %v4219_v26 }
0x185d   :  { %v4226_v18 = vadd.f32 1e-05, %v4224_v22 }
0x185e   :  { %v4225_v25 = vadd.f32 1e-05, %v4223_v1  ;;  %v4250_v2 = vpop.permute.xlu1 %4249 }
0x185f   :  { %6607 = vrsqrt.f32 %v4226_v18 }
0x1860   :  { %6609 = vrsqrt.f32 %v4225_v25 }
0x1862   :  { %v4522_v34 = vpop.permute.xlu1 %4521 }
0x1863   :  { %v4255_v42 = vpop.permute.xlu0 %4254 }
0x1867   :  { %v4562_v55 = vpop.permute.xlu1 %4561 }
0x1868   :  { %v4526_v52 = vpop.permute.xlu0 %4525 }
0x1869   :  { %v6608_v44 = vpop.eup %6607 }
0x186a   :  { %v6610_v50 = vpop.eup %6609  ;;  %v4230_v63 = vmul.f32 %v6608_v44, %v4214_v31 }
0x186b   :  { %v4229_v16 = vmul.f32 %v6610_v50, %v4213_v12  ;;  %v4566_v58 = vpop.permute.xlu1 %4565 }
0x186c   :  { %v4244_v38 = vmul.f32 %v4241_v3, %v4230_v63 }
0x186d   :  { %v4243_v19 = vmul.f32 %v4236_v39, %v4229_v16  ;;  %v4530_v39 = vpop.permute.xlu0 %4529 }
0x186e   :  { %v4258_v9 = vadd.f32 %v4255_v42, %v4244_v38 }
0x186f   :  { %v4257_v53 = vadd.f32 %v4250_v2, %v4243_v19 }
0x1870   :  { %v4602_v24 = vpop.permute.xlu1 %4601 }
0x1871   :  { %v6354_v27 = vpack.c.bf16 %v4258_v9, %v4257_v53  ;;  %v4534_v22 = vpop.permute.xlu0 %4533 }
0x1873   :  { %6355 = vmatprep.subr.bf16.mxu0 %v6354_v27 }
0x1874   :  { %6357 = vmatpush3.bf16.msra.mxu0 %v6354_v27  ;;  %v4606_v57 = vpop.permute.xlu1 %4605 }
0x1875   :  { %v4570_v1 = vpop.permute.xlu0 %4569 }
0x1877   :  { %5996 = vmatmul.mubr.msk.f32.vlgmr.msra.gmra.mrb[30].mxu0 %vm2837_vm13, %v4260_v8 }
0x1878   :  { %5998 = vmatprep.mubr.msk.f32.mxu0 %vm2837_vm13, %v4261_v5 }
0x1879   :  { %v9197_v48 = vpop.permute.xlu1 %4641 }
0x187a   :  { %v4646_v25 = vpop.permute.xlu0 %4645 }
0x187b   :  { %5999 = vmatmul.mubr.msk.f32.gmra.mrb[32].mxu0 %vm2837_vm13, %v4262_v30  ;;  %vm9153_vm13 = vmpackc.low %vm3105_vm2, %vm6704_vm12  ;;  %vm4807_vm12 = vcmask 400384  }
0x187c   :  { %6364 = vmatprep.subr.msk.bf16.mxu1 %vm9153_vm13, %v6362_v14 }
0x187d   :  { %6367 = vmatpush3.bf16.msk.msra.mxu1 %vm9153_vm13, %v6362_v14 }
0x187e   :  { %v4574_v3 = vpop.permute.xlu1 %4573 }
0x187f   :  { %v4614_v9 = vpop.permute.xlu0 %4613 }
0x1883   :  { %v9199_v56 = vpop.permute.xlu1 %4609 }
0x1884   :  { %v4722_v30 = vpop.permute.xlu0 %4721 }
0x1888   :  { %v9201_v26 = vpop.permute.xlu1 %4681 }
0x1889   :  { %v4690_v41 = vpop.permute.xlu0 %4689 }
0x188c   :  { %v4686_v18 = vpop.permute.xlu1 %4685 }
0x1891   :  { %v9205_v50 = vpop.permute.xlu1 %4649 }
0x1895   :  { %v4654_v27 = vpop.permute.xlu1 %4653 }
0x189a   :  { %v4726_v51 = vpop.permute.xlu1 %4725 }
0x189f   :  { %v4762_v33 = vpop.permute.xlu1 %4761 }
0x194a   :  { %v5997_v21 = vpop.f32.mrb[30].mxu0 }
0x194b   :  { %v5362_v47 = vmul.f32 -1.442695, %v5997_v21  ;;  %v4341_v61 = vpop.f32.mrb[31].mxu0 }
0x194c   :  { %v5361_v32 = vmul.f32 -1.442695, %v4341_v61 }
0x194d   :  { %6611 = vpow2.f32 %v5362_v47  ;;  %v4766_v47 = vpop.permute.xlu0 %4765 }
0x194e   :  { %6613 = vpow2.f32 %v5361_v32  ;;  %v6000_v23 = vpop.f32.mrb[32].mxu0  ;;  %v4694_v32 = vpop.permute.xlu1 %4693 }
0x194f   :  { %v5364_v43 = vmul.f32 -1.442695, %v6000_v23  ;;  %v4351_v28 = vpop.f32.mrb[33].mxu0 }
0x1950   :  { %v5363_v60 = vmul.f32 -1.442695, %v4351_v28 }
0x1951   :  { %6615 = vpow2.f32 %v5364_v43 }
0x1952   :  { %6617 = vpow2.f32 %v5363_v60  ;;  %v4803_v60 = vld [vmem:[%s9759_s6 + $0x18] sm:$0xff] }
0x1957   :  { %v6612_v0 = vpop.eup %6611 }
0x1958   :  { %v6614_v10 = vpop.eup %6613  ;;  %v4373_v29 = vadd.f32 1.0, %v6612_v0 }
0x1959   :  { %v4372_v37 = vadd.f32 1.0, %v6614_v10 }
0x195a   :  { %6619 = vrcp.f32 %v4373_v29 }
0x195b   :  { %v6616_v36 = vpop.eup %6615  ;;  %6621 = vrcp.f32 %v4372_v37  ;;  %v4804_v37 = vld [vmem:[%s9759_s6 + $0x20] sm:$0xff] }
0x195c   :  { %v6618_v6 = vpop.eup %6617  ;;  %v4375_v59 = vadd.f32 1.0, %v6616_v36  ;;  %v4805_v36 = vld [vmem:[%s9759_s6 + $0x28] sm:$0xff] }
0x195d   :  { %v4374_v49 = vadd.f32 1.0, %v6618_v6  ;;  %v6376_v6 = vpack.c.bf16 %v4805_v36, %v4804_v37 }
0x195e   :  { %6623 = vrcp.f32 %v4375_v59 }
0x195f   :  { %6625 = vrcp.f32 %v4374_v49 }
0x1964   :  { %v6620_v13 = vpop.eup %6619 }
0x1965   :  { %v6622_v20 = vpop.eup %6621  ;;  %v4385_v62 = vmul.f32 %v6620_v13, %v5997_v21  ;;  %v4801_v21 = vld [vmem:[%s9759_s6 + $0x8] sm:$0xff]  ;;  %v4806_v13 = vld [vmem:[%s9759_s6 + $0x30] sm:$0x1] }
0x1966   :  { %v4384_v4 = vmul.f32 %v6622_v20, %v4341_v61  ;;  %v6368_v61 = vpack.c.bf16 %v4801_v21, %v4800_v7 }
0x1968   :  { %v6624_v46 = vpop.eup %6623  ;;  %6009 = vmatprep.mubr.msk.f32.mxu1 %vm2973_vm14, %v4384_v4  ;;  %6369 = vmatprep.subr.bf16.mxu0 %v6368_v61 }
0x1969   :  { %v6626_v15 = vpop.eup %6625  ;;  %6010 = vmatmul.mubr.msk.f32.vlgmr.msra.gmra.mrb[16].mxu1 %vm2973_vm14, %v4385_v62  ;;  %v4387_v12 = vmul.f32 %v6624_v46, %v6000_v23  ;;  %6371 = vmatpush3.bf16.msra.mxu0 %v6368_v61  ;;  %v4730_v62 = vpop.permute.xlu1 %4729 }
0x196a   :  { %v4386_v31 = vmul.f32 %v6626_v15, %v4351_v28  ;;  %v4802_v28 = vld [vmem:[%s9759_s6 + $0x10] sm:$0xff] }
0x196b   :  { %v6372_v0 = vpack.c.bf16 %v4803_v60, %v4802_v28 }
0x196c   :  { %6012 = vmatprep.mubr.msk.f32.mxu1 %vm2973_vm14, %v4386_v31 }
0x196d   :  { %6013 = vmatmul.mubr.msk.f32.gmra.mrb[18].mxu1 %vm2973_vm14, %v4387_v12  ;;  %6373 = vmatprep.subr.bf16.mxu0 %v6372_v0  ;;  %v4734_v12 = vpop.permute.xlu1 %4733 }
0x196e   :  { %6375 = vmatpush3.bf16.msra.mxu0 %v6372_v0 }
0x196f   :  { %6377 = vmatprep.subr.bf16.mxu0 %v6376_v6 }
0x1972   :  { %6379 = vmatpush3.bf16.msra.mxu0 %v6376_v6 }
0x1973   :  { %6027 = vmatprep.subr.msk.mxu0 %vm2686_vm7, %v4806_v13 }
0x1976   :  { %6028 = vmatpush3.msk.msra.mxu0 %vm2686_vm7, %v4806_v13  ;;  %vm5269_vm7 = vcmask 97280  }
0x1a3c   :  { %v9203_v44 = vpop.f32.mrb[16].mxu1 }
0x1a3d   :  { %v9207_v63 = vpop.f32.mrb[17].mxu1  ;;  %v4537_v16 = vmul.f32 %v9203_v44, %v4526_v52  ;;  %v4577_v2 = vmul.f32 %v9203_v44, %v4566_v58  ;;  %v4617_v8 = vmul.f32 %v9203_v44, %v4606_v57  ;;  %v4657_v17 = vmul.f32 %v9203_v44, %v4646_v25  ;;  %v4770_v57 = vpop.permute.xlu0 %4769 }
0x1a3e   :  { %v4536_v38 = vmul.f32 %v4522_v34, %v9207_v63  ;;  %v4576_v53 = vmul.f32 %v4562_v55, %v9207_v63  ;;  %v4697_v11 = vmul.f32 %v9203_v44, %v4686_v18  ;;  %v4737_v40 = vmul.f32 %v9203_v44, %v4726_v51 }
0x1a3f   :  { %4546 = vrot.lane.b32.xlu0 %v4537_v16, %s9753_s21  ;;  %v4777_v23 = vmul.f32 %v9203_v44, %v4766_v47  ;;  %v4616_v10 = vmul.f32 %v4602_v24, %v9207_v63  ;;  %v4656_v59 = vmul.f32 %v9197_v48, %v9207_v63  ;;  %v4696_v20 = vmul.f32 %v9201_v26, %v9207_v63  ;;  %v4774_v24 = vpop.permute.xlu1 %4773 }
0x1a40   :  { %v9212_v19 = vpop.f32.mrb[18].mxu1  ;;  %4544 = vrot.lane.b32.xlu1 %v4536_v38, %s9753_s21  ;;  %v4736_v46 = vmul.f32 %v4722_v30, %v9207_v63  ;;  %v4776_v31 = vmul.f32 %v4762_v33, %v9207_v63 }
0x1a41   :  { %v9215_v42 = vpop.f32.mrb[19].mxu1  ;;  %v4539_v5 = vmul.f32 %v9212_v19, %v4534_v22  ;;  %v4579_v54 = vmul.f32 %v9212_v19, %v4574_v3  ;;  %v4619_v14 = vmul.f32 %v9212_v19, %v4614_v9  ;;  %v4659_v45 = vmul.f32 %v9212_v19, %v4654_v27  ;;  %v4499_v3 = vpop.permute.xlu0 %4498 }
0x1a42   :  { %v4699_v43 = vmul.f32 %v9212_v19, %v4694_v32  ;;  %v4538_v29 = vmul.f32 %v4530_v39, %v9215_v42  ;;  %v4578_v49 = vmul.f32 %v4570_v1, %v9215_v42  ;;  %v4618_v4 = vmul.f32 %v9199_v56, %v9215_v42 }
0x1a43   :  { %4586 = vrot.lane.b32.xlu0 %v4577_v2, %s9751_s5  ;;  %v4658_v15 = vmul.f32 %v9205_v50, %v9215_v42  ;;  %v4698_v34 = vmul.f32 %v4690_v41, %v9215_v42  ;;  %v4739_v55 = vmul.f32 %v9212_v19, %v4734_v12  ;;  %v4738_v58 = vmul.f32 %v4730_v62, %v9215_v42  ;;  %v4504_v39 = vpop.permute.xlu1 %4503 }
0x1a44   :  { %4584 = vrot.lane.b32.xlu1 %v4576_v53, %s9751_s5  ;;  %v4779_v48 = vmul.f32 %v9212_v19, %v4774_v24  ;;  %v4778_v52 = vmul.f32 %v4770_v57, %v9215_v42 }
0x1a45   :  { %v4514_v56 = vpop.permute.xlu0 %4513 }
0x1a46   :  { %v4519_v0 = vmul.f32 %v9212_v19, %v4514_v56 }
0x1a47   :  { %4626 = vrot.lane.b32.xlu0 %v4617_v8, %s9728_s30  ;;  %v4509_v22 = vpop.permute.xlu1 %4508 }
0x1a48   :  { %4550 = vrot.lane.b32.xlu1 %v4539_v5, %s9753_s21 }
0x1a4b   :  { %4666 = vrot.lane.b32.xlu0 %v4657_v17, %s9729_s7 }
0x1a4c   :  { %4590 = vrot.lane.b32.xlu1 %v4579_v54, %s9751_s5  ;;  %v4516_v54 = vmul.f32 %v4499_v3, %v9207_v63 }
0x1a4f   :  { %4706 = vrot.lane.b32.xlu0 %v4697_v11, %s9730_s8  ;;  %v4517_v11 = vmul.f32 %v9203_v44, %v4504_v39 }
0x1a50   :  { %4630 = vrot.lane.b32.xlu1 %v4619_v14, %s9728_s30 }
0x1a53   :  { %4746 = vrot.lane.b32.xlu0 %v4737_v40, %s9758_s20 }
0x1a54   :  { %4670 = vrot.lane.b32.xlu1 %v4659_v45, %s9729_s7 }
0x1a57   :  { %4786 = vrot.lane.b32.xlu0 %v4777_v23, %s9721_s4 }
0x1a58   :  { %4710 = vrot.lane.b32.xlu1 %v4699_v43, %s9730_s8  ;;  %v4518_v43 = vmul.f32 %v4509_v22, %v9215_v42 }
0x1a5b   :  { %4624 = vrot.lane.b32.xlu0 %v4616_v10, %s9728_s30 }
0x1a5c   :  { %4548 = vrot.lane.b32.xlu1 %v4538_v29, %s9753_s21 }
0x1a5f   :  { %4664 = vrot.lane.b32.xlu0 %v4656_v59, %s9729_s7 }
0x1a60   :  { %4588 = vrot.lane.b32.xlu1 %v4578_v49, %s9751_s5 }
0x1a63   :  { %4704 = vrot.lane.b32.xlu0 %v4696_v20, %s9730_s8 }
0x1a64   :  { %4628 = vrot.lane.b32.xlu1 %v4618_v4, %s9728_s30 }
0x1a67   :  { %4744 = vrot.lane.b32.xlu0 %v4736_v46, %s9758_s20 }
0x1a68   :  { %4668 = vrot.lane.b32.xlu1 %v4658_v15, %s9729_s7 }
0x1a6b   :  { %4784 = vrot.lane.b32.xlu0 %v4776_v31, %s9721_s4 }
0x1a6c   :  { %4708 = vrot.lane.b32.xlu1 %v4698_v34, %s9730_s8 }
0x1a6f   :  { %4750 = vrot.lane.b32.xlu0 %v4739_v55, %s9758_s20 }
0x1a70   :  { %4748 = vrot.lane.b32.xlu1 %v4738_v58, %s9758_s20 }
0x1a73   :  { %4790 = vrot.lane.b32.xlu0 %v4779_v48, %s9721_s4 }
0x1a74   :  { %4788 = vrot.lane.b32.xlu1 %v4778_v52, %s9721_s4  ;;  %s9761_s4 = sld [smem:[#allocation74_spill]] }
0x1ab1   :  { %v4547_v26 = vpop.permute.xlu0 %4546 }
0x1ab2   :  { %v4545_v1 = vpop.permute.xlu1 %4544  ;;  %v4557_v40 = vadd.f32 %v4547_v26, %v4517_v11 }
0x1ab3   :  { %v4556_v14 = vadd.f32 %v4545_v1, %v4516_v54 }
0x1ab5   :  { %v4587_v18 = vpop.permute.xlu0 %4586 }
0x1ab6   :  { %v4585_v25 = vpop.permute.xlu1 %4584  ;;  %v4597_v7 = vadd.f32 %v4587_v18, %v4557_v40 }
0x1ab7   :  { %v4596_v45 = vadd.f32 %v4585_v25, %v4556_v14 }
0x1ab9   :  { %v4627_v50 = vpop.permute.xlu0 %4626 }
0x1aba   :  { %v4551_v16 = vpop.permute.xlu1 %4550  ;;  %v4637_v32 = vadd.f32 %v4627_v50, %v4597_v7 }
0x1abb   :  { %v4559_v37 = vadd.f32 %v4551_v16, %v4519_v0  ;;  %v4961_v16 = vld [vmem:[%s9408_s24 + $0x60] sm:$0xff]  ;;  %v4991_v0 = vld [vmem:[%s9409_s25 + $0x70] sm:$0xff] }
0x1abd   :  { %v4667_v38 = vpop.permute.xlu0 %4666 }
0x1abe   :  { %v4591_v2 = vpop.permute.xlu1 %4590  ;;  %v4677_v28 = vadd.f32 %v4667_v38, %v4637_v32  ;;  %v4988_v38 = vld [vmem:[%s9409_s25 + $0x58] sm:$0xff] }
0x1abf   :  { %v4599_v13 = vadd.f32 %v4591_v2, %v4559_v37  ;;  %v4960_v2 = vld [vmem:[%s9408_s24 + $0x58] sm:$0xff] }
0x1ac1   :  { %v4707_v9 = vpop.permute.xlu0 %4706 }
0x1ac2   :  { %v4631_v53 = vpop.permute.xlu1 %4630  ;;  %v4717_v44 = vadd.f32 %v4707_v9, %v4677_v28  ;;  %v4962_v9 = vld [vmem:[%s9408_s24 + $0x68] sm:$0xff] }
0x1ac3   :  { %v4639_v42 = vadd.f32 %v4631_v53, %v4599_v13  ;;  %v4989_v53 = vld [vmem:[%s9409_s25 + $0x60] sm:$0xff] }
0x1ac5   :  { %v4747_v27 = vpop.permute.xlu0 %4746 }
0x1ac6   :  { %v4671_v8 = vpop.permute.xlu1 %4670  ;;  %v4757_v6 = vadd.f32 %v4747_v27, %v4717_v44  ;;  %v4963_v27 = vld [vmem:[%s9408_s24 + $0x70] sm:$0xff] }
0x1ac7   :  { %v4679_v31 = vadd.f32 %v4671_v8, %v4639_v42 }
0x1ac9   :  { %v4787_v5 = vpop.permute.xlu0 %4786 }
0x1aca   :  { %v4711_v30 = vpop.permute.xlu1 %4710  ;;  %v4797_v62 = vadd.f32 %v4787_v5, %v4757_v6 }
0x1acb   :  { %v4719_v55 = vadd.f32 %v4711_v30, %v4679_v31 }
0x1acd   :  { %v4625_v51 = vpop.permute.xlu0 %4624 }
0x1ace   :  { %v4549_v17 = vpop.permute.xlu1 %4548  ;;  %v4636_v47 = vadd.f32 %v4625_v51, %v4596_v45 }
0x1acf   :  { %v4558_v29 = vadd.f32 %v4549_v17, %v4518_v43 }
0x1ad1   :  { %v4665_v41 = vpop.permute.xlu0 %4664 }
0x1ad2   :  { %v4589_v33 = vpop.permute.xlu1 %4588  ;;  %v4676_v23 = vadd.f32 %v4665_v41, %v4636_v47 }
0x1ad3   :  { %v4598_v59 = vadd.f32 %v4589_v33, %v4558_v29 }
0x1ad5   :  { %v4705_v21 = vpop.permute.xlu0 %4704 }
0x1ad6   :  { %v4629_v61 = vpop.permute.xlu1 %4628  ;;  %v4716_v63 = vadd.f32 %v4705_v21, %v4676_v23 }
0x1ad7   :  { %v4638_v46 = vadd.f32 %v4629_v61, %v4598_v59 }
0x1ad9   :  { %v4745_v60 = vpop.permute.xlu0 %4744 }
0x1ada   :  { %v4669_v10 = vpop.permute.xlu1 %4668  ;;  %v4756_v36 = vadd.f32 %v4745_v60, %v4716_v63  ;;  %v4990_v60 = vld [vmem:[%s9409_s25 + $0x68] sm:$0xff]  ;;  %v5044_v63 = vld [vmem:[%s9760_s26] sm:$0xff] }
0x1adb   :  { %v4678_v15 = vadd.f32 %v4669_v10, %v4638_v46  ;;  %6043 = vmatprep.mubr.msk.f32.mxu1 %vm4123_vm10, %v5044_v63 }
0x1add   :  { %v4785_v49 = vpop.permute.xlu0 %4784 }
0x1ade   :  { %v4796_v20 = vadd.f32 %v4785_v49, %v4756_v36  ;;  %v4709_v4 = vpop.permute.xlu1 %4708 }
0x1adf   :  { %v4718_v34 = vadd.f32 %v4709_v4, %v4678_v15 }
0x1ae0   :  { %6029 = vmatprep.mubr.msk.f32.mxu0 %vm4807_vm12, %v4796_v20 }
0x1ae1   :  { %v4751_v19 = vpop.permute.xlu0 %4750  ;;  %6030 = vmatmul.mubr.msk.f32.vlgmr.msra.gmra.mrb[34].mxu0 %vm4807_vm12, %v4797_v62 }
0x1ae2   :  { %v4749_v12 = vpop.permute.xlu1 %4748  ;;  %v4759_v57 = vadd.f32 %v4751_v19, %v4719_v55 }
0x1ae3   :  { %v4758_v58 = vadd.f32 %v4749_v12, %v4718_v34 }
0x1ae5   :  { %v4791_v24 = vpop.permute.xlu0 %4790 }
0x1ae6   :  { %v4789_v48 = vpop.permute.xlu1 %4788  ;;  %v4799_v3 = vadd.f32 %v4791_v24, %v4759_v57 }
0x1ae7   :  { %v4798_v52 = vadd.f32 %v4789_v48, %v4758_v58 }
0x1ae9   :  { %6032 = vmatprep.mubr.msk.f32.mxu0 %vm4807_vm12, %v4798_v52 }
0x1aea   :  { %6033 = vmatmul.mubr.msk.f32.gmra.mrb[36].mxu0 %vm4807_vm12, %v4799_v3 }
0x1bb4   :  { %v6031_v39 = vpop.f32.mrb[34].mxu0 }
0x1bb5   :  { %v4889_v56 = vpop.f32.mrb[35].mxu0  ;;  %v4911_v22 = vsel %vm2973_vm14, %v6031_v39, 0.0 }
0x1bb6   :  { %4912 = vadd.xlane.f32.xlu0 %v4911_v22  ;;  %v4908_v26 = vsel %vm2973_vm14, %v4889_v56, 0.0 }
0x1bb7   :  { %4909 = vadd.xlane.f32.xlu1 %v4908_v26 }
0x1bbd   :  { %v6034_v1 = vpop.f32.mrb[36].mxu0 }
0x1bbe   :  { %v4899_v18 = vpop.f32.mrb[37].mxu0  ;;  %v4917_v25 = vsel %vm2973_vm14, %v6034_v1, 0.0 }
0x1bbf   :  { %v4914_v50 = vsel %vm2973_vm14, %v4899_v18, 0.0  ;;  %4918 = vadd.xlane.f32.xlu1 %v4917_v25 }
0x1bc0   :  { %4915 = vadd.xlane.f32.xlu0 %v4914_v50 }
0x1bd0   :  { %4971 = vperm.xlu1 %6520, %v4961_v16  }
0x1bd4   :  { %4994 = vperm.xlu1 %6520, %v4988_v38  }
0x1bd6   :  { %4966 = vperm.xlu0 %6519, %v4960_v2  }
0x1bd8   :  { %4976 = vperm.xlu1 %6520, %v4962_v9  }
0x1bda   :  { %4999 = vperm.xlu0 %6519, %v4989_v53  }
0x1bde   :  { %4981 = vperm.xlu0 %6519, %v4963_v27  }
0x1c43   :  { %v4913_v8 = vpop.xlane.xlu0 %4912 }
0x1c44   :  { %v4921_v5 = vmul.f32 0.035714287, %v4913_v8  ;;  %v4910_v30 = vpop.xlane.xlu1 %4909 }
0x1c45   :  { %v4920_v51 = vmul.f32 0.035714287, %v4910_v30 }
0x1c46   :  { %v4925_v17 = vsub.f32 %v6031_v39, %v4921_v5 }
0x1c47   :  { %v4924_v54 = vsub.f32 %v4889_v56, %v4920_v51 }
0x1c48   :  { %v4929_v11 = vmul.f32 %v4925_v17, %v4925_v17 }
0x1c49   :  { %v4928_v41 = vmul.f32 %v4924_v54, %v4924_v54 }
0x1c4a   :  { %v4935_v14 = vsel %vm2973_vm14, %v4929_v11, 0.0 }
0x1c4b   :  { %4936 = vadd.xlane.f32.xlu1 %v4935_v14  ;;  %v4932_v33 = vsel %vm2973_vm14, %v4928_v41, 0.0 }
0x1c4c   :  { %4933 = vadd.xlane.f32.xlu0 %v4932_v33  ;;  %v4919_v40 = vpop.xlane.xlu1 %4918 }
0x1c4d   :  { %v4923_v45 = vmul.f32 0.035714287, %v4919_v40  ;;  %v4916_v7 = vpop.xlane.xlu0 %4915 }
0x1c4e   :  { %v4922_v21 = vmul.f32 0.035714287, %v4916_v7 }
0x1c4f   :  { %v4927_v47 = vsub.f32 %v6034_v1, %v4923_v45 }
0x1c50   :  { %v4926_v61 = vsub.f32 %v4899_v18, %v4922_v21  ;;  %v4972_v10 = vpop.permute.xlu1 %4971 }
0x1c51   :  { %v4931_v32 = vmul.f32 %v4927_v47, %v4927_v47 }
0x1c52   :  { %v4930_v23 = vmul.f32 %v4926_v61, %v4926_v61 }
0x1c53   :  { %v4941_v43 = vsel %vm2973_vm14, %v4931_v32, 0.0 }
0x1c54   :  { %4942 = vadd.xlane.f32.xlu1 %v4941_v43  ;;  %v4938_v28 = vsel %vm2973_vm14, %v4930_v23, 0.0  ;;  %v4995_v29 = vpop.permute.xlu1 %4994  ;;  %v5045_v43 = vld [vmem:[%s9760_s26 + $0x8] sm:$0xff] }
0x1c55   :  { %4939 = vadd.xlane.f32.xlu0 %v4938_v28  ;;  %v4967_v44 = vpop.permute.xlu0 %4966 }
0x1c58   :  { %v4977_v36 = vpop.permute.xlu1 %4976 }
0x1c59   :  { %v5000_v37 = vpop.permute.xlu0 %4999 }
0x1c5d   :  { %v4982_v6 = vpop.permute.xlu0 %4981 }
0x1c65   :  { %5004 = vperm.xlu1 %6520, %v4990_v60  }
0x1c6b   :  { %5009 = vperm.xlu0 %6519, %v4991_v0  }
0x1cd8   :  { %v4937_v59 = vpop.xlane.xlu1 %4936 }
0x1cd9   :  { %v4945_v49 = vmul.f32 0.035714287, %v4937_v59  ;;  %v4934_v13 = vpop.xlane.xlu0 %4933 }
0x1cda   :  { %v4944_v20 = vmul.f32 0.035714287, %v4934_v13 }
0x1cdb   :  { %v4949_v4 = vadd.f32 1e-05, %v4945_v49 }
0x1cdc   :  { %v4948_v62 = vadd.f32 1e-05, %v4944_v20 }
0x1cdd   :  { %6627 = vrsqrt.f32 %v4949_v4 }
0x1cde   :  { %6629 = vrsqrt.f32 %v4948_v62 }
0x1ce1   :  { %v4943_v46 = vpop.xlane.xlu1 %4942 }
0x1ce2   :  { %v4947_v42 = vmul.f32 0.035714287, %v4943_v46  ;;  %v4940_v15 = vpop.xlane.xlu0 %4939  ;;  %v5167_v46 = vld [vmem:[%s9409_s25 + $0x78] sm:$0xff] }
0x1ce3   :  { %v4946_v19 = vmul.f32 0.035714287, %v4940_v15  ;;  %v5181_v15 = vld [vmem:[%s9761_s4] sm:$0xff] }
0x1ce4   :  { %v4951_v31 = vadd.f32 1e-05, %v4947_v42  ;;  %v5168_v42 = vld [vmem:[%s9409_s25 + $0x80] sm:$0xff] }
0x1ce5   :  { %v4950_v12 = vadd.f32 1e-05, %v4946_v19  ;;  %v5005_v38 = vpop.permute.xlu1 %5004  ;;  %v5182_v19 = vld [vmem:[%s9761_s4 + $0x8] sm:$0xff] }
0x1ce6   :  { %6631 = vrsqrt.f32 %v4951_v31  ;;  %v6388_v31 = vpack.c.bf16 %v5182_v19, %v5181_v15 }
0x1ce7   :  { %v6628_v34 = vpop.eup %6627  ;;  %6633 = vrsqrt.f32 %v4950_v12  ;;  %v5183_v12 = vld [vmem:[%s9761_s4 + $0x10] sm:$0xff] }
0x1ce8   :  { %v6630_v55 = vpop.eup %6629  ;;  %v4957_v58 = vmul.f32 %v6628_v34, %v4925_v17  ;;  %v5184_v34 = vld [vmem:[%s9761_s4 + $0x18] sm:$0xf] }
0x1ce9   :  { %v4956_v24 = vmul.f32 %v6630_v55, %v4924_v54  ;;  %v6392_v55 = vpack.c.bf16 %v5184_v34, %v5183_v12 }
0x1cea   :  { %v4985_v57 = vmul.f32 %v4972_v10, %v4957_v58  ;;  %v5010_v16 = vpop.permute.xlu0 %5009  ;;  %v5154_v10 = vld [vmem:[%s9408_s24 + $0x80] sm:$0xff] }
0x1ceb   :  { %v4984_v48 = vmul.f32 %v4967_v44, %v4956_v24  ;;  %v5153_v44 = vld [vmem:[%s9408_s24 + $0x78] sm:$0xff] }
0x1cec   :  { %v5013_v52 = vadd.f32 %v5000_v37, %v4985_v57 }
0x1ced   :  { %v5012_v3 = vadd.f32 %v4995_v29, %v4984_v48 }
0x1cee   :  { %v5376_v39 = vmul.f32 -1.442695, %v5013_v52 }
0x1cef   :  { %v5375_v56 = vmul.f32 -1.442695, %v5012_v3 }
0x1cf0   :  { %v6632_v22 = vpop.eup %6631  ;;  %6635 = vpow2.f32 %v5376_v39 }
0x1cf1   :  { %v6634_v26 = vpop.eup %6633  ;;  %v4959_v1 = vmul.f32 %v6632_v22, %v4927_v47  ;;  %6637 = vpow2.f32 %v5375_v56 }
0x1cf2   :  { %v4958_v18 = vmul.f32 %v6634_v26, %v4926_v61 }
0x1cf3   :  { %v4987_v25 = vmul.f32 %v4982_v6, %v4959_v1 }
0x1cf4   :  { %v4986_v50 = vmul.f32 %v4977_v36, %v4958_v18 }
0x1cf5   :  { %v5015_v2 = vadd.f32 %v5010_v16, %v4987_v25 }
0x1cf6   :  { %v5014_v9 = vadd.f32 %v5005_v38, %v4986_v50 }
0x1cf7   :  { %v5378_v53 = vmul.f32 -1.442695, %v5015_v2 }
0x1cf8   :  { %v5377_v27 = vmul.f32 -1.442695, %v5014_v9 }
0x1cf9   :  { %6639 = vpow2.f32 %v5378_v53 }
0x1cfa   :  { %v6636_v8 = vpop.eup %6635  ;;  %6641 = vpow2.f32 %v5377_v27 }
0x1cfb   :  { %v6638_v5 = vpop.eup %6637  ;;  %v5029_v30 = vadd.f32 1.0, %v6636_v8 }
0x1cfc   :  { %v5028_v51 = vadd.f32 1.0, %v6638_v5 }
0x1cfd   :  { %6643 = vrcp.f32 %v5029_v30 }
0x1cfe   :  { %6645 = vrcp.f32 %v5028_v51 }
0x1d03   :  { %v6640_v17 = vpop.eup %6639 }
0x1d04   :  { %v6642_v54 = vpop.eup %6641  ;;  %v5031_v11 = vadd.f32 1.0, %v6640_v17 }
0x1d05   :  { %v5030_v41 = vadd.f32 1.0, %v6642_v54 }
0x1d06   :  { %6647 = vrcp.f32 %v5031_v11 }
0x1d07   :  { %v6644_v14 = vpop.eup %6643  ;;  %6649 = vrcp.f32 %v5030_v41 }
0x1d08   :  { %v6646_v33 = vpop.eup %6645  ;;  %v5041_v40 = vmul.f32 %v6644_v14, %v5013_v52 }
0x1d09   :  { %v5040_v45 = vmul.f32 %v6646_v33, %v5012_v3 }
0x1d0b   :  { %v6380_v7 = vpack.c.bf16 %v5041_v40, %v5040_v45 }
0x1d0d   :  { %6381 = vmatprep.subr.bf16.mxu1 %v6380_v7 }
0x1d0e   :  { %6383 = vmatpush3.bf16.msra.mxu1 %v6380_v7 }
0x1d10   :  { %v6648_v21 = vpop.eup %6647 }
0x1d11   :  { %v6650_v47 = vpop.eup %6649  ;;  %v5043_v61 = vmul.f32 %v6648_v21, %v5015_v2 }
0x1d12   :  { %v5042_v32 = vmul.f32 %v6650_v47, %v5014_v9 }
0x1d14   :  { %v6384_v23 = vpack.c.bf16 %v5043_v61, %v5042_v32 }
0x1d16   :  { %6385 = vmatprep.subr.bf16.mxu1 %v6384_v23 }
0x1d17   :  { %6387 = vmatpush3.bf16.msra.mxu1 %v6384_v23 }
0x1d18   :  { %6389 = vmatprep.subr.bf16.mxu1 %v6388_v31 }
0x1d1a   :  { %6044 = vmatmul.mubr.msk.f32.vlgmr.msra.gmra.mrb[20].mxu1 %vm4123_vm10, %v5045_v43 }
0x1d1b   :  { %6391 = vmatpush3.bf16.msra.mxu1 %v6388_v31 }
0x1d1c   :  { %6394 = vmatprep.subr.msk.bf16.mxu1 %vm9153_vm13, %v6392_v55 }
0x1d1f   :  { %6397 = vmatpush3.bf16.msk.msra.mxu1 %vm9153_vm13, %v6392_v55 }
0x1ded   :  { %v6045_v28 = vpop.f32.mrb[20].mxu1 }
0x1dee   :  { %v5118_v60 = vpop.f32.mrb[21].mxu1  ;;  %v5130_v0 = vsel %vm2973_vm14, %v6045_v28, 0.0 }
0x1def   :  { %5131 = vadd.xlane.f32.xlu0 %v5130_v0  ;;  %v5127_v63 = vsel %vm2973_vm14, %v5118_v60, 0.0 }
0x1df0   :  { %5128 = vadd.xlane.f32.xlu1 %v5127_v63 }
0x1e01   :  { %5162 = vperm.xlu1 %6520, %v5154_v10  }
0x1e05   :  { %5157 = vperm.xlu0 %6519, %v5153_v44  }
0x1e7c   :  { %v5132_v29 = vpop.xlane.xlu0 %5131 }
0x1e7d   :  { %v5134_v37 = vmul.f32 0.035714287, %v5132_v29  ;;  %v5129_v36 = vpop.xlane.xlu1 %5128 }
0x1e7e   :  { %v5133_v6 = vmul.f32 0.035714287, %v5129_v36 }
0x1e7f   :  { %v5136_v59 = vsub.f32 %v6045_v28, %v5134_v37 }
0x1e80   :  { %v5135_v49 = vsub.f32 %v5118_v60, %v5133_v6 }
0x1e81   :  { %v5138_v13 = vmul.f32 %v5136_v59, %v5136_v59  ;;  %v5163_v58 = vpop.permute.xlu1 %5162 }
0x1e82   :  { %v5137_v20 = vmul.f32 %v5135_v49, %v5135_v49 }
0x1e83   :  { %v5142_v4 = vsel %vm2973_vm14, %v5138_v13, 0.0 }
0x1e84   :  { %5143 = vadd.xlane.f32.xlu1 %v5142_v4  ;;  %v5139_v62 = vsel %vm2973_vm14, %v5137_v20, 0.0  ;;  %v5158_v24 = vpop.permute.xlu0 %5157 }
0x1e85   :  { %5140 = vadd.xlane.f32.xlu0 %v5139_v62 }
0x1e95   :  { %5171 = vperm.xlu1 %6520, %v5167_v46  }
0x1e9b   :  { %5176 = vperm.xlu0 %6519, %v5168_v42  }
0x1f11   :  { %v5144_v57 = vpop.xlane.xlu1 %5143 }
0x1f12   :  { %v5146_v48 = vmul.f32 0.035714287, %v5144_v57  ;;  %v5141_v52 = vpop.xlane.xlu0 %5140 }
0x1f13   :  { %v5145_v3 = vmul.f32 0.035714287, %v5141_v52 }
0x1f14   :  { %v5148_v39 = vadd.f32 1e-05, %v5146_v48 }
0x1f15   :  { %v5147_v56 = vadd.f32 1e-05, %v5145_v3  ;;  %v5172_v16 = vpop.permute.xlu1 %5171 }
0x1f16   :  { %6651 = vrsqrt.f32 %v5148_v39 }
0x1f17   :  { %6653 = vrsqrt.f32 %v5147_v56 }
0x1f1a   :  { %v5177_v35 = vpop.permute.xlu0 %5176 }
0x1f20   :  { %v6652_v22 = vpop.eup %6651 }
0x1f21   :  { %v6654_v26 = vpop.eup %6653  ;;  %v5152_v1 = vmul.f32 %v6652_v22, %v5136_v59 }
0x1f22   :  { %v5151_v18 = vmul.f32 %v6654_v26, %v5135_v49 }
0x1f23   :  { %v5166_v25 = vmul.f32 %v5163_v58, %v5152_v1 }
0x1f24   :  { %v5165_v50 = vmul.f32 %v5158_v24, %v5151_v18 }
0x1f25   :  { %v5180_v2 = vadd.f32 %v5177_v35, %v5166_v25 }
0x1f26   :  { %v5179_v38 = vadd.f32 %v5172_v16, %v5165_v50 }
0x1f28   :  { %6054 = vmatprep.mubr.msk.f32.mxu1 %vm2973_vm14, %v5179_v38 }
0x1f29   :  { %6055 = vmatmul.mubr.msk.f32.vlgmr.msra.gmra.mrb[22].mxu1 %vm2973_vm14, %v5180_v2 }
0x1ffc   :  { %v6056_v9 = vpop.f32.mrb[22].mxu1 }
0x1ffd   :  { %5271 = vst.msk [vmem:[%s9762_s22 + $0x8] sm:$0xff] %vm5269_vm7, %v6056_v9  ;;  %v5260_v53 = vpop.f32.mrb[23].mxu1 }
0x1ffe   :  { %5270 = vst.msk [vmem:[%s9762_s22] sm:$0xff] %vm5269_vm7, %v5260_v53 }
0x1fff   :  { %5276 = vsyncpa [#allocation3], 1 }

</bundles_post_ra>
